<compile_context>
chip_gen: v5e
topology: v5e:2x2
jax: 0.10.0
libtpu: 0.0.40
codegen_flags: <defaults>
</compile_context>

<pallas_src>
import jax
import jax.numpy as jnp
import numpy as np
from jax import lax
from jax.experimental import pallas as pl
from jax.experimental.pallas import tpu as pltpu


# ----------------------------- network geometry -----------------------------

_C1_OUT = 16      # conv1: 1 -> 16, k3 s2 p1 : 30x30 -> 15x15
_C1_OHW = 15
_C2_OUT = 32      # conv2: 16 -> 32, k3 s2 p1 : 15x15 -> 8x8
_C2_OHW = 8
_FOV_OUT = 8      # fov conv: 1 -> 8, k2 s1 p0 : 3x3 -> 2x2
_FOV_OHW = 2
_HID = 256
_NPAD = 128       # lane width of the single packed output row


def _conv2_gather_matrix():
    """Constant 0/1 matrix G (9*64, 225): row t*64+p selects the conv1-output pixel
    (channels-last row index q = r*15 + c) that is tap t=(i,j) of conv2 output
    position p = oh*8 + ow (stride 2, pad 1). Out-of-bounds taps stay all-zero."""
    k, s, pad = 3, 2, 1
    H = W = _C1_OHW
    OH = OW = _C2_OHW
    g = np.zeros((k * k, OH * OW, H * W), np.float32)
    for i in range(k):
        for j in range(k):
            t = i * k + j
            for oh in range(OH):
                for ow in range(OW):
                    r = s * oh + i - pad
                    c = s * ow + j - pad
                    if 0 <= r < H and 0 <= c < W:
                        g[t, oh * OW + ow, r * W + c] = 1.0
    return g.reshape(k * k * OH * OW, H * W)            # (576, 225)


# ----------------------------- the fused Pallas kernel -----------------------------

def _a3c_forward_kernel(
    # activations (prepared in the jitted wrapper)
    p1_ref,     # (225, 9)      f32  conv1 im2col patches (visit-count map)
    pf_ref,     # (4, 4)        f32  fov-conv im2col patches
    cp_ref,     # (1, 2)        f32  car position
    # visit-count branch weights
    w1_ref,     # (9, 16)       bf16
    b1_ref,     # (1, 16)       f32
    g_ref,      # (576, 225)    bf16 constant gather matrix (conv2 im2col)
    w2t_ref,    # (9, 16, 32)   bf16 per-tap conv2 weights
    b2_ref,     # (1, 32)       f32
    wfc_ref,    # (64, 32, 128) bf16 vc_fc weight laid out (spatial, cin, out)
    bfc_ref,    # (1, 128)      f32
    # fov branch weights
    wfv_ref,    # (4, 8)        bf16
    bfv_ref,    # (1, 8)        f32
    wff_ref,    # (4, 8, 32)    bf16 fov_fc weight laid out (spatial, cin, out)
    bff_ref,    # (1, 32)       f32
    # merged heads, layer 1 (actor|critic fused along N=512, split along K)
    w1vc_ref,   # (128, 512)    bf16
    w1fov_ref,  # (32, 512)     bf16
    w1cp_ref,   # (2, 512)      bf16
    b1m_ref,    # (1, 512)      f32
    # layer 2
    aw2_ref,    # (256, 256)    bf16
    ab2_ref,    # (1, 256)      f32
    cw2_ref,    # (256, 256)    bf16
    cb2_ref,    # (1, 256)      f32
    # layer 3
    aw3_ref,    # (256, 128)    bf16 (zero-padded from (256, action_size))
    ab3_ref,    # (1, 128)      f32  (zero-padded)
    cw3_ref,    # (1, 256)      f32  critic 256 -> 1 done on the VPU
    cb3_ref,    # (1, 1)        f32
    # output
    out_ref,    # (1, 128)      f32  lanes [0:A) = actor logits, lane 127 = critic
    # scratch
    z2_scr,     # VMEM (64, 32) f32
    yf_scr,     # VMEM (4, 8)   f32
):
    bf16, f32 = jnp.bfloat16, jnp.float32

    def mm(a, b):
        # bf16 x bf16 on the MXU, f32 accumulation.
        return jnp.dot(a.astype(bf16), b.astype(bf16), preferred_element_type=f32)

    # ---------------- visit-count branch ----------------
    # conv1 (im2col patches @ weight) + bias + ReLU -> (225, 16), channels-last.
    y1 = jnp.maximum(mm(p1_ref[...], w1_ref[...]) + b1_ref[...], 0.0)

    # conv2: gather the 9 taps with the constant 0/1 matrix, then 9 unrolled tap
    # matmuls, bias, ReLU -> (64, 32), channels-last.
    taps = mm(g_ref[...], y1)                                   # (576, 16)
    n_taps = w2t_ref.shape[0]
    n_pos2 = _C2_OHW * _C2_OHW
    z2 = b2_ref[...]                                            # (1, 32) broadcast
    for t in range(n_taps):
        z2 = z2 + mm(taps[t * n_pos2:(t + 1) * n_pos2, :], w2t_ref[t])
    z2 = jnp.maximum(z2, 0.0)                                   # (64, 32)
    z2_scr[...] = z2

    # Flatten + Linear(2048 -> 128) decomposed over the 64 spatial rows (no
    # sublane->lane relayout; same total MXU weight-push work as one big matmul).
    x1 = bfc_ref[...]                                           # (1, 128)
    for p in range(n_pos2):
        x1 = x1 + mm(z2_scr[p:p + 1, :], wfc_ref[p])

    # ---------------- fov branch ----------------
    yf = jnp.maximum(mm(pf_ref[...], wfv_ref[...]) + bfv_ref[...], 0.0)   # (4, 8)
    yf_scr[...] = yf
    x2 = bff_ref[...]                                           # (1, 32)
    for p in range(wff_ref.shape[0]):
        x2 = x2 + mm(yf_scr[p:p + 1, :], wff_ref[p])

    # ---------------- merged actor / critic heads ----------------
    hd = aw2_ref.shape[0]
    # layer 1: merged = [x1 | x2 | car_pos] handled by splitting K -> 3 dots,
    # actor & critic fused along N (512 wide).
    h1 = (mm(x1, w1vc_ref[...]) + mm(x2, w1fov_ref[...]) +
          mm(cp_ref[...], w1cp_ref[...]) + b1m_ref[...])
    h1 = jnp.maximum(h1, 0.0)                                   # (1, 512)

    a_h = jnp.maximum(mm(h1[:, :hd], aw2_ref[...]) + ab2_ref[...], 0.0)        # (1, 256)
    c_h = jnp.maximum(mm(h1[:, hd:2 * hd], cw2_ref[...]) + cb2_ref[...], 0.0)  # (1, 256)

    actor_row = mm(a_h, aw3_ref[...]) + ab3_ref[...]            # (1, 128); lanes >= A are 0
    critic = jnp.sum(c_h * cw3_ref[...], axis=1, keepdims=True) + cb3_ref[...]  # (1, 1)

    # Pack both results into a single lane-dense 128-wide row: critic sits in the
    # last lane (actor_row is zero there because aw3/ab3 are zero-padded).
    lane = lax.broadcasted_iota(jnp.int32, (1, _NPAD), 1)
    out_ref[...] = actor_row + jnp.where(lane == _NPAD - 1, critic, 0.0)


# ----------------------------- parameters -----------------------------

def init_params(key, state_shape, action_size, hidden_dim=_HID):
    car_dim = state_shape[2][0]
    merged_dim = 128 + 32 + car_dim
    shapes = {
        "conv1_w": (16, 1, 3, 3), "conv1_b": (16,),
        "conv2_w": (32, 16, 3, 3), "conv2_b": (32,),
        "vc_fc_w": (128, 32 * 8 * 8), "vc_fc_b": (128,),
        "fov_conv_w": (8, 1, 2, 2), "fov_conv_b": (8,),
        "fov_fc_w": (32, 8 * 2 * 2), "fov_fc_b": (32,),
        "actor_w1": (hidden_dim, merged_dim), "actor_b1": (hidden_dim,),
        "actor_w2": (hidden_dim, hidden_dim), "actor_b2": (hidden_dim,),
        "actor_w3": (action_size, hidden_dim), "actor_b3": (action_size,),
        "critic_w1": (hidden_dim, merged_dim), "critic_b1": (hidden_dim,),
        "critic_w2": (hidden_dim, hidden_dim), "critic_b2": (hidden_dim,),
        "critic_w3": (1, hidden_dim), "critic_b3": (1,),
    }
    fan_in = {
        "conv1_w": 9, "conv1_b": 9,
        "conv2_w": 16 * 9, "conv2_b": 16 * 9,
        "vc_fc_w": 32 * 8 * 8, "vc_fc_b": 32 * 8 * 8,
        "fov_conv_w": 4, "fov_conv_b": 4,
        "fov_fc_w": 32, "fov_fc_b": 32,
        "actor_w1": merged_dim, "actor_b1": merged_dim,
        "actor_w2": hidden_dim, "actor_b2": hidden_dim,
        "actor_w3": hidden_dim, "actor_b3": hidden_dim,
        "critic_w1": merged_dim, "critic_b1": merged_dim,
        "critic_w2": hidden_dim, "critic_b2": hidden_dim,
        "critic_w3": hidden_dim, "critic_b3": hidden_dim,
    }
    params = {}
    names = sorted(shapes)
    keys = jax.random.split(key, len(names))
    for k, name in zip(keys, names):
        bound = 1.0 / (fan_in[name] ** 0.5)
        params[name] = jax.random.uniform(k, shapes[name], jnp.float32, -bound, bound)
    return params


def prepare_params(params, action_size, hidden_dim=_HID):
    """One-time (outside jit) weight preparation: transpose / reorder into the layouts
    the fused kernel consumes, cast matmul operands to bf16, keep biases in f32."""
    assert action_size <= _NPAD - 1, "actor logits + critic must fit in one 128-lane row"
    f32, bf16 = jnp.float32, jnp.bfloat16
    row = lambda b: jnp.asarray(b, f32).reshape(1, -1)

    prep = {}
    # conv1: (16,1,3,3) -> (9, 16) so the conv runs as patches @ W.
    prep["w1"] = jnp.asarray(params["conv1_w"], f32).reshape(_C1_OUT, 9).T.astype(bf16)
    prep["b1"] = row(params["conv1_b"])
    # conv2: constant gather matrix + per-tap (16, 32) weights.
    prep["g"] = jnp.asarray(_conv2_gather_matrix(), dtype=bf16)
    w2 = jnp.asarray(params["conv2_w"], f32)                     # (32, 16, 3, 3)
    prep["w2t"] = jnp.stack([w2[:, :, i, j].T for i in range(3) for j in range(3)],
                            axis=0).astype(bf16)                 # (9, 16, 32)
    prep["b2"] = row(params["conv2_b"])
    # vc_fc: (128, 2048) with flat index c*64+p  ->  (p, c, n) = (64, 32, 128).
    prep["wfc"] = (jnp.asarray(params["vc_fc_w"], f32)
                   .reshape(128, _C2_OUT, _C2_OHW * _C2_OHW)
                   .transpose(2, 1, 0).astype(bf16))
    prep["bfc"] = row(params["vc_fc_b"])
    # fov conv: (8,1,2,2) -> (4, 8).
    prep["wfv"] = jnp.asarray(params["fov_conv_w"], f32).reshape(_FOV_OUT, 4).T.astype(bf16)
    prep["bfv"] = row(params["fov_conv_b"])
    # fov_fc: (32, 32) with flat index c*4+p -> (p, c, n) = (4, 8, 32).
    prep["wff"] = (jnp.asarray(params["fov_fc_w"], f32)
                   .reshape(32, _FOV_OUT, _FOV_OHW * _FOV_OHW)
                   .transpose(2, 1, 0).astype(bf16))
    prep["bff"] = row(params["fov_fc_b"])

    # heads, layer 1: actor & critic merged along N (162, 2*hidden), split along K to
    # match merged = [x1(128) | x2(32) | car_pos(2)] without an in-kernel concat.
    w1m = jnp.concatenate([jnp.asarray(params["actor_w1"], f32).T,
                           jnp.asarray(params["critic_w1"], f32).T], axis=1)
    prep["w1vc"] = w1m[:128].astype(bf16)
    prep["w1fov"] = w1m[128:160].astype(bf16)
    prep["w1cp"] = w1m[160:162].astype(bf16)
    prep["b1m"] = jnp.concatenate([row(params["actor_b1"]), row(params["critic_b1"])],
                                  axis=1)

    # layer 2 (per-head, inputs differ so no further merging).
    prep["aw2"] = jnp.asarray(params["actor_w2"], f32).T.astype(bf16)
    prep["ab2"] = row(params["actor_b2"])
    prep["cw2"] = jnp.asarray(params["critic_w2"], f32).T.astype(bf16)
    prep["cb2"] = row(params["critic_b2"])

    # layer 3: actor padded along N to a full 128-lane tile; critic kept f32 for a
    # VPU multiply + lane-reduce.
    aw3 = jnp.zeros((hidden_dim, _NPAD), f32).at[:, :action_size].set(
        jnp.asarray(params["actor_w3"], f32).T)
    ab3 = jnp.zeros((1, _NPAD), f32).at[:, :action_size].set(row(params["actor_b3"]))
    prep["aw3"] = aw3.astype(bf16)
    prep["ab3"] = ab3
    prep["cw3"] = row(params["critic_w3"])                       # (1, 256)
    prep["cb3"] = row(params["critic_b3"])                       # (1, 1)
    return prep


# ----------------------------- forward -----------------------------

def _forward_impl(prep, visit_count, fov_map, car_pos, action_size):
    f32 = jnp.float32

    # Tiny XLA-side patch extraction of the raw inputs (see TODO(synk) above).
    vc = visit_count[:, :, 0].astype(f32)                        # (30, 30)
    xp = jnp.pad(vc, ((1, 1), (1, 1)))                           # (32, 32)
    p1 = jnp.stack([xp[i:i + 29:2, j:j + 29:2]
                    for i in range(3) for j in range(3)], axis=-1).reshape(225, 9)
    fv = fov_map[:, :, 0].astype(f32)                            # (3, 3)
    pf = jnp.stack([fv[i:i + 2, j:j + 2]
                    for i in range(2) for j in range(2)], axis=-1).reshape(4, 4)
    cp = car_pos[:, 0].astype(f32)[None, :]                      # (1, 2)

    # Advisory cost hint for XLA's scheduler (~2.9M MACs, ~1.4 MiB of weights).
    cost = pl.CostEstimate(flops=5_900_000, transcendentals=0,
                           bytes_accessed=1_500_000)

    out = pl.pallas_call(
        _a3c_forward_kernel,
        out_shape=jax.ShapeDtypeStruct((1, _NPAD), f32),
        scratch_shapes=(pltpu.VMEM((_C2_OHW * _C2_OHW, _C2_OUT), f32),
                        pltpu.VMEM((_FOV_OHW * _FOV_OHW, _FOV_OUT), f32)),
        cost_estimate=cost,
    )(p1, pf, cp,
      prep["w1"], prep["b1"], prep["g"], prep["w2t"], prep["b2"],
      prep["wfc"], prep["bfc"],
      prep["wfv"], prep["bfv"], prep["wff"], prep["bff"],
      prep["w1vc"], prep["w1fov"], prep["w1cp"], prep["b1m"],
      prep["aw2"], prep["ab2"], prep["cw2"], prep["cb2"],
      prep["aw3"], prep["ab3"], prep["cw3"], prep["cb3"])

    actor = out[:, :action_size]                                 # (1, action_size)
    critic = out[:, _NPAD - 1:_NPAD]                             # (1, 1)
    return actor, critic


forward = jax.jit(_forward_impl, static_argnums=(4,))


if __name__ == "__main__":
    state_shape = ((30, 30, 1), (3, 3, 1), (2, 1))
    action_size = 4

    key = jax.random.PRNGKey(0)
    kp, k1, k2, k3 = jax.random.split(key, 4)
    params = init_params(kp, state_shape, action_size)
    prep = prepare_params(params, action_size)                  # one-time, outside jit

    visit_count = jax.random.uniform(k1, state_shape[0], jnp.float32)
    fov_map = jax.random.uniform(k2, state_shape[1], jnp.float32)
    car_pos = jax.random.uniform(k3, state_shape[2], jnp.float32)

    actor_out, critic_out = forward(prep, visit_count, fov_map, car_pos, action_size)
    jax.block_until_ready((actor_out, critic_out))

    assert actor_out.shape == (1, action_size), actor_out.shape
    assert critic_out.shape == (1, 1), critic_out.shape
    assert bool(jnp.all(jnp.isfinite(actor_out))), "actor output not finite"
    assert bool(jnp.isfinite(critic_out[0, 0])), "critic output not finite"
    print("KERNEL_OK")
</pallas_src>

<mosaic_0001>
module attributes {stable_mosaic.version = 11 : i64} {
  func.func @_a3c_forward_kernel(%arg0: memref<225x9xf32, #tpu.memory_space<vmem>>, %arg1: memref<4x4xf32, #tpu.memory_space<vmem>>, %arg2: memref<1x2xf32, #tpu.memory_space<vmem>>, %arg3: memref<9x16xbf16, #tpu.memory_space<vmem>>, %arg4: memref<1x16xf32, #tpu.memory_space<vmem>>, %arg5: memref<576x225xbf16, #tpu.memory_space<vmem>>, %arg6: memref<9x16x32xbf16, #tpu.memory_space<vmem>>, %arg7: memref<1x32xf32, #tpu.memory_space<vmem>>, %arg8: memref<64x32x128xbf16, #tpu.memory_space<vmem>>, %arg9: memref<1x128xf32, #tpu.memory_space<vmem>>, %arg10: memref<4x8xbf16, #tpu.memory_space<vmem>>, %arg11: memref<1x8xf32, #tpu.memory_space<vmem>>, %arg12: memref<4x8x32xbf16, #tpu.memory_space<vmem>>, %arg13: memref<1x32xf32, #tpu.memory_space<vmem>>, %arg14: memref<128x512xbf16, #tpu.memory_space<vmem>>, %arg15: memref<32x512xbf16, #tpu.memory_space<vmem>>, %arg16: memref<2x512xbf16, #tpu.memory_space<vmem>>, %arg17: memref<1x512xf32, #tpu.memory_space<vmem>>, %arg18: memref<256x256xbf16, #tpu.memory_space<vmem>>, %arg19: memref<1x256xf32, #tpu.memory_space<vmem>>, %arg20: memref<256x256xbf16, #tpu.memory_space<vmem>>, %arg21: memref<1x256xf32, #tpu.memory_space<vmem>>, %arg22: memref<256x128xbf16, #tpu.memory_space<vmem>>, %arg23: memref<1x128xf32, #tpu.memory_space<vmem>>, %arg24: memref<1x256xf32, #tpu.memory_space<vmem>>, %arg25: memref<1x1xf32, #tpu.memory_space<vmem>>, %arg26: memref<1x128xf32, #tpu.memory_space<vmem>>, %arg27: memref<64x32xf32, #tpu.memory_space<vmem>>, %arg28: memref<4x8xf32, #tpu.memory_space<vmem>>) attributes {dimension_semantics = [], scalar_prefetch = 0 : i64, scratch_operands = 2 : i64, tpu.core_type = #tpu.core_type<tc>} {
    %c0 = arith.constant 0 : index
    %c0_0 = arith.constant 0 : index
    %0 = vector.load %arg0[%c0, %c0_0] : memref<225x9xf32, #tpu.memory_space<vmem>>, vector<225x9xf32>
    %c0_1 = arith.constant 0 : index
    %c0_2 = arith.constant 0 : index
    %1 = vector.load %arg3[%c0_1, %c0_2] : memref<9x16xbf16, #tpu.memory_space<vmem>>, vector<9x16xbf16>
    %2 = arith.truncf %0 : vector<225x9xf32> to vector<225x9xbf16>
    %cst = arith.constant dense<0.000000e+00> : vector<225x16xf32>
    %3 = tpu.matmul %2, %1, %cst {dimension_numbers = #tpu.dot_dimension_numbers<[1], [0], [0], [1], [0, 0, 1, 1], [], []>} : vector<225x9xbf16>, vector<9x16xbf16>, vector<225x16xf32> -> vector<225x16xf32>
    %c0_3 = arith.constant 0 : index
    %c0_4 = arith.constant 0 : index
    %4 = vector.load %arg4[%c0_3, %c0_4] : memref<1x16xf32, #tpu.memory_space<vmem>>, vector<1x16xf32>
    %5 = vector.broadcast %4 : vector<1x16xf32> to vector<225x16xf32>
    %6 = arith.addf %3, %5 : vector<225x16xf32>
    %cst_5 = arith.constant 0.000000e+00 : f32
    %7 = vector.broadcast %cst_5 : f32 to vector<225x16xf32>
    %8 = arith.maximumf %6, %7 : vector<225x16xf32>
    %c0_6 = arith.constant 0 : index
    %c0_7 = arith.constant 0 : index
    %9 = vector.load %arg5[%c0_6, %c0_7] : memref<576x225xbf16, #tpu.memory_space<vmem>>, vector<576x225xbf16>
    %10 = arith.truncf %8 : vector<225x16xf32> to vector<225x16xbf16>
    %cst_8 = arith.constant dense<0.000000e+00> : vector<576x16xf32>
    %11 = tpu.matmul %9, %10, %cst_8 {dimension_numbers = #tpu.dot_dimension_numbers<[1], [0], [0], [1], [0, 0, 1, 1], [], []>} : vector<576x225xbf16>, vector<225x16xbf16>, vector<576x16xf32> -> vector<576x16xf32>
    %c0_9 = arith.constant 0 : index
    %c0_10 = arith.constant 0 : index
    %12 = vector.load %arg7[%c0_9, %c0_10] : memref<1x32xf32, #tpu.memory_space<vmem>>, vector<1x32xf32>
    %13 = vector.extract_strided_slice %11 {offsets = [0, 0], sizes = [64, 16], strides = [1, 1]} : vector<576x16xf32> to vector<64x16xf32>
    %c0_11 = arith.constant 0 : index
    %c0_12 = arith.constant 0 : index
    %c0_13 = arith.constant 0 : index
    %14 = vector.load %arg6[%c0_11, %c0_12, %c0_13] : memref<9x16x32xbf16, #tpu.memory_space<vmem>>, vector<1x16x32xbf16>
    %15 = vector.shape_cast %14 : vector<1x16x32xbf16> to vector<16x32xbf16>
    %16 = arith.truncf %13 : vector<64x16xf32> to vector<64x16xbf16>
    %cst_14 = arith.constant dense<0.000000e+00> : vector<64x32xf32>
    %17 = tpu.matmul %16, %15, %cst_14 {dimension_numbers = #tpu.dot_dimension_numbers<[1], [0], [0], [1], [0, 0, 1, 1], [], []>} : vector<64x16xbf16>, vector<16x32xbf16>, vector<64x32xf32> -> vector<64x32xf32>
    %18 = vector.broadcast %12 : vector<1x32xf32> to vector<64x32xf32>
    %19 = arith.addf %18, %17 : vector<64x32xf32>
    %20 = vector.extract_strided_slice %11 {offsets = [64, 0], sizes = [64, 16], strides = [1, 1]} : vector<576x16xf32> to vector<64x16xf32>
    %c1 = arith.constant 1 : index
    %c0_15 = arith.constant 0 : index
    %c0_16 = arith.constant 0 : index
    %21 = vector.load %arg6[%c1, %c0_15, %c0_16] : memref<9x16x32xbf16, #tpu.memory_space<vmem>>, vector<1x16x32xbf16>
    %22 = vector.shape_cast %21 : vector<1x16x32xbf16> to vector<16x32xbf16>
    %23 = arith.truncf %20 : vector<64x16xf32> to vector<64x16xbf16>
    %cst_17 = arith.constant dense<0.000000e+00> : vector<64x32xf32>
    %24 = tpu.matmul %23, %22, %cst_17 {dimension_numbers = #tpu.dot_dimension_numbers<[1], [0], [0], [1], [0, 0, 1, 1], [], []>} : vector<64x16xbf16>, vector<16x32xbf16>, vector<64x32xf32> -> vector<64x32xf32>
    %25 = arith.addf %19, %24 : vector<64x32xf32>
    %26 = vector.extract_strided_slice %11 {offsets = [128, 0], sizes = [64, 16], strides = [1, 1]} : vector<576x16xf32> to vector<64x16xf32>
    %c2 = arith.constant 2 : index
    %c0_18 = arith.constant 0 : index
    %c0_19 = arith.constant 0 : index
    %27 = vector.load %arg6[%c2, %c0_18, %c0_19] : memref<9x16x32xbf16, #tpu.memory_space<vmem>>, vector<1x16x32xbf16>
    %28 = vector.shape_cast %27 : vector<1x16x32xbf16> to vector<16x32xbf16>
    %29 = arith.truncf %26 : vector<64x16xf32> to vector<64x16xbf16>
    %cst_20 = arith.constant dense<0.000000e+00> : vector<64x32xf32>
    %30 = tpu.matmul %29, %28, %cst_20 {dimension_numbers = #tpu.dot_dimension_numbers<[1], [0], [0], [1], [0, 0, 1, 1], [], []>} : vector<64x16xbf16>, vector<16x32xbf16>, vector<64x32xf32> -> vector<64x32xf32>
    %31 = arith.addf %25, %30 : vector<64x32xf32>
    %32 = vector.extract_strided_slice %11 {offsets = [192, 0], sizes = [64, 16], strides = [1, 1]} : vector<576x16xf32> to vector<64x16xf32>
    %c3 = arith.constant 3 : index
    %c0_21 = arith.constant 0 : index
    %c0_22 = arith.constant 0 : index
    %33 = vector.load %arg6[%c3, %c0_21, %c0_22] : memref<9x16x32xbf16, #tpu.memory_space<vmem>>, vector<1x16x32xbf16>
    %34 = vector.shape_cast %33 : vector<1x16x32xbf16> to vector<16x32xbf16>
    %35 = arith.truncf %32 : vector<64x16xf32> to vector<64x16xbf16>
    %cst_23 = arith.constant dense<0.000000e+00> : vector<64x32xf32>
    %36 = tpu.matmul %35, %34, %cst_23 {dimension_numbers = #tpu.dot_dimension_numbers<[1], [0], [0], [1], [0, 0, 1, 1], [], []>} : vector<64x16xbf16>, vector<16x32xbf16>, vector<64x32xf32> -> vector<64x32xf32>
    %37 = arith.addf %31, %36 : vector<64x32xf32>
    %38 = vector.extract_strided_slice %11 {offsets = [256, 0], sizes = [64, 16], strides = [1, 1]} : vector<576x16xf32> to vector<64x16xf32>
    %c4 = arith.constant 4 : index
    %c0_24 = arith.constant 0 : index
    %c0_25 = arith.constant 0 : index
    %39 = vector.load %arg6[%c4, %c0_24, %c0_25] : memref<9x16x32xbf16, #tpu.memory_space<vmem>>, vector<1x16x32xbf16>
    %40 = vector.shape_cast %39 : vector<1x16x32xbf16> to vector<16x32xbf16>
    %41 = arith.truncf %38 : vector<64x16xf32> to vector<64x16xbf16>
    %cst_26 = arith.constant dense<0.000000e+00> : vector<64x32xf32>
    %42 = tpu.matmul %41, %40, %cst_26 {dimension_numbers = #tpu.dot_dimension_numbers<[1], [0], [0], [1], [0, 0, 1, 1], [], []>} : vector<64x16xbf16>, vector<16x32xbf16>, vector<64x32xf32> -> vector<64x32xf32>
    %43 = arith.addf %37, %42 : vector<64x32xf32>
    %44 = vector.extract_strided_slice %11 {offsets = [320, 0], sizes = [64, 16], strides = [1, 1]} : vector<576x16xf32> to vector<64x16xf32>
    %c5 = arith.constant 5 : index
    %c0_27 = arith.constant 0 : index
    %c0_28 = arith.constant 0 : index
    %45 = vector.load %arg6[%c5, %c0_27, %c0_28] : memref<9x16x32xbf16, #tpu.memory_space<vmem>>, vector<1x16x32xbf16>
    %46 = vector.shape_cast %45 : vector<1x16x32xbf16> to vector<16x32xbf16>
    %47 = arith.truncf %44 : vector<64x16xf32> to vector<64x16xbf16>
    %cst_29 = arith.constant dense<0.000000e+00> : vector<64x32xf32>
    %48 = tpu.matmul %47, %46, %cst_29 {dimension_numbers = #tpu.dot_dimension_numbers<[1], [0], [0], [1], [0, 0, 1, 1], [], []>} : vector<64x16xbf16>, vector<16x32xbf16>, vector<64x32xf32> -> vector<64x32xf32>
    %49 = arith.addf %43, %48 : vector<64x32xf32>
    %50 = vector.extract_strided_slice %11 {offsets = [384, 0], sizes = [64, 16], strides = [1, 1]} : vector<576x16xf32> to vector<64x16xf32>
    %c6 = arith.constant 6 : index
    %c0_30 = arith.constant 0 : index
    %c0_31 = arith.constant 0 : index
    %51 = vector.load %arg6[%c6, %c0_30, %c0_31] : memref<9x16x32xbf16, #tpu.memory_space<vmem>>, vector<1x16x32xbf16>
    %52 = vector.shape_cast %51 : vector<1x16x32xbf16> to vector<16x32xbf16>
    %53 = arith.truncf %50 : vector<64x16xf32> to vector<64x16xbf16>
    %cst_32 = arith.constant dense<0.000000e+00> : vector<64x32xf32>
    %54 = tpu.matmul %53, %52, %cst_32 {dimension_numbers = #tpu.dot_dimension_numbers<[1], [0], [0], [1], [0, 0, 1, 1], [], []>} : vector<64x16xbf16>, vector<16x32xbf16>, vector<64x32xf32> -> vector<64x32xf32>
    %55 = arith.addf %49, %54 : vector<64x32xf32>
    %56 = vector.extract_strided_slice %11 {offsets = [448, 0], sizes = [64, 16], strides = [1, 1]} : vector<576x16xf32> to vector<64x16xf32>
    %c7 = arith.constant 7 : index
    %c0_33 = arith.constant 0 : index
    %c0_34 = arith.constant 0 : index
    %57 = vector.load %arg6[%c7, %c0_33, %c0_34] : memref<9x16x32xbf16, #tpu.memory_space<vmem>>, vector<1x16x32xbf16>
    %58 = vector.shape_cast %57 : vector<1x16x32xbf16> to vector<16x32xbf16>
    %59 = arith.truncf %56 : vector<64x16xf32> to vector<64x16xbf16>
    %cst_35 = arith.constant dense<0.000000e+00> : vector<64x32xf32>
    %60 = tpu.matmul %59, %58, %cst_35 {dimension_numbers = #tpu.dot_dimension_numbers<[1], [0], [0], [1], [0, 0, 1, 1], [], []>} : vector<64x16xbf16>, vector<16x32xbf16>, vector<64x32xf32> -> vector<64x32xf32>
    %61 = arith.addf %55, %60 : vector<64x32xf32>
    %62 = vector.extract_strided_slice %11 {offsets = [512, 0], sizes = [64, 16], strides = [1, 1]} : vector<576x16xf32> to vector<64x16xf32>
    %c8 = arith.constant 8 : index
    %c0_36 = arith.constant 0 : index
    %c0_37 = arith.constant 0 : index
    %63 = vector.load %arg6[%c8, %c0_36, %c0_37] : memref<9x16x32xbf16, #tpu.memory_space<vmem>>, vector<1x16x32xbf16>
    %64 = vector.shape_cast %63 : vector<1x16x32xbf16> to vector<16x32xbf16>
    %65 = arith.truncf %62 : vector<64x16xf32> to vector<64x16xbf16>
    %cst_38 = arith.constant dense<0.000000e+00> : vector<64x32xf32>
    %66 = tpu.matmul %65, %64, %cst_38 {dimension_numbers = #tpu.dot_dimension_numbers<[1], [0], [0], [1], [0, 0, 1, 1], [], []>} : vector<64x16xbf16>, vector<16x32xbf16>, vector<64x32xf32> -> vector<64x32xf32>
    %67 = arith.addf %61, %66 : vector<64x32xf32>
    %cst_39 = arith.constant 0.000000e+00 : f32
    %68 = vector.broadcast %cst_39 : f32 to vector<64x32xf32>
    %69 = arith.maximumf %67, %68 : vector<64x32xf32>
    %c0_40 = arith.constant 0 : index
    %c0_41 = arith.constant 0 : index
    %70 = vector.load %arg27[%c0_40, %c0_41] : memref<64x32xf32, #tpu.memory_space<vmem>>, vector<64x32xf32>
    tpu.vector_store %arg27[%c0_40, %c0_41], %69 {strides = array<i32>} : memref<64x32xf32, #tpu.memory_space<vmem>>, vector<64x32xf32>,
    %c0_42 = arith.constant 0 : index
    %c0_43 = arith.constant 0 : index
    %71 = vector.load %arg9[%c0_42, %c0_43] : memref<1x128xf32, #tpu.memory_space<vmem>>, vector<1x128xf32>
    %c0_44 = arith.constant 0 : index
    %c0_45 = arith.constant 0 : index
    %72 = vector.load %arg27[%c0_44, %c0_45] : memref<64x32xf32, #tpu.memory_space<vmem>>, vector<1x32xf32>
    %c0_46 = arith.constant 0 : index
    %c0_47 = arith.constant 0 : index
    %c0_48 = arith.constant 0 : index
    %73 = vector.load %arg8[%c0_46, %c0_47, %c0_48] : memref<64x32x128xbf16, #tpu.memory_space<vmem>>, vector<1x32x128xbf16>
    %74 = vector.shape_cast %73 : vector<1x32x128xbf16> to vector<32x128xbf16>
    %75 = arith.truncf %72 : vector<1x32xf32> to vector<1x32xbf16>
    %cst_49 = arith.constant dense<0.000000e+00> : vector<1x128xf32>
    %76 = tpu.matmul %75, %74, %cst_49 {dimension_numbers = #tpu.dot_dimension_numbers<[1], [0], [0], [1], [0, 0, 1, 1], [], []>} : vector<1x32xbf16>, vector<32x128xbf16>, vector<1x128xf32> -> vector<1x128xf32>
    %77 = arith.addf %71, %76 : vector<1x128xf32>
    %c1_50 = arith.constant 1 : index
    %c0_51 = arith.constant 0 : index
    %78 = vector.load %arg27[%c1_50, %c0_51] : memref<64x32xf32, #tpu.memory_space<vmem>>, vector<1x32xf32>
    %c1_52 = arith.constant 1 : index
    %c0_53 = arith.constant 0 : index
    %c0_54 = arith.constant 0 : index
    %79 = vector.load %arg8[%c1_52, %c0_53, %c0_54] : memref<64x32x128xbf16, #tpu.memory_space<vmem>>, vector<1x32x128xbf16>
    %80 = vector.shape_cast %79 : vector<1x32x128xbf16> to vector<32x128xbf16>
    %81 = arith.truncf %78 : vector<1x32xf32> to vector<1x32xbf16>
    %cst_55 = arith.constant dense<0.000000e+00> : vector<1x128xf32>
    %82 = tpu.matmul %81, %80, %cst_55 {dimension_numbers = #tpu.dot_dimension_numbers<[1], [0], [0], [1], [0, 0, 1, 1], [], []>} : vector<1x32xbf16>, vector<32x128xbf16>, vector<1x128xf32> -> vector<1x128xf32>
    %83 = arith.addf %77, %82 : vector<1x128xf32>
    %c2_56 = arith.constant 2 : index
    %c0_57 = arith.constant 0 : index
    %84 = vector.load %arg27[%c2_56, %c0_57] : memref<64x32xf32, #tpu.memory_space<vmem>>, vector<1x32xf32>
    %c2_58 = arith.constant 2 : index
    %c0_59 = arith.constant 0 : index
    %c0_60 = arith.constant 0 : index
    %85 = vector.load %arg8[%c2_58, %c0_59, %c0_60] : memref<64x32x128xbf16, #tpu.memory_space<vmem>>, vector<1x32x128xbf16>
    %86 = vector.shape_cast %85 : vector<1x32x128xbf16> to vector<32x128xbf16>
    %87 = arith.truncf %84 : vector<1x32xf32> to vector<1x32xbf16>
    %cst_61 = arith.constant dense<0.000000e+00> : vector<1x128xf32>
    %88 = tpu.matmul %87, %86, %cst_61 {dimension_numbers = #tpu.dot_dimension_numbers<[1], [0], [0], [1], [0, 0, 1, 1], [], []>} : vector<1x32xbf16>, vector<32x128xbf16>, vector<1x128xf32> -> vector<1x128xf32>
    %89 = arith.addf %83, %88 : vector<1x128xf32>
    %c3_62 = arith.constant 3 : index
    %c0_63 = arith.constant 0 : index
    %90 = vector.load %arg27[%c3_62, %c0_63] : memref<64x32xf32, #tpu.memory_space<vmem>>, vector<1x32xf32>
    %c3_64 = arith.constant 3 : index
    %c0_65 = arith.constant 0 : index
    %c0_66 = arith.constant 0 : index
    %91 = vector.load %arg8[%c3_64, %c0_65, %c0_66] : memref<64x32x128xbf16, #tpu.memory_space<vmem>>, vector<1x32x128xbf16>
    %92 = vector.shape_cast %91 : vector<1x32x128xbf16> to vector<32x128xbf16>
    %93 = arith.truncf %90 : vector<1x32xf32> to vector<1x32xbf16>
    %cst_67 = arith.constant dense<0.000000e+00> : vector<1x128xf32>
    %94 = tpu.matmul %93, %92, %cst_67 {dimension_numbers = #tpu.dot_dimension_numbers<[1], [0], [0], [1], [0, 0, 1, 1], [], []>} : vector<1x32xbf16>, vector<32x128xbf16>, vector<1x128xf32> -> vector<1x128xf32>
    %95 = arith.addf %89, %94 : vector<1x128xf32>
    %c4_68 = arith.constant 4 : index
    %c0_69 = arith.constant 0 : index
    %96 = vector.load %arg27[%c4_68, %c0_69] : memref<64x32xf32, #tpu.memory_space<vmem>>, vector<1x32xf32>
    %c4_70 = arith.constant 4 : index
    %c0_71 = arith.constant 0 : index
    %c0_72 = arith.constant 0 : index
    %97 = vector.load %arg8[%c4_70, %c0_71, %c0_72] : memref<64x32x128xbf16, #tpu.memory_space<vmem>>, vector<1x32x128xbf16>
    %98 = vector.shape_cast %97 : vector<1x32x128xbf16> to vector<32x128xbf16>
    %99 = arith.truncf %96 : vector<1x32xf32> to vector<1x32xbf16>
    %cst_73 = arith.constant dense<0.000000e+00> : vector<1x128xf32>
    %100 = tpu.matmul %99, %98, %cst_73 {dimension_numbers = #tpu.dot_dimension_numbers<[1], [0], [0], [1], [0, 0, 1, 1], [], []>} : vector<1x32xbf16>, vector<32x128xbf16>, vector<1x128xf32> -> vector<1x128xf32>
    %101 = arith.addf %95, %100 : vector<1x128xf32>
    %c5_74 = arith.constant 5 : index
    %c0_75 = arith.constant 0 : index
    %102 = vector.load %arg27[%c5_74, %c0_75] : memref<64x32xf32, #tpu.memory_space<vmem>>, vector<1x32xf32>
    %c5_76 = arith.constant 5 : index
    %c0_77 = arith.constant 0 : index
    %c0_78 = arith.constant 0 : index
    %103 = vector.load %arg8[%c5_76, %c0_77, %c0_78] : memref<64x32x128xbf16, #tpu.memory_space<vmem>>, vector<1x32x128xbf16>
    %104 = vector.shape_cast %103 : vector<1x32x128xbf16> to vector<32x128xbf16>
    %105 = arith.truncf %102 : vector<1x32xf32> to vector<1x32xbf16>
    %cst_79 = arith.constant dense<0.000000e+00> : vector<1x128xf32>
    %106 = tpu.matmul %105, %104, %cst_79 {dimension_numbers = #tpu.dot_dimension_numbers<[1], [0], [0], [1], [0, 0, 1, 1], [], []>} : vector<1x32xbf16>, vector<32x128xbf16>, vector<1x128xf32> -> vector<1x128xf32>
    %107 = arith.addf %101, %106 : vector<1x128xf32>
    %c6_80 = arith.constant 6 : index
    %c0_81 = arith.constant 0 : index
    %108 = vector.load %arg27[%c6_80, %c0_81] : memref<64x32xf32, #tpu.memory_space<vmem>>, vector<1x32xf32>
    %c6_82 = arith.constant 6 : index
    %c0_83 = arith.constant 0 : index
    %c0_84 = arith.constant 0 : index
    %109 = vector.load %arg8[%c6_82, %c0_83, %c0_84] : memref<64x32x128xbf16, #tpu.memory_space<vmem>>, vector<1x32x128xbf16>
    %110 = vector.shape_cast %109 : vector<1x32x128xbf16> to vector<32x128xbf16>
    %111 = arith.truncf %108 : vector<1x32xf32> to vector<1x32xbf16>
    %cst_85 = arith.constant dense<0.000000e+00> : vector<1x128xf32>
    %112 = tpu.matmul %111, %110, %cst_85 {dimension_numbers = #tpu.dot_dimension_numbers<[1], [0], [0], [1], [0, 0, 1, 1], [], []>} : vector<1x32xbf16>, vector<32x128xbf16>, vector<1x128xf32> -> vector<1x128xf32>
    %113 = arith.addf %107, %112 : vector<1x128xf32>
    %c7_86 = arith.constant 7 : index
    %c0_87 = arith.constant 0 : index
    %114 = vector.load %arg27[%c7_86, %c0_87] : memref<64x32xf32, #tpu.memory_space<vmem>>, vector<1x32xf32>
    %c7_88 = arith.constant 7 : index
    %c0_89 = arith.constant 0 : index
    %c0_90 = arith.constant 0 : index
    %115 = vector.load %arg8[%c7_88, %c0_89, %c0_90] : memref<64x32x128xbf16, #tpu.memory_space<vmem>>, vector<1x32x128xbf16>
    %116 = vector.shape_cast %115 : vector<1x32x128xbf16> to vector<32x128xbf16>
    %117 = arith.truncf %114 : vector<1x32xf32> to vector<1x32xbf16>
    %cst_91 = arith.constant dense<0.000000e+00> : vector<1x128xf32>
    %118 = tpu.matmul %117, %116, %cst_91 {dimension_numbers = #tpu.dot_dimension_numbers<[1], [0], [0], [1], [0, 0, 1, 1], [], []>} : vector<1x32xbf16>, vector<32x128xbf16>, vector<1x128xf32> -> vector<1x128xf32>
    %119 = arith.addf %113, %118 : vector<1x128xf32>
    %c8_92 = arith.constant 8 : index
    %c0_93 = arith.constant 0 : index
    %120 = vector.load %arg27[%c8_92, %c0_93] : memref<64x32xf32, #tpu.memory_space<vmem>>, vector<1x32xf32>
    %c8_94 = arith.constant 8 : index
    %c0_95 = arith.constant 0 : index
    %c0_96 = arith.constant 0 : index
    %121 = vector.load %arg8[%c8_94, %c0_95, %c0_96] : memref<64x32x128xbf16, #tpu.memory_space<vmem>>, vector<1x32x128xbf16>
    %122 = vector.shape_cast %121 : vector<1x32x128xbf16> to vector<32x128xbf16>
    %123 = arith.truncf %120 : vector<1x32xf32> to vector<1x32xbf16>
    %cst_97 = arith.constant dense<0.000000e+00> : vector<1x128xf32>
    %124 = tpu.matmul %123, %122, %cst_97 {dimension_numbers = #tpu.dot_dimension_numbers<[1], [0], [0], [1], [0, 0, 1, 1], [], []>} : vector<1x32xbf16>, vector<32x128xbf16>, vector<1x128xf32> -> vector<1x128xf32>
    %125 = arith.addf %119, %124 : vector<1x128xf32>
    %c9 = arith.constant 9 : index
    %c0_98 = arith.constant 0 : index
    %126 = vector.load %arg27[%c9, %c0_98] : memref<64x32xf32, #tpu.memory_space<vmem>>, vector<1x32xf32>
    %c9_99 = arith.constant 9 : index
    %c0_100 = arith.constant 0 : index
    %c0_101 = arith.constant 0 : index
    %127 = vector.load %arg8[%c9_99, %c0_100, %c0_101] : memref<64x32x128xbf16, #tpu.memory_space<vmem>>, vector<1x32x128xbf16>
    %128 = vector.shape_cast %127 : vector<1x32x128xbf16> to vector<32x128xbf16>
    %129 = arith.truncf %126 : vector<1x32xf32> to vector<1x32xbf16>
    %cst_102 = arith.constant dense<0.000000e+00> : vector<1x128xf32>
    %130 = tpu.matmul %129, %128, %cst_102 {dimension_numbers = #tpu.dot_dimension_numbers<[1], [0], [0], [1], [0, 0, 1, 1], [], []>} : vector<1x32xbf16>, vector<32x128xbf16>, vector<1x128xf32> -> vector<1x128xf32>
    %131 = arith.addf %125, %130 : vector<1x128xf32>
    %c10 = arith.constant 10 : index
    %c0_103 = arith.constant 0 : index
    %132 = vector.load %arg27[%c10, %c0_103] : memref<64x32xf32, #tpu.memory_space<vmem>>, vector<1x32xf32>
    %c10_104 = arith.constant 10 : index
    %c0_105 = arith.constant 0 : index
    %c0_106 = arith.constant 0 : index
    %133 = vector.load %arg8[%c10_104, %c0_105, %c0_106] : memref<64x32x128xbf16, #tpu.memory_space<vmem>>, vector<1x32x128xbf16>
    %134 = vector.shape_cast %133 : vector<1x32x128xbf16> to vector<32x128xbf16>
    %135 = arith.truncf %132 : vector<1x32xf32> to vector<1x32xbf16>
    %cst_107 = arith.constant dense<0.000000e+00> : vector<1x128xf32>
    %136 = tpu.matmul %135, %134, %cst_107 {dimension_numbers = #tpu.dot_dimension_numbers<[1], [0], [0], [1], [0, 0, 1, 1], [], []>} : vector<1x32xbf16>, vector<32x128xbf16>, vector<1x128xf32> -> vector<1x128xf32>
    %137 = arith.addf %131, %136 : vector<1x128xf32>
    %c11 = arith.constant 11 : index
    %c0_108 = arith.constant 0 : index
    %138 = vector.load %arg27[%c11, %c0_108] : memref<64x32xf32, #tpu.memory_space<vmem>>, vector<1x32xf32>
    %c11_109 = arith.constant 11 : index
    %c0_110 = arith.constant 0 : index
    %c0_111 = arith.constant 0 : index
    %139 = vector.load %arg8[%c11_109, %c0_110, %c0_111] : memref<64x32x128xbf16, #tpu.memory_space<vmem>>, vector<1x32x128xbf16>
    %140 = vector.shape_cast %139 : vector<1x32x128xbf16> to vector<32x128xbf16>
    %141 = arith.truncf %138 : vector<1x32xf32> to vector<1x32xbf16>
    %cst_112 = arith.constant dense<0.000000e+00> : vector<1x128xf32>
    %142 = tpu.matmul %141, %140, %cst_112 {dimension_numbers = #tpu.dot_dimension_numbers<[1], [0], [0], [1], [0, 0, 1, 1], [], []>} : vector<1x32xbf16>, vector<32x128xbf16>, vector<1x128xf32> -> vector<1x128xf32>
    %143 = arith.addf %137, %142 : vector<1x128xf32>
    %c12 = arith.constant 12 : index
    %c0_113 = arith.constant 0 : index
    %144 = vector.load %arg27[%c12, %c0_113] : memref<64x32xf32, #tpu.memory_space<vmem>>, vector<1x32xf32>
    %c12_114 = arith.constant 12 : index
    %c0_115 = arith.constant 0 : index
    %c0_116 = arith.constant 0 : index
    %145 = vector.load %arg8[%c12_114, %c0_115, %c0_116] : memref<64x32x128xbf16, #tpu.memory_space<vmem>>, vector<1x32x128xbf16>
    %146 = vector.shape_cast %145 : vector<1x32x128xbf16> to vector<32x128xbf16>
    %147 = arith.truncf %144 : vector<1x32xf32> to vector<1x32xbf16>
    %cst_117 = arith.constant dense<0.000000e+00> : vector<1x128xf32>
    %148 = tpu.matmul %147, %146, %cst_117 {dimension_numbers = #tpu.dot_dimension_numbers<[1], [0], [0], [1], [0, 0, 1, 1], [], []>} : vector<1x32xbf16>, vector<32x128xbf16>, vector<1x128xf32> -> vector<1x128xf32>
    %149 = arith.addf %143, %148 : vector<1x128xf32>
    %c13 = arith.constant 13 : index
    %c0_118 = arith.constant 0 : index
    %150 = vector.load %arg27[%c13, %c0_118] : memref<64x32xf32, #tpu.memory_space<vmem>>, vector<1x32xf32>
    %c13_119 = arith.constant 13 : index
    %c0_120 = arith.constant 0 : index
    %c0_121 = arith.constant 0 : index
    %151 = vector.load %arg8[%c13_119, %c0_120, %c0_121] : memref<64x32x128xbf16, #tpu.memory_space<vmem>>, vector<1x32x128xbf16>
    %152 = vector.shape_cast %151 : vector<1x32x128xbf16> to vector<32x128xbf16>
    %153 = arith.truncf %150 : vector<1x32xf32> to vector<1x32xbf16>
    %cst_122 = arith.constant dense<0.000000e+00> : vector<1x128xf32>
    %154 = tpu.matmul %153, %152, %cst_122 {dimension_numbers = #tpu.dot_dimension_numbers<[1], [0], [0], [1], [0, 0, 1, 1], [], []>} : vector<1x32xbf16>, vector<32x128xbf16>, vector<1x128xf32> -> vector<1x128xf32>
    %155 = arith.addf %149, %154 : vector<1x128xf32>
    %c14 = arith.constant 14 : index
    %c0_123 = arith.constant 0 : index
    %156 = vector.load %arg27[%c14, %c0_123] : memref<64x32xf32, #tpu.memory_space<vmem>>, vector<1x32xf32>
    %c14_124 = arith.constant 14 : index
    %c0_125 = arith.constant 0 : index
    %c0_126 = arith.constant 0 : index
    %157 = vector.load %arg8[%c14_124, %c0_125, %c0_126] : memref<64x32x128xbf16, #tpu.memory_space<vmem>>, vector<1x32x128xbf16>
    %158 = vector.shape_cast %157 : vector<1x32x128xbf16> to vector<32x128xbf16>
    %159 = arith.truncf %156 : vector<1x32xf32> to vector<1x32xbf16>
    %cst_127 = arith.constant dense<0.000000e+00> : vector<1x128xf32>
    %160 = tpu.matmul %159, %158, %cst_127 {dimension_numbers = #tpu.dot_dimension_numbers<[1], [0], [0], [1], [0, 0, 1, 1], [], []>} : vector<1x32xbf16>, vector<32x128xbf16>, vector<1x128xf32> -> vector<1x128xf32>
    %161 = arith.addf %155, %160 : vector<1x128xf32>
    %c15 = arith.constant 15 : index
    %c0_128 = arith.constant 0 : index
    %162 = vector.load %arg27[%c15, %c0_128] : memref<64x32xf32, #tpu.memory_space<vmem>>, vector<1x32xf32>
    %c15_129 = arith.constant 15 : index
    %c0_130 = arith.constant 0 : index
    %c0_131 = arith.constant 0 : index
    %163 = vector.load %arg8[%c15_129, %c0_130, %c0_131] : memref<64x32x128xbf16, #tpu.memory_space<vmem>>, vector<1x32x128xbf16>
    %164 = vector.shape_cast %163 : vector<1x32x128xbf16> to vector<32x128xbf16>
    %165 = arith.truncf %162 : vector<1x32xf32> to vector<1x32xbf16>
    %cst_132 = arith.constant dense<0.000000e+00> : vector<1x128xf32>
    %166 = tpu.matmul %165, %164, %cst_132 {dimension_numbers = #tpu.dot_dimension_numbers<[1], [0], [0], [1], [0, 0, 1, 1], [], []>} : vector<1x32xbf16>, vector<32x128xbf16>, vector<1x128xf32> -> vector<1x128xf32>
    %167 = arith.addf %161, %166 : vector<1x128xf32>
    %c16 = arith.constant 16 : index
    %c0_133 = arith.constant 0 : index
    %168 = vector.load %arg27[%c16, %c0_133] : memref<64x32xf32, #tpu.memory_space<vmem>>, vector<1x32xf32>
    %c16_134 = arith.constant 16 : index
    %c0_135 = arith.constant 0 : index
    %c0_136 = arith.constant 0 : index
    %169 = vector.load %arg8[%c16_134, %c0_135, %c0_136] : memref<64x32x128xbf16, #tpu.memory_space<vmem>>, vector<1x32x128xbf16>
    %170 = vector.shape_cast %169 : vector<1x32x128xbf16> to vector<32x128xbf16>
    %171 = arith.truncf %168 : vector<1x32xf32> to vector<1x32xbf16>
    %cst_137 = arith.constant dense<0.000000e+00> : vector<1x128xf32>
    %172 = tpu.matmul %171, %170, %cst_137 {dimension_numbers = #tpu.dot_dimension_numbers<[1], [0], [0], [1], [0, 0, 1, 1], [], []>} : vector<1x32xbf16>, vector<32x128xbf16>, vector<1x128xf32> -> vector<1x128xf32>
    %173 = arith.addf %167, %172 : vector<1x128xf32>
    %c17 = arith.constant 17 : index
    %c0_138 = arith.constant 0 : index
    %174 = vector.load %arg27[%c17, %c0_138] : memref<64x32xf32, #tpu.memory_space<vmem>>, vector<1x32xf32>
    %c17_139 = arith.constant 17 : index
    %c0_140 = arith.constant 0 : index
    %c0_141 = arith.constant 0 : index
    %175 = vector.load %arg8[%c17_139, %c0_140, %c0_141] : memref<64x32x128xbf16, #tpu.memory_space<vmem>>, vector<1x32x128xbf16>
    %176 = vector.shape_cast %175 : vector<1x32x128xbf16> to vector<32x128xbf16>
    %177 = arith.truncf %174 : vector<1x32xf32> to vector<1x32xbf16>
    %cst_142 = arith.constant dense<0.000000e+00> : vector<1x128xf32>
    %178 = tpu.matmul %177, %176, %cst_142 {dimension_numbers = #tpu.dot_dimension_numbers<[1], [0], [0], [1], [0, 0, 1, 1], [], []>} : vector<1x32xbf16>, vector<32x128xbf16>, vector<1x128xf32> -> vector<1x128xf32>
    %179 = arith.addf %173, %178 : vector<1x128xf32>
    %c18 = arith.constant 18 : index
    %c0_143 = arith.constant 0 : index
    %180 = vector.load %arg27[%c18, %c0_143] : memref<64x32xf32, #tpu.memory_space<vmem>>, vector<1x32xf32>
    %c18_144 = arith.constant 18 : index
    %c0_145 = arith.constant 0 : index
    %c0_146 = arith.constant 0 : index
    %181 = vector.load %arg8[%c18_144, %c0_145, %c0_146] : memref<64x32x128xbf16, #tpu.memory_space<vmem>>, vector<1x32x128xbf16>
    %182 = vector.shape_cast %181 : vector<1x32x128xbf16> to vector<32x128xbf16>
    %183 = arith.truncf %180 : vector<1x32xf32> to vector<1x32xbf16>
    %cst_147 = arith.constant dense<0.000000e+00> : vector<1x128xf32>
    %184 = tpu.matmul %183, %182, %cst_147 {dimension_numbers = #tpu.dot_dimension_numbers<[1], [0], [0], [1], [0, 0, 1, 1], [], []>} : vector<1x32xbf16>, vector<32x128xbf16>, vector<1x128xf32> -> vector<1x128xf32>
    %185 = arith.addf %179, %184 : vector<1x128xf32>
    %c19 = arith.constant 19 : index
    %c0_148 = arith.constant 0 : index
    %186 = vector.load %arg27[%c19, %c0_148] : memref<64x32xf32, #tpu.memory_space<vmem>>, vector<1x32xf32>
    %c19_149 = arith.constant 19 : index
    %c0_150 = arith.constant 0 : index
    %c0_151 = arith.constant 0 : index
    %187 = vector.load %arg8[%c19_149, %c0_150, %c0_151] : memref<64x32x128xbf16, #tpu.memory_space<vmem>>, vector<1x32x128xbf16>
    %188 = vector.shape_cast %187 : vector<1x32x128xbf16> to vector<32x128xbf16>
    %189 = arith.truncf %186 : vector<1x32xf32> to vector<1x32xbf16>
    %cst_152 = arith.constant dense<0.000000e+00> : vector<1x128xf32>
    %190 = tpu.matmul %189, %188, %cst_152 {dimension_numbers = #tpu.dot_dimension_numbers<[1], [0], [0], [1], [0, 0, 1, 1], [], []>} : vector<1x32xbf16>, vector<32x128xbf16>, vector<1x128xf32> -> vector<1x128xf32>
    %191 = arith.addf %185, %190 : vector<1x128xf32>
    %c20 = arith.constant 20 : index
    %c0_153 = arith.constant 0 : index
    %192 = vector.load %arg27[%c20, %c0_153] : memref<64x32xf32, #tpu.memory_space<vmem>>, vector<1x32xf32>
    %c20_154 = arith.constant 20 : index
    %c0_155 = arith.constant 0 : index
    %c0_156 = arith.constant 0 : index
    %193 = vector.load %arg8[%c20_154, %c0_155, %c0_156] : memref<64x32x128xbf16, #tpu.memory_space<vmem>>, vector<1x32x128xbf16>
    %194 = vector.shape_cast %193 : vector<1x32x128xbf16> to vector<32x128xbf16>
    %195 = arith.truncf %192 : vector<1x32xf32> to vector<1x32xbf16>
    %cst_157 = arith.constant dense<0.000000e+00> : vector<1x128xf32>
    %196 = tpu.matmul %195, %194, %cst_157 {dimension_numbers = #tpu.dot_dimension_numbers<[1], [0], [0], [1], [0, 0, 1, 1], [], []>} : vector<1x32xbf16>, vector<32x128xbf16>, vector<1x128xf32> -> vector<1x128xf32>
    %197 = arith.addf %191, %196 : vector<1x128xf32>
    %c21 = arith.constant 21 : index
    %c0_158 = arith.constant 0 : index
    %198 = vector.load %arg27[%c21, %c0_158] : memref<64x32xf32, #tpu.memory_space<vmem>>, vector<1x32xf32>
    %c21_159 = arith.constant 21 : index
    %c0_160 = arith.constant 0 : index
    %c0_161 = arith.constant 0 : index
    %199 = vector.load %arg8[%c21_159, %c0_160, %c0_161] : memref<64x32x128xbf16, #tpu.memory_space<vmem>>, vector<1x32x128xbf16>
    %200 = vector.shape_cast %199 : vector<1x32x128xbf16> to vector<32x128xbf16>
    %201 = arith.truncf %198 : vector<1x32xf32> to vector<1x32xbf16>
    %cst_162 = arith.constant dense<0.000000e+00> : vector<1x128xf32>
    %202 = tpu.matmul %201, %200, %cst_162 {dimension_numbers = #tpu.dot_dimension_numbers<[1], [0], [0], [1], [0, 0, 1, 1], [], []>} : vector<1x32xbf16>, vector<32x128xbf16>, vector<1x128xf32> -> vector<1x128xf32>
    %203 = arith.addf %197, %202 : vector<1x128xf32>
    %c22 = arith.constant 22 : index
    %c0_163 = arith.constant 0 : index
    %204 = vector.load %arg27[%c22, %c0_163] : memref<64x32xf32, #tpu.memory_space<vmem>>, vector<1x32xf32>
    %c22_164 = arith.constant 22 : index
    %c0_165 = arith.constant 0 : index
    %c0_166 = arith.constant 0 : index
    %205 = vector.load %arg8[%c22_164, %c0_165, %c0_166] : memref<64x32x128xbf16, #tpu.memory_space<vmem>>, vector<1x32x128xbf16>
    %206 = vector.shape_cast %205 : vector<1x32x128xbf16> to vector<32x128xbf16>
    %207 = arith.truncf %204 : vector<1x32xf32> to vector<1x32xbf16>
    %cst_167 = arith.constant dense<0.000000e+00> : vector<1x128xf32>
    %208 = tpu.matmul %207, %206, %cst_167 {dimension_numbers = #tpu.dot_dimension_numbers<[1], [0], [0], [1], [0, 0, 1, 1], [], []>} : vector<1x32xbf16>, vector<32x128xbf16>, vector<1x128xf32> -> vector<1x128xf32>
    %209 = arith.addf %203, %208 : vector<1x128xf32>
    %c23 = arith.constant 23 : index
    %c0_168 = arith.constant 0 : index
    %210 = vector.load %arg27[%c23, %c0_168] : memref<64x32xf32, #tpu.memory_space<vmem>>, vector<1x32xf32>
    %c23_169 = arith.constant 23 : index
    %c0_170 = arith.constant 0 : index
    %c0_171 = arith.constant 0 : index
    %211 = vector.load %arg8[%c23_169, %c0_170, %c0_171] : memref<64x32x128xbf16, #tpu.memory_space<vmem>>, vector<1x32x128xbf16>
    %212 = vector.shape_cast %211 : vector<1x32x128xbf16> to vector<32x128xbf16>
    %213 = arith.truncf %210 : vector<1x32xf32> to vector<1x32xbf16>
    %cst_172 = arith.constant dense<0.000000e+00> : vector<1x128xf32>
    %214 = tpu.matmul %213, %212, %cst_172 {dimension_numbers = #tpu.dot_dimension_numbers<[1], [0], [0], [1], [0, 0, 1, 1], [], []>} : vector<1x32xbf16>, vector<32x128xbf16>, vector<1x128xf32> -> vector<1x128xf32>
    %215 = arith.addf %209, %214 : vector<1x128xf32>
    %c24 = arith.constant 24 : index
    %c0_173 = arith.constant 0 : index
    %216 = vector.load %arg27[%c24, %c0_173] : memref<64x32xf32, #tpu.memory_space<vmem>>, vector<1x32xf32>
    %c24_174 = arith.constant 24 : index
    %c0_175 = arith.constant 0 : index
    %c0_176 = arith.constant 0 : index
    %217 = vector.load %arg8[%c24_174, %c0_175, %c0_176] : memref<64x32x128xbf16, #tpu.memory_space<vmem>>, vector<1x32x128xbf16>
    %218 = vector.shape_cast %217 : vector<1x32x128xbf16> to vector<32x128xbf16>
    %219 = arith.truncf %216 : vector<1x32xf32> to vector<1x32xbf16>
    %cst_177 = arith.constant dense<0.000000e+00> : vector<1x128xf32>
    %220 = tpu.matmul %219, %218, %cst_177 {dimension_numbers = #tpu.dot_dimension_numbers<[1], [0], [0], [1], [0, 0, 1, 1], [], []>} : vector<1x32xbf16>, vector<32x128xbf16>, vector<1x128xf32> -> vector<1x128xf32>
    %221 = arith.addf %215, %220 : vector<1x128xf32>
    %c25 = arith.constant 25 : index
    %c0_178 = arith.constant 0 : index
    %222 = vector.load %arg27[%c25, %c0_178] : memref<64x32xf32, #tpu.memory_space<vmem>>, vector<1x32xf32>
    %c25_179 = arith.constant 25 : index
    %c0_180 = arith.constant 0 : index
    %c0_181 = arith.constant 0 : index
    %223 = vector.load %arg8[%c25_179, %c0_180, %c0_181] : memref<64x32x128xbf16, #tpu.memory_space<vmem>>, vector<1x32x128xbf16>
    %224 = vector.shape_cast %223 : vector<1x32x128xbf16> to vector<32x128xbf16>
    %225 = arith.truncf %222 : vector<1x32xf32> to vector<1x32xbf16>
    %cst_182 = arith.constant dense<0.000000e+00> : vector<1x128xf32>
    %226 = tpu.matmul %225, %224, %cst_182 {dimension_numbers = #tpu.dot_dimension_numbers<[1], [0], [0], [1], [0, 0, 1, 1], [], []>} : vector<1x32xbf16>, vector<32x128xbf16>, vector<1x128xf32> -> vector<1x128xf32>
    %227 = arith.addf %221, %226 : vector<1x128xf32>
    %c26 = arith.constant 26 : index
    %c0_183 = arith.constant 0 : index
    %228 = vector.load %arg27[%c26, %c0_183] : memref<64x32xf32, #tpu.memory_space<vmem>>, vector<1x32xf32>
    %c26_184 = arith.constant 26 : index
    %c0_185 = arith.constant 0 : index
    %c0_186 = arith.constant 0 : index
    %229 = vector.load %arg8[%c26_184, %c0_185, %c0_186] : memref<64x32x128xbf16, #tpu.memory_space<vmem>>, vector<1x32x128xbf16>
    %230 = vector.shape_cast %229 : vector<1x32x128xbf16> to vector<32x128xbf16>
    %231 = arith.truncf %228 : vector<1x32xf32> to vector<1x32xbf16>
    %cst_187 = arith.constant dense<0.000000e+00> : vector<1x128xf32>
    %232 = tpu.matmul %231, %230, %cst_187 {dimension_numbers = #tpu.dot_dimension_numbers<[1], [0], [0], [1], [0, 0, 1, 1], [], []>} : vector<1x32xbf16>, vector<32x128xbf16>, vector<1x128xf32> -> vector<1x128xf32>
    %233 = arith.addf %227, %232 : vector<1x128xf32>
    %c27 = arith.constant 27 : index
    %c0_188 = arith.constant 0 : index
    %234 = vector.load %arg27[%c27, %c0_188] : memref<64x32xf32, #tpu.memory_space<vmem>>, vector<1x32xf32>
    %c27_189 = arith.constant 27 : index
    %c0_190 = arith.constant 0 : index
    %c0_191 = arith.constant 0 : index
    %235 = vector.load %arg8[%c27_189, %c0_190, %c0_191] : memref<64x32x128xbf16, #tpu.memory_space<vmem>>, vector<1x32x128xbf16>
    %236 = vector.shape_cast %235 : vector<1x32x128xbf16> to vector<32x128xbf16>
    %237 = arith.truncf %234 : vector<1x32xf32> to vector<1x32xbf16>
    %cst_192 = arith.constant dense<0.000000e+00> : vector<1x128xf32>
    %238 = tpu.matmul %237, %236, %cst_192 {dimension_numbers = #tpu.dot_dimension_numbers<[1], [0], [0], [1], [0, 0, 1, 1], [], []>} : vector<1x32xbf16>, vector<32x128xbf16>, vector<1x128xf32> -> vector<1x128xf32>
    %239 = arith.addf %233, %238 : vector<1x128xf32>
    %c28 = arith.constant 28 : index
    %c0_193 = arith.constant 0 : index
    %240 = vector.load %arg27[%c28, %c0_193] : memref<64x32xf32, #tpu.memory_space<vmem>>, vector<1x32xf32>
    %c28_194 = arith.constant 28 : index
    %c0_195 = arith.constant 0 : index
    %c0_196 = arith.constant 0 : index
    %241 = vector.load %arg8[%c28_194, %c0_195, %c0_196] : memref<64x32x128xbf16, #tpu.memory_space<vmem>>, vector<1x32x128xbf16>
    %242 = vector.shape_cast %241 : vector<1x32x128xbf16> to vector<32x128xbf16>
    %243 = arith.truncf %240 : vector<1x32xf32> to vector<1x32xbf16>
    %cst_197 = arith.constant dense<0.000000e+00> : vector<1x128xf32>
    %244 = tpu.matmul %243, %242, %cst_197 {dimension_numbers = #tpu.dot_dimension_numbers<[1], [0], [0], [1], [0, 0, 1, 1], [], []>} : vector<1x32xbf16>, vector<32x128xbf16>, vector<1x128xf32> -> vector<1x128xf32>
    %245 = arith.addf %239, %244 : vector<1x128xf32>
    %c29 = arith.constant 29 : index
    %c0_198 = arith.constant 0 : index
    %246 = vector.load %arg27[%c29, %c0_198] : memref<64x32xf32, #tpu.memory_space<vmem>>, vector<1x32xf32>
    %c29_199 = arith.constant 29 : index
    %c0_200 = arith.constant 0 : index
    %c0_201 = arith.constant 0 : index
    %247 = vector.load %arg8[%c29_199, %c0_200, %c0_201] : memref<64x32x128xbf16, #tpu.memory_space<vmem>>, vector<1x32x128xbf16>
    %248 = vector.shape_cast %247 : vector<1x32x128xbf16> to vector<32x128xbf16>
    %249 = arith.truncf %246 : vector<1x32xf32> to vector<1x32xbf16>
    %cst_202 = arith.constant dense<0.000000e+00> : vector<1x128xf32>
    %250 = tpu.matmul %249, %248, %cst_202 {dimension_numbers = #tpu.dot_dimension_numbers<[1], [0], [0], [1], [0, 0, 1, 1], [], []>} : vector<1x32xbf16>, vector<32x128xbf16>, vector<1x128xf32> -> vector<1x128xf32>
    %251 = arith.addf %245, %250 : vector<1x128xf32>
    %c30 = arith.constant 30 : index
    %c0_203 = arith.constant 0 : index
    %252 = vector.load %arg27[%c30, %c0_203] : memref<64x32xf32, #tpu.memory_space<vmem>>, vector<1x32xf32>
    %c30_204 = arith.constant 30 : index
    %c0_205 = arith.constant 0 : index
    %c0_206 = arith.constant 0 : index
    %253 = vector.load %arg8[%c30_204, %c0_205, %c0_206] : memref<64x32x128xbf16, #tpu.memory_space<vmem>>, vector<1x32x128xbf16>
    %254 = vector.shape_cast %253 : vector<1x32x128xbf16> to vector<32x128xbf16>
    %255 = arith.truncf %252 : vector<1x32xf32> to vector<1x32xbf16>
    %cst_207 = arith.constant dense<0.000000e+00> : vector<1x128xf32>
    %256 = tpu.matmul %255, %254, %cst_207 {dimension_numbers = #tpu.dot_dimension_numbers<[1], [0], [0], [1], [0, 0, 1, 1], [], []>} : vector<1x32xbf16>, vector<32x128xbf16>, vector<1x128xf32> -> vector<1x128xf32>
    %257 = arith.addf %251, %256 : vector<1x128xf32>
    %c31 = arith.constant 31 : index
    %c0_208 = arith.constant 0 : index
    %258 = vector.load %arg27[%c31, %c0_208] : memref<64x32xf32, #tpu.memory_space<vmem>>, vector<1x32xf32>
    %c31_209 = arith.constant 31 : index
    %c0_210 = arith.constant 0 : index
    %c0_211 = arith.constant 0 : index
    %259 = vector.load %arg8[%c31_209, %c0_210, %c0_211] : memref<64x32x128xbf16, #tpu.memory_space<vmem>>, vector<1x32x128xbf16>
    %260 = vector.shape_cast %259 : vector<1x32x128xbf16> to vector<32x128xbf16>
    %261 = arith.truncf %258 : vector<1x32xf32> to vector<1x32xbf16>
    %cst_212 = arith.constant dense<0.000000e+00> : vector<1x128xf32>
    %262 = tpu.matmul %261, %260, %cst_212 {dimension_numbers = #tpu.dot_dimension_numbers<[1], [0], [0], [1], [0, 0, 1, 1], [], []>} : vector<1x32xbf16>, vector<32x128xbf16>, vector<1x128xf32> -> vector<1x128xf32>
    %263 = arith.addf %257, %262 : vector<1x128xf32>
    %c32 = arith.constant 32 : index
    %c0_213 = arith.constant 0 : index
    %264 = vector.load %arg27[%c32, %c0_213] : memref<64x32xf32, #tpu.memory_space<vmem>>, vector<1x32xf32>
    %c32_214 = arith.constant 32 : index
    %c0_215 = arith.constant 0 : index
    %c0_216 = arith.constant 0 : index
    %265 = vector.load %arg8[%c32_214, %c0_215, %c0_216] : memref<64x32x128xbf16, #tpu.memory_space<vmem>>, vector<1x32x128xbf16>
    %266 = vector.shape_cast %265 : vector<1x32x128xbf16> to vector<32x128xbf16>
    %267 = arith.truncf %264 : vector<1x32xf32> to vector<1x32xbf16>
    %cst_217 = arith.constant dense<0.000000e+00> : vector<1x128xf32>
    %268 = tpu.matmul %267, %266, %cst_217 {dimension_numbers = #tpu.dot_dimension_numbers<[1], [0], [0], [1], [0, 0, 1, 1], [], []>} : vector<1x32xbf16>, vector<32x128xbf16>, vector<1x128xf32> -> vector<1x128xf32>
    %269 = arith.addf %263, %268 : vector<1x128xf32>
    %c33 = arith.constant 33 : index
    %c0_218 = arith.constant 0 : index
    %270 = vector.load %arg27[%c33, %c0_218] : memref<64x32xf32, #tpu.memory_space<vmem>>, vector<1x32xf32>
    %c33_219 = arith.constant 33 : index
    %c0_220 = arith.constant 0 : index
    %c0_221 = arith.constant 0 : index
    %271 = vector.load %arg8[%c33_219, %c0_220, %c0_221] : memref<64x32x128xbf16, #tpu.memory_space<vmem>>, vector<1x32x128xbf16>
    %272 = vector.shape_cast %271 : vector<1x32x128xbf16> to vector<32x128xbf16>
    %273 = arith.truncf %270 : vector<1x32xf32> to vector<1x32xbf16>
    %cst_222 = arith.constant dense<0.000000e+00> : vector<1x128xf32>
    %274 = tpu.matmul %273, %272, %cst_222 {dimension_numbers = #tpu.dot_dimension_numbers<[1], [0], [0], [1], [0, 0, 1, 1], [], []>} : vector<1x32xbf16>, vector<32x128xbf16>, vector<1x128xf32> -> vector<1x128xf32>
    %275 = arith.addf %269, %274 : vector<1x128xf32>
    %c34 = arith.constant 34 : index
    %c0_223 = arith.constant 0 : index
    %276 = vector.load %arg27[%c34, %c0_223] : memref<64x32xf32, #tpu.memory_space<vmem>>, vector<1x32xf32>
    %c34_224 = arith.constant 34 : index
    %c0_225 = arith.constant 0 : index
    %c0_226 = arith.constant 0 : index
    %277 = vector.load %arg8[%c34_224, %c0_225, %c0_226] : memref<64x32x128xbf16, #tpu.memory_space<vmem>>, vector<1x32x128xbf16>
    %278 = vector.shape_cast %277 : vector<1x32x128xbf16> to vector<32x128xbf16>
    %279 = arith.truncf %276 : vector<1x32xf32> to vector<1x32xbf16>
    %cst_227 = arith.constant dense<0.000000e+00> : vector<1x128xf32>
    %280 = tpu.matmul %279, %278, %cst_227 {dimension_numbers = #tpu.dot_dimension_numbers<[1], [0], [0], [1], [0, 0, 1, 1], [], []>} : vector<1x32xbf16>, vector<32x128xbf16>, vector<1x128xf32> -> vector<1x128xf32>
    %281 = arith.addf %275, %280 : vector<1x128xf32>
    %c35 = arith.constant 35 : index
    %c0_228 = arith.constant 0 : index
    %282 = vector.load %arg27[%c35, %c0_228] : memref<64x32xf32, #tpu.memory_space<vmem>>, vector<1x32xf32>
    %c35_229 = arith.constant 35 : index
    %c0_230 = arith.constant 0 : index
    %c0_231 = arith.constant 0 : index
    %283 = vector.load %arg8[%c35_229, %c0_230, %c0_231] : memref<64x32x128xbf16, #tpu.memory_space<vmem>>, vector<1x32x128xbf16>
    %284 = vector.shape_cast %283 : vector<1x32x128xbf16> to vector<32x128xbf16>
    %285 = arith.truncf %282 : vector<1x32xf32> to vector<1x32xbf16>
    %cst_232 = arith.constant dense<0.000000e+00> : vector<1x128xf32>
    %286 = tpu.matmul %285, %284, %cst_232 {dimension_numbers = #tpu.dot_dimension_numbers<[1], [0], [0], [1], [0, 0, 1, 1], [], []>} : vector<1x32xbf16>, vector<32x128xbf16>, vector<1x128xf32> -> vector<1x128xf32>
    %287 = arith.addf %281, %286 : vector<1x128xf32>
    %c36 = arith.constant 36 : index
    %c0_233 = arith.constant 0 : index
    %288 = vector.load %arg27[%c36, %c0_233] : memref<64x32xf32, #tpu.memory_space<vmem>>, vector<1x32xf32>
    %c36_234 = arith.constant 36 : index
    %c0_235 = arith.constant 0 : index
    %c0_236 = arith.constant 0 : index
    %289 = vector.load %arg8[%c36_234, %c0_235, %c0_236] : memref<64x32x128xbf16, #tpu.memory_space<vmem>>, vector<1x32x128xbf16>
    %290 = vector.shape_cast %289 : vector<1x32x128xbf16> to vector<32x128xbf16>
    %291 = arith.truncf %288 : vector<1x32xf32> to vector<1x32xbf16>
    %cst_237 = arith.constant dense<0.000000e+00> : vector<1x128xf32>
    %292 = tpu.matmul %291, %290, %cst_237 {dimension_numbers = #tpu.dot_dimension_numbers<[1], [0], [0], [1], [0, 0, 1, 1], [], []>} : vector<1x32xbf16>, vector<32x128xbf16>, vector<1x128xf32> -> vector<1x128xf32>
    %293 = arith.addf %287, %292 : vector<1x128xf32>
    %c37 = arith.constant 37 : index
    %c0_238 = arith.constant 0 : index
    %294 = vector.load %arg27[%c37, %c0_238] : memref<64x32xf32, #tpu.memory_space<vmem>>, vector<1x32xf32>
    %c37_239 = arith.constant 37 : index
    %c0_240 = arith.constant 0 : index
    %c0_241 = arith.constant 0 : index
    %295 = vector.load %arg8[%c37_239, %c0_240, %c0_241] : memref<64x32x128xbf16, #tpu.memory_space<vmem>>, vector<1x32x128xbf16>
    %296 = vector.shape_cast %295 : vector<1x32x128xbf16> to vector<32x128xbf16>
    %297 = arith.truncf %294 : vector<1x32xf32> to vector<1x32xbf16>
    %cst_242 = arith.constant dense<0.000000e+00> : vector<1x128xf32>
    %298 = tpu.matmul %297, %296, %cst_242 {dimension_numbers = #tpu.dot_dimension_numbers<[1], [0], [0], [1], [0, 0, 1, 1], [], []>} : vector<1x32xbf16>, vector<32x128xbf16>, vector<1x128xf32> -> vector<1x128xf32>
    %299 = arith.addf %293, %298 : vector<1x128xf32>
    %c38 = arith.constant 38 : index
    %c0_243 = arith.constant 0 : index
    %300 = vector.load %arg27[%c38, %c0_243] : memref<64x32xf32, #tpu.memory_space<vmem>>, vector<1x32xf32>
    %c38_244 = arith.constant 38 : index
    %c0_245 = arith.constant 0 : index
    %c0_246 = arith.constant 0 : index
    %301 = vector.load %arg8[%c38_244, %c0_245, %c0_246] : memref<64x32x128xbf16, #tpu.memory_space<vmem>>, vector<1x32x128xbf16>
    %302 = vector.shape_cast %301 : vector<1x32x128xbf16> to vector<32x128xbf16>
    %303 = arith.truncf %300 : vector<1x32xf32> to vector<1x32xbf16>
    %cst_247 = arith.constant dense<0.000000e+00> : vector<1x128xf32>
    %304 = tpu.matmul %303, %302, %cst_247 {dimension_numbers = #tpu.dot_dimension_numbers<[1], [0], [0], [1], [0, 0, 1, 1], [], []>} : vector<1x32xbf16>, vector<32x128xbf16>, vector<1x128xf32> -> vector<1x128xf32>
    %305 = arith.addf %299, %304 : vector<1x128xf32>
    %c39 = arith.constant 39 : index
    %c0_248 = arith.constant 0 : index
    %306 = vector.load %arg27[%c39, %c0_248] : memref<64x32xf32, #tpu.memory_space<vmem>>, vector<1x32xf32>
    %c39_249 = arith.constant 39 : index
    %c0_250 = arith.constant 0 : index
    %c0_251 = arith.constant 0 : index
    %307 = vector.load %arg8[%c39_249, %c0_250, %c0_251] : memref<64x32x128xbf16, #tpu.memory_space<vmem>>, vector<1x32x128xbf16>
    %308 = vector.shape_cast %307 : vector<1x32x128xbf16> to vector<32x128xbf16>
    %309 = arith.truncf %306 : vector<1x32xf32> to vector<1x32xbf16>
    %cst_252 = arith.constant dense<0.000000e+00> : vector<1x128xf32>
    %310 = tpu.matmul %309, %308, %cst_252 {dimension_numbers = #tpu.dot_dimension_numbers<[1], [0], [0], [1], [0, 0, 1, 1], [], []>} : vector<1x32xbf16>, vector<32x128xbf16>, vector<1x128xf32> -> vector<1x128xf32>
    %311 = arith.addf %305, %310 : vector<1x128xf32>
    %c40 = arith.constant 40 : index
    %c0_253 = arith.constant 0 : index
    %312 = vector.load %arg27[%c40, %c0_253] : memref<64x32xf32, #tpu.memory_space<vmem>>, vector<1x32xf32>
    %c40_254 = arith.constant 40 : index
    %c0_255 = arith.constant 0 : index
    %c0_256 = arith.constant 0 : index
    %313 = vector.load %arg8[%c40_254, %c0_255, %c0_256] : memref<64x32x128xbf16, #tpu.memory_space<vmem>>, vector<1x32x128xbf16>
    %314 = vector.shape_cast %313 : vector<1x32x128xbf16> to vector<32x128xbf16>
    %315 = arith.truncf %312 : vector<1x32xf32> to vector<1x32xbf16>
    %cst_257 = arith.constant dense<0.000000e+00> : vector<1x128xf32>
    %316 = tpu.matmul %315, %314, %cst_257 {dimension_numbers = #tpu.dot_dimension_numbers<[1], [0], [0], [1], [0, 0, 1, 1], [], []>} : vector<1x32xbf16>, vector<32x128xbf16>, vector<1x128xf32> -> vector<1x128xf32>
    %317 = arith.addf %311, %316 : vector<1x128xf32>
    %c41 = arith.constant 41 : index
    %c0_258 = arith.constant 0 : index
    %318 = vector.load %arg27[%c41, %c0_258] : memref<64x32xf32, #tpu.memory_space<vmem>>, vector<1x32xf32>
    %c41_259 = arith.constant 41 : index
    %c0_260 = arith.constant 0 : index
    %c0_261 = arith.constant 0 : index
    %319 = vector.load %arg8[%c41_259, %c0_260, %c0_261] : memref<64x32x128xbf16, #tpu.memory_space<vmem>>, vector<1x32x128xbf16>
    %320 = vector.shape_cast %319 : vector<1x32x128xbf16> to vector<32x128xbf16>
    %321 = arith.truncf %318 : vector<1x32xf32> to vector<1x32xbf16>
    %cst_262 = arith.constant dense<0.000000e+00> : vector<1x128xf32>
    %322 = tpu.matmul %321, %320, %cst_262 {dimension_numbers = #tpu.dot_dimension_numbers<[1], [0], [0], [1], [0, 0, 1, 1], [], []>} : vector<1x32xbf16>, vector<32x128xbf16>, vector<1x128xf32> -> vector<1x128xf32>
    %323 = arith.addf %317, %322 : vector<1x128xf32>
    %c42 = arith.constant 42 : index
    %c0_263 = arith.constant 0 : index
    %324 = vector.load %arg27[%c42, %c0_263] : memref<64x32xf32, #tpu.memory_space<vmem>>, vector<1x32xf32>
    %c42_264 = arith.constant 42 : index
    %c0_265 = arith.constant 0 : index
    %c0_266 = arith.constant 0 : index
    %325 = vector.load %arg8[%c42_264, %c0_265, %c0_266] : memref<64x32x128xbf16, #tpu.memory_space<vmem>>, vector<1x32x128xbf16>
    %326 = vector.shape_cast %325 : vector<1x32x128xbf16> to vector<32x128xbf16>
    %327 = arith.truncf %324 : vector<1x32xf32> to vector<1x32xbf16>
    %cst_267 = arith.constant dense<0.000000e+00> : vector<1x128xf32>
    %328 = tpu.matmul %327, %326, %cst_267 {dimension_numbers = #tpu.dot_dimension_numbers<[1], [0], [0], [1], [0, 0, 1, 1], [], []>} : vector<1x32xbf16>, vector<32x128xbf16>, vector<1x128xf32> -> vector<1x128xf32>
    %329 = arith.addf %323, %328 : vector<1x128xf32>
    %c43 = arith.constant 43 : index
    %c0_268 = arith.constant 0 : index
    %330 = vector.load %arg27[%c43, %c0_268] : memref<64x32xf32, #tpu.memory_space<vmem>>, vector<1x32xf32>
    %c43_269 = arith.constant 43 : index
    %c0_270 = arith.constant 0 : index
    %c0_271 = arith.constant 0 : index
    %331 = vector.load %arg8[%c43_269, %c0_270, %c0_271] : memref<64x32x128xbf16, #tpu.memory_space<vmem>>, vector<1x32x128xbf16>
    %332 = vector.shape_cast %331 : vector<1x32x128xbf16> to vector<32x128xbf16>
    %333 = arith.truncf %330 : vector<1x32xf32> to vector<1x32xbf16>
    %cst_272 = arith.constant dense<0.000000e+00> : vector<1x128xf32>
    %334 = tpu.matmul %333, %332, %cst_272 {dimension_numbers = #tpu.dot_dimension_numbers<[1], [0], [0], [1], [0, 0, 1, 1], [], []>} : vector<1x32xbf16>, vector<32x128xbf16>, vector<1x128xf32> -> vector<1x128xf32>
    %335 = arith.addf %329, %334 : vector<1x128xf32>
    %c44 = arith.constant 44 : index
    %c0_273 = arith.constant 0 : index
    %336 = vector.load %arg27[%c44, %c0_273] : memref<64x32xf32, #tpu.memory_space<vmem>>, vector<1x32xf32>
    %c44_274 = arith.constant 44 : index
    %c0_275 = arith.constant 0 : index
    %c0_276 = arith.constant 0 : index
    %337 = vector.load %arg8[%c44_274, %c0_275, %c0_276] : memref<64x32x128xbf16, #tpu.memory_space<vmem>>, vector<1x32x128xbf16>
    %338 = vector.shape_cast %337 : vector<1x32x128xbf16> to vector<32x128xbf16>
    %339 = arith.truncf %336 : vector<1x32xf32> to vector<1x32xbf16>
    %cst_277 = arith.constant dense<0.000000e+00> : vector<1x128xf32>
    %340 = tpu.matmul %339, %338, %cst_277 {dimension_numbers = #tpu.dot_dimension_numbers<[1], [0], [0], [1], [0, 0, 1, 1], [], []>} : vector<1x32xbf16>, vector<32x128xbf16>, vector<1x128xf32> -> vector<1x128xf32>
    %341 = arith.addf %335, %340 : vector<1x128xf32>
    %c45 = arith.constant 45 : index
    %c0_278 = arith.constant 0 : index
    %342 = vector.load %arg27[%c45, %c0_278] : memref<64x32xf32, #tpu.memory_space<vmem>>, vector<1x32xf32>
    %c45_279 = arith.constant 45 : index
    %c0_280 = arith.constant 0 : index
    %c0_281 = arith.constant 0 : index
    %343 = vector.load %arg8[%c45_279, %c0_280, %c0_281] : memref<64x32x128xbf16, #tpu.memory_space<vmem>>, vector<1x32x128xbf16>
    %344 = vector.shape_cast %343 : vector<1x32x128xbf16> to vector<32x128xbf16>
    %345 = arith.truncf %342 : vector<1x32xf32> to vector<1x32xbf16>
    %cst_282 = arith.constant dense<0.000000e+00> : vector<1x128xf32>
    %346 = tpu.matmul %345, %344, %cst_282 {dimension_numbers = #tpu.dot_dimension_numbers<[1], [0], [0], [1], [0, 0, 1, 1], [], []>} : vector<1x32xbf16>, vector<32x128xbf16>, vector<1x128xf32> -> vector<1x128xf32>
    %347 = arith.addf %341, %346 : vector<1x128xf32>
    %c46 = arith.constant 46 : index
    %c0_283 = arith.constant 0 : index
    %348 = vector.load %arg27[%c46, %c0_283] : memref<64x32xf32, #tpu.memory_space<vmem>>, vector<1x32xf32>
    %c46_284 = arith.constant 46 : index
    %c0_285 = arith.constant 0 : index
    %c0_286 = arith.constant 0 : index
    %349 = vector.load %arg8[%c46_284, %c0_285, %c0_286] : memref<64x32x128xbf16, #tpu.memory_space<vmem>>, vector<1x32x128xbf16>
    %350 = vector.shape_cast %349 : vector<1x32x128xbf16> to vector<32x128xbf16>
    %351 = arith.truncf %348 : vector<1x32xf32> to vector<1x32xbf16>
    %cst_287 = arith.constant dense<0.000000e+00> : vector<1x128xf32>
    %352 = tpu.matmul %351, %350, %cst_287 {dimension_numbers = #tpu.dot_dimension_numbers<[1], [0], [0], [1], [0, 0, 1, 1], [], []>} : vector<1x32xbf16>, vector<32x128xbf16>, vector<1x128xf32> -> vector<1x128xf32>
    %353 = arith.addf %347, %352 : vector<1x128xf32>
    %c47 = arith.constant 47 : index
    %c0_288 = arith.constant 0 : index
    %354 = vector.load %arg27[%c47, %c0_288] : memref<64x32xf32, #tpu.memory_space<vmem>>, vector<1x32xf32>
    %c47_289 = arith.constant 47 : index
    %c0_290 = arith.constant 0 : index
    %c0_291 = arith.constant 0 : index
    %355 = vector.load %arg8[%c47_289, %c0_290, %c0_291] : memref<64x32x128xbf16, #tpu.memory_space<vmem>>, vector<1x32x128xbf16>
    %356 = vector.shape_cast %355 : vector<1x32x128xbf16> to vector<32x128xbf16>
    %357 = arith.truncf %354 : vector<1x32xf32> to vector<1x32xbf16>
    %cst_292 = arith.constant dense<0.000000e+00> : vector<1x128xf32>
    %358 = tpu.matmul %357, %356, %cst_292 {dimension_numbers = #tpu.dot_dimension_numbers<[1], [0], [0], [1], [0, 0, 1, 1], [], []>} : vector<1x32xbf16>, vector<32x128xbf16>, vector<1x128xf32> -> vector<1x128xf32>
    %359 = arith.addf %353, %358 : vector<1x128xf32>
    %c48 = arith.constant 48 : index
    %c0_293 = arith.constant 0 : index
    %360 = vector.load %arg27[%c48, %c0_293] : memref<64x32xf32, #tpu.memory_space<vmem>>, vector<1x32xf32>
    %c48_294 = arith.constant 48 : index
    %c0_295 = arith.constant 0 : index
    %c0_296 = arith.constant 0 : index
    %361 = vector.load %arg8[%c48_294, %c0_295, %c0_296] : memref<64x32x128xbf16, #tpu.memory_space<vmem>>, vector<1x32x128xbf16>
    %362 = vector.shape_cast %361 : vector<1x32x128xbf16> to vector<32x128xbf16>
    %363 = arith.truncf %360 : vector<1x32xf32> to vector<1x32xbf16>
    %cst_297 = arith.constant dense<0.000000e+00> : vector<1x128xf32>
    %364 = tpu.matmul %363, %362, %cst_297 {dimension_numbers = #tpu.dot_dimension_numbers<[1], [0], [0], [1], [0, 0, 1, 1], [], []>} : vector<1x32xbf16>, vector<32x128xbf16>, vector<1x128xf32> -> vector<1x128xf32>
    %365 = arith.addf %359, %364 : vector<1x128xf32>
    %c49 = arith.constant 49 : index
    %c0_298 = arith.constant 0 : index
    %366 = vector.load %arg27[%c49, %c0_298] : memref<64x32xf32, #tpu.memory_space<vmem>>, vector<1x32xf32>
    %c49_299 = arith.constant 49 : index
    %c0_300 = arith.constant 0 : index
    %c0_301 = arith.constant 0 : index
    %367 = vector.load %arg8[%c49_299, %c0_300, %c0_301] : memref<64x32x128xbf16, #tpu.memory_space<vmem>>, vector<1x32x128xbf16>
    %368 = vector.shape_cast %367 : vector<1x32x128xbf16> to vector<32x128xbf16>
    %369 = arith.truncf %366 : vector<1x32xf32> to vector<1x32xbf16>
    %cst_302 = arith.constant dense<0.000000e+00> : vector<1x128xf32>
    %370 = tpu.matmul %369, %368, %cst_302 {dimension_numbers = #tpu.dot_dimension_numbers<[1], [0], [0], [1], [0, 0, 1, 1], [], []>} : vector<1x32xbf16>, vector<32x128xbf16>, vector<1x128xf32> -> vector<1x128xf32>
    %371 = arith.addf %365, %370 : vector<1x128xf32>
    %c50 = arith.constant 50 : index
    %c0_303 = arith.constant 0 : index
    %372 = vector.load %arg27[%c50, %c0_303] : memref<64x32xf32, #tpu.memory_space<vmem>>, vector<1x32xf32>
    %c50_304 = arith.constant 50 : index
    %c0_305 = arith.constant 0 : index
    %c0_306 = arith.constant 0 : index
    %373 = vector.load %arg8[%c50_304, %c0_305, %c0_306] : memref<64x32x128xbf16, #tpu.memory_space<vmem>>, vector<1x32x128xbf16>
    %374 = vector.shape_cast %373 : vector<1x32x128xbf16> to vector<32x128xbf16>
    %375 = arith.truncf %372 : vector<1x32xf32> to vector<1x32xbf16>
    %cst_307 = arith.constant dense<0.000000e+00> : vector<1x128xf32>
    %376 = tpu.matmul %375, %374, %cst_307 {dimension_numbers = #tpu.dot_dimension_numbers<[1], [0], [0], [1], [0, 0, 1, 1], [], []>} : vector<1x32xbf16>, vector<32x128xbf16>, vector<1x128xf32> -> vector<1x128xf32>
    %377 = arith.addf %371, %376 : vector<1x128xf32>
    %c51 = arith.constant 51 : index
    %c0_308 = arith.constant 0 : index
    %378 = vector.load %arg27[%c51, %c0_308] : memref<64x32xf32, #tpu.memory_space<vmem>>, vector<1x32xf32>
    %c51_309 = arith.constant 51 : index
    %c0_310 = arith.constant 0 : index
    %c0_311 = arith.constant 0 : index
    %379 = vector.load %arg8[%c51_309, %c0_310, %c0_311] : memref<64x32x128xbf16, #tpu.memory_space<vmem>>, vector<1x32x128xbf16>
    %380 = vector.shape_cast %379 : vector<1x32x128xbf16> to vector<32x128xbf16>
    %381 = arith.truncf %378 : vector<1x32xf32> to vector<1x32xbf16>
    %cst_312 = arith.constant dense<0.000000e+00> : vector<1x128xf32>
    %382 = tpu.matmul %381, %380, %cst_312 {dimension_numbers = #tpu.dot_dimension_numbers<[1], [0], [0], [1], [0, 0, 1, 1], [], []>} : vector<1x32xbf16>, vector<32x128xbf16>, vector<1x128xf32> -> vector<1x128xf32>
    %383 = arith.addf %377, %382 : vector<1x128xf32>
    %c52 = arith.constant 52 : index
    %c0_313 = arith.constant 0 : index
    %384 = vector.load %arg27[%c52, %c0_313] : memref<64x32xf32, #tpu.memory_space<vmem>>, vector<1x32xf32>
    %c52_314 = arith.constant 52 : index
    %c0_315 = arith.constant 0 : index
    %c0_316 = arith.constant 0 : index
    %385 = vector.load %arg8[%c52_314, %c0_315, %c0_316] : memref<64x32x128xbf16, #tpu.memory_space<vmem>>, vector<1x32x128xbf16>
    %386 = vector.shape_cast %385 : vector<1x32x128xbf16> to vector<32x128xbf16>
    %387 = arith.truncf %384 : vector<1x32xf32> to vector<1x32xbf16>
    %cst_317 = arith.constant dense<0.000000e+00> : vector<1x128xf32>
    %388 = tpu.matmul %387, %386, %cst_317 {dimension_numbers = #tpu.dot_dimension_numbers<[1], [0], [0], [1], [0, 0, 1, 1], [], []>} : vector<1x32xbf16>, vector<32x128xbf16>, vector<1x128xf32> -> vector<1x128xf32>
    %389 = arith.addf %383, %388 : vector<1x128xf32>
    %c53 = arith.constant 53 : index
    %c0_318 = arith.constant 0 : index
    %390 = vector.load %arg27[%c53, %c0_318] : memref<64x32xf32, #tpu.memory_space<vmem>>, vector<1x32xf32>
    %c53_319 = arith.constant 53 : index
    %c0_320 = arith.constant 0 : index
    %c0_321 = arith.constant 0 : index
    %391 = vector.load %arg8[%c53_319, %c0_320, %c0_321] : memref<64x32x128xbf16, #tpu.memory_space<vmem>>, vector<1x32x128xbf16>
    %392 = vector.shape_cast %391 : vector<1x32x128xbf16> to vector<32x128xbf16>
    %393 = arith.truncf %390 : vector<1x32xf32> to vector<1x32xbf16>
    %cst_322 = arith.constant dense<0.000000e+00> : vector<1x128xf32>
    %394 = tpu.matmul %393, %392, %cst_322 {dimension_numbers = #tpu.dot_dimension_numbers<[1], [0], [0], [1], [0, 0, 1, 1], [], []>} : vector<1x32xbf16>, vector<32x128xbf16>, vector<1x128xf32> -> vector<1x128xf32>
    %395 = arith.addf %389, %394 : vector<1x128xf32>
    %c54 = arith.constant 54 : index
    %c0_323 = arith.constant 0 : index
    %396 = vector.load %arg27[%c54, %c0_323] : memref<64x32xf32, #tpu.memory_space<vmem>>, vector<1x32xf32>
    %c54_324 = arith.constant 54 : index
    %c0_325 = arith.constant 0 : index
    %c0_326 = arith.constant 0 : index
    %397 = vector.load %arg8[%c54_324, %c0_325, %c0_326] : memref<64x32x128xbf16, #tpu.memory_space<vmem>>, vector<1x32x128xbf16>
    %398 = vector.shape_cast %397 : vector<1x32x128xbf16> to vector<32x128xbf16>
    %399 = arith.truncf %396 : vector<1x32xf32> to vector<1x32xbf16>
    %cst_327 = arith.constant dense<0.000000e+00> : vector<1x128xf32>
    %400 = tpu.matmul %399, %398, %cst_327 {dimension_numbers = #tpu.dot_dimension_numbers<[1], [0], [0], [1], [0, 0, 1, 1], [], []>} : vector<1x32xbf16>, vector<32x128xbf16>, vector<1x128xf32> -> vector<1x128xf32>
    %401 = arith.addf %395, %400 : vector<1x128xf32>
    %c55 = arith.constant 55 : index
    %c0_328 = arith.constant 0 : index
    %402 = vector.load %arg27[%c55, %c0_328] : memref<64x32xf32, #tpu.memory_space<vmem>>, vector<1x32xf32>
    %c55_329 = arith.constant 55 : index
    %c0_330 = arith.constant 0 : index
    %c0_331 = arith.constant 0 : index
    %403 = vector.load %arg8[%c55_329, %c0_330, %c0_331] : memref<64x32x128xbf16, #tpu.memory_space<vmem>>, vector<1x32x128xbf16>
    %404 = vector.shape_cast %403 : vector<1x32x128xbf16> to vector<32x128xbf16>
    %405 = arith.truncf %402 : vector<1x32xf32> to vector<1x32xbf16>
    %cst_332 = arith.constant dense<0.000000e+00> : vector<1x128xf32>
    %406 = tpu.matmul %405, %404, %cst_332 {dimension_numbers = #tpu.dot_dimension_numbers<[1], [0], [0], [1], [0, 0, 1, 1], [], []>} : vector<1x32xbf16>, vector<32x128xbf16>, vector<1x128xf32> -> vector<1x128xf32>
    %407 = arith.addf %401, %406 : vector<1x128xf32>
    %c56 = arith.constant 56 : index
    %c0_333 = arith.constant 0 : index
    %408 = vector.load %arg27[%c56, %c0_333] : memref<64x32xf32, #tpu.memory_space<vmem>>, vector<1x32xf32>
    %c56_334 = arith.constant 56 : index
    %c0_335 = arith.constant 0 : index
    %c0_336 = arith.constant 0 : index
    %409 = vector.load %arg8[%c56_334, %c0_335, %c0_336] : memref<64x32x128xbf16, #tpu.memory_space<vmem>>, vector<1x32x128xbf16>
    %410 = vector.shape_cast %409 : vector<1x32x128xbf16> to vector<32x128xbf16>
    %411 = arith.truncf %408 : vector<1x32xf32> to vector<1x32xbf16>
    %cst_337 = arith.constant dense<0.000000e+00> : vector<1x128xf32>
    %412 = tpu.matmul %411, %410, %cst_337 {dimension_numbers = #tpu.dot_dimension_numbers<[1], [0], [0], [1], [0, 0, 1, 1], [], []>} : vector<1x32xbf16>, vector<32x128xbf16>, vector<1x128xf32> -> vector<1x128xf32>
    %413 = arith.addf %407, %412 : vector<1x128xf32>
    %c57 = arith.constant 57 : index
    %c0_338 = arith.constant 0 : index
    %414 = vector.load %arg27[%c57, %c0_338] : memref<64x32xf32, #tpu.memory_space<vmem>>, vector<1x32xf32>
    %c57_339 = arith.constant 57 : index
    %c0_340 = arith.constant 0 : index
    %c0_341 = arith.constant 0 : index
    %415 = vector.load %arg8[%c57_339, %c0_340, %c0_341] : memref<64x32x128xbf16, #tpu.memory_space<vmem>>, vector<1x32x128xbf16>
    %416 = vector.shape_cast %415 : vector<1x32x128xbf16> to vector<32x128xbf16>
    %417 = arith.truncf %414 : vector<1x32xf32> to vector<1x32xbf16>
    %cst_342 = arith.constant dense<0.000000e+00> : vector<1x128xf32>
    %418 = tpu.matmul %417, %416, %cst_342 {dimension_numbers = #tpu.dot_dimension_numbers<[1], [0], [0], [1], [0, 0, 1, 1], [], []>} : vector<1x32xbf16>, vector<32x128xbf16>, vector<1x128xf32> -> vector<1x128xf32>
    %419 = arith.addf %413, %418 : vector<1x128xf32>
    %c58 = arith.constant 58 : index
    %c0_343 = arith.constant 0 : index
    %420 = vector.load %arg27[%c58, %c0_343] : memref<64x32xf32, #tpu.memory_space<vmem>>, vector<1x32xf32>
    %c58_344 = arith.constant 58 : index
    %c0_345 = arith.constant 0 : index
    %c0_346 = arith.constant 0 : index
    %421 = vector.load %arg8[%c58_344, %c0_345, %c0_346] : memref<64x32x128xbf16, #tpu.memory_space<vmem>>, vector<1x32x128xbf16>
    %422 = vector.shape_cast %421 : vector<1x32x128xbf16> to vector<32x128xbf16>
    %423 = arith.truncf %420 : vector<1x32xf32> to vector<1x32xbf16>
    %cst_347 = arith.constant dense<0.000000e+00> : vector<1x128xf32>
    %424 = tpu.matmul %423, %422, %cst_347 {dimension_numbers = #tpu.dot_dimension_numbers<[1], [0], [0], [1], [0, 0, 1, 1], [], []>} : vector<1x32xbf16>, vector<32x128xbf16>, vector<1x128xf32> -> vector<1x128xf32>
    %425 = arith.addf %419, %424 : vector<1x128xf32>
    %c59 = arith.constant 59 : index
    %c0_348 = arith.constant 0 : index
    %426 = vector.load %arg27[%c59, %c0_348] : memref<64x32xf32, #tpu.memory_space<vmem>>, vector<1x32xf32>
    %c59_349 = arith.constant 59 : index
    %c0_350 = arith.constant 0 : index
    %c0_351 = arith.constant 0 : index
    %427 = vector.load %arg8[%c59_349, %c0_350, %c0_351] : memref<64x32x128xbf16, #tpu.memory_space<vmem>>, vector<1x32x128xbf16>
    %428 = vector.shape_cast %427 : vector<1x32x128xbf16> to vector<32x128xbf16>
    %429 = arith.truncf %426 : vector<1x32xf32> to vector<1x32xbf16>
    %cst_352 = arith.constant dense<0.000000e+00> : vector<1x128xf32>
    %430 = tpu.matmul %429, %428, %cst_352 {dimension_numbers = #tpu.dot_dimension_numbers<[1], [0], [0], [1], [0, 0, 1, 1], [], []>} : vector<1x32xbf16>, vector<32x128xbf16>, vector<1x128xf32> -> vector<1x128xf32>
    %431 = arith.addf %425, %430 : vector<1x128xf32>
    %c60 = arith.constant 60 : index
    %c0_353 = arith.constant 0 : index
    %432 = vector.load %arg27[%c60, %c0_353] : memref<64x32xf32, #tpu.memory_space<vmem>>, vector<1x32xf32>
    %c60_354 = arith.constant 60 : index
    %c0_355 = arith.constant 0 : index
    %c0_356 = arith.constant 0 : index
    %433 = vector.load %arg8[%c60_354, %c0_355, %c0_356] : memref<64x32x128xbf16, #tpu.memory_space<vmem>>, vector<1x32x128xbf16>
    %434 = vector.shape_cast %433 : vector<1x32x128xbf16> to vector<32x128xbf16>
    %435 = arith.truncf %432 : vector<1x32xf32> to vector<1x32xbf16>
    %cst_357 = arith.constant dense<0.000000e+00> : vector<1x128xf32>
    %436 = tpu.matmul %435, %434, %cst_357 {dimension_numbers = #tpu.dot_dimension_numbers<[1], [0], [0], [1], [0, 0, 1, 1], [], []>} : vector<1x32xbf16>, vector<32x128xbf16>, vector<1x128xf32> -> vector<1x128xf32>
    %437 = arith.addf %431, %436 : vector<1x128xf32>
    %c61 = arith.constant 61 : index
    %c0_358 = arith.constant 0 : index
    %438 = vector.load %arg27[%c61, %c0_358] : memref<64x32xf32, #tpu.memory_space<vmem>>, vector<1x32xf32>
    %c61_359 = arith.constant 61 : index
    %c0_360 = arith.constant 0 : index
    %c0_361 = arith.constant 0 : index
    %439 = vector.load %arg8[%c61_359, %c0_360, %c0_361] : memref<64x32x128xbf16, #tpu.memory_space<vmem>>, vector<1x32x128xbf16>
    %440 = vector.shape_cast %439 : vector<1x32x128xbf16> to vector<32x128xbf16>
    %441 = arith.truncf %438 : vector<1x32xf32> to vector<1x32xbf16>
    %cst_362 = arith.constant dense<0.000000e+00> : vector<1x128xf32>
    %442 = tpu.matmul %441, %440, %cst_362 {dimension_numbers = #tpu.dot_dimension_numbers<[1], [0], [0], [1], [0, 0, 1, 1], [], []>} : vector<1x32xbf16>, vector<32x128xbf16>, vector<1x128xf32> -> vector<1x128xf32>
    %443 = arith.addf %437, %442 : vector<1x128xf32>
    %c62 = arith.constant 62 : index
    %c0_363 = arith.constant 0 : index
    %444 = vector.load %arg27[%c62, %c0_363] : memref<64x32xf32, #tpu.memory_space<vmem>>, vector<1x32xf32>
    %c62_364 = arith.constant 62 : index
    %c0_365 = arith.constant 0 : index
    %c0_366 = arith.constant 0 : index
    %445 = vector.load %arg8[%c62_364, %c0_365, %c0_366] : memref<64x32x128xbf16, #tpu.memory_space<vmem>>, vector<1x32x128xbf16>
    %446 = vector.shape_cast %445 : vector<1x32x128xbf16> to vector<32x128xbf16>
    %447 = arith.truncf %444 : vector<1x32xf32> to vector<1x32xbf16>
    %cst_367 = arith.constant dense<0.000000e+00> : vector<1x128xf32>
    %448 = tpu.matmul %447, %446, %cst_367 {dimension_numbers = #tpu.dot_dimension_numbers<[1], [0], [0], [1], [0, 0, 1, 1], [], []>} : vector<1x32xbf16>, vector<32x128xbf16>, vector<1x128xf32> -> vector<1x128xf32>
    %449 = arith.addf %443, %448 : vector<1x128xf32>
    %c63 = arith.constant 63 : index
    %c0_368 = arith.constant 0 : index
    %450 = vector.load %arg27[%c63, %c0_368] : memref<64x32xf32, #tpu.memory_space<vmem>>, vector<1x32xf32>
    %c63_369 = arith.constant 63 : index
    %c0_370 = arith.constant 0 : index
    %c0_371 = arith.constant 0 : index
    %451 = vector.load %arg8[%c63_369, %c0_370, %c0_371] : memref<64x32x128xbf16, #tpu.memory_space<vmem>>, vector<1x32x128xbf16>
    %452 = vector.shape_cast %451 : vector<1x32x128xbf16> to vector<32x128xbf16>
    %453 = arith.truncf %450 : vector<1x32xf32> to vector<1x32xbf16>
    %cst_372 = arith.constant dense<0.000000e+00> : vector<1x128xf32>
    %454 = tpu.matmul %453, %452, %cst_372 {dimension_numbers = #tpu.dot_dimension_numbers<[1], [0], [0], [1], [0, 0, 1, 1], [], []>} : vector<1x32xbf16>, vector<32x128xbf16>, vector<1x128xf32> -> vector<1x128xf32>
    %455 = arith.addf %449, %454 : vector<1x128xf32>
    %c0_373 = arith.constant 0 : index
    %c0_374 = arith.constant 0 : index
    %456 = vector.load %arg1[%c0_373, %c0_374] : memref<4x4xf32, #tpu.memory_space<vmem>>, vector<4x4xf32>
    %c0_375 = arith.constant 0 : index
    %c0_376 = arith.constant 0 : index
    %457 = vector.load %arg10[%c0_375, %c0_376] : memref<4x8xbf16, #tpu.memory_space<vmem>>, vector<4x8xbf16>
    %458 = arith.truncf %456 : vector<4x4xf32> to vector<4x4xbf16>
    %cst_377 = arith.constant dense<0.000000e+00> : vector<4x8xf32>
    %459 = tpu.matmul %458, %457, %cst_377 {dimension_numbers = #tpu.dot_dimension_numbers<[1], [0], [0], [1], [0, 0, 1, 1], [], []>} : vector<4x4xbf16>, vector<4x8xbf16>, vector<4x8xf32> -> vector<4x8xf32>
    %c0_378 = arith.constant 0 : index
    %c0_379 = arith.constant 0 : index
    %460 = vector.load %arg11[%c0_378, %c0_379] : memref<1x8xf32, #tpu.memory_space<vmem>>, vector<1x8xf32>
    %461 = vector.broadcast %460 : vector<1x8xf32> to vector<4x8xf32>
    %462 = arith.addf %459, %461 : vector<4x8xf32>
    %cst_380 = arith.constant 0.000000e+00 : f32
    %463 = vector.broadcast %cst_380 : f32 to vector<4x8xf32>
    %464 = arith.maximumf %462, %463 : vector<4x8xf32>
    %c0_381 = arith.constant 0 : index
    %c0_382 = arith.constant 0 : index
    %465 = vector.load %arg28[%c0_381, %c0_382] : memref<4x8xf32, #tpu.memory_space<vmem>>, vector<4x8xf32>
    tpu.vector_store %arg28[%c0_381, %c0_382], %464 {strides = array<i32>} : memref<4x8xf32, #tpu.memory_space<vmem>>, vector<4x8xf32>,
    %c0_383 = arith.constant 0 : index
    %c0_384 = arith.constant 0 : index
    %466 = vector.load %arg13[%c0_383, %c0_384] : memref<1x32xf32, #tpu.memory_space<vmem>>, vector<1x32xf32>
    %c0_385 = arith.constant 0 : index
    %c0_386 = arith.constant 0 : index
    %467 = vector.load %arg28[%c0_385, %c0_386] : memref<4x8xf32, #tpu.memory_space<vmem>>, vector<1x8xf32>
    %c0_387 = arith.constant 0 : index
    %c0_388 = arith.constant 0 : index
    %c0_389 = arith.constant 0 : index
    %468 = vector.load %arg12[%c0_387, %c0_388, %c0_389] : memref<4x8x32xbf16, #tpu.memory_space<vmem>>, vector<1x8x32xbf16>
    %469 = vector.shape_cast %468 : vector<1x8x32xbf16> to vector<8x32xbf16>
    %470 = arith.truncf %467 : vector<1x8xf32> to vector<1x8xbf16>
    %cst_390 = arith.constant dense<0.000000e+00> : vector<1x32xf32>
    %471 = tpu.matmul %470, %469, %cst_390 {dimension_numbers = #tpu.dot_dimension_numbers<[1], [0], [0], [1], [0, 0, 1, 1], [], []>} : vector<1x8xbf16>, vector<8x32xbf16>, vector<1x32xf32> -> vector<1x32xf32>
    %472 = arith.addf %466, %471 : vector<1x32xf32>
    %c1_391 = arith.constant 1 : index
    %c0_392 = arith.constant 0 : index
    %473 = vector.load %arg28[%c1_391, %c0_392] : memref<4x8xf32, #tpu.memory_space<vmem>>, vector<1x8xf32>
    %c1_393 = arith.constant 1 : index
    %c0_394 = arith.constant 0 : index
    %c0_395 = arith.constant 0 : index
    %474 = vector.load %arg12[%c1_393, %c0_394, %c0_395] : memref<4x8x32xbf16, #tpu.memory_space<vmem>>, vector<1x8x32xbf16>
    %475 = vector.shape_cast %474 : vector<1x8x32xbf16> to vector<8x32xbf16>
    %476 = arith.truncf %473 : vector<1x8xf32> to vector<1x8xbf16>
    %cst_396 = arith.constant dense<0.000000e+00> : vector<1x32xf32>
    %477 = tpu.matmul %476, %475, %cst_396 {dimension_numbers = #tpu.dot_dimension_numbers<[1], [0], [0], [1], [0, 0, 1, 1], [], []>} : vector<1x8xbf16>, vector<8x32xbf16>, vector<1x32xf32> -> vector<1x32xf32>
    %478 = arith.addf %472, %477 : vector<1x32xf32>
    %c2_397 = arith.constant 2 : index
    %c0_398 = arith.constant 0 : index
    %479 = vector.load %arg28[%c2_397, %c0_398] : memref<4x8xf32, #tpu.memory_space<vmem>>, vector<1x8xf32>
    %c2_399 = arith.constant 2 : index
    %c0_400 = arith.constant 0 : index
    %c0_401 = arith.constant 0 : index
    %480 = vector.load %arg12[%c2_399, %c0_400, %c0_401] : memref<4x8x32xbf16, #tpu.memory_space<vmem>>, vector<1x8x32xbf16>
    %481 = vector.shape_cast %480 : vector<1x8x32xbf16> to vector<8x32xbf16>
    %482 = arith.truncf %479 : vector<1x8xf32> to vector<1x8xbf16>
    %cst_402 = arith.constant dense<0.000000e+00> : vector<1x32xf32>
    %483 = tpu.matmul %482, %481, %cst_402 {dimension_numbers = #tpu.dot_dimension_numbers<[1], [0], [0], [1], [0, 0, 1, 1], [], []>} : vector<1x8xbf16>, vector<8x32xbf16>, vector<1x32xf32> -> vector<1x32xf32>
    %484 = arith.addf %478, %483 : vector<1x32xf32>
    %c3_403 = arith.constant 3 : index
    %c0_404 = arith.constant 0 : index
    %485 = vector.load %arg28[%c3_403, %c0_404] : memref<4x8xf32, #tpu.memory_space<vmem>>, vector<1x8xf32>
    %c3_405 = arith.constant 3 : index
    %c0_406 = arith.constant 0 : index
    %c0_407 = arith.constant 0 : index
    %486 = vector.load %arg12[%c3_405, %c0_406, %c0_407] : memref<4x8x32xbf16, #tpu.memory_space<vmem>>, vector<1x8x32xbf16>
    %487 = vector.shape_cast %486 : vector<1x8x32xbf16> to vector<8x32xbf16>
    %488 = arith.truncf %485 : vector<1x8xf32> to vector<1x8xbf16>
    %cst_408 = arith.constant dense<0.000000e+00> : vector<1x32xf32>
    %489 = tpu.matmul %488, %487, %cst_408 {dimension_numbers = #tpu.dot_dimension_numbers<[1], [0], [0], [1], [0, 0, 1, 1], [], []>} : vector<1x8xbf16>, vector<8x32xbf16>, vector<1x32xf32> -> vector<1x32xf32>
    %490 = arith.addf %484, %489 : vector<1x32xf32>
    %c0_409 = arith.constant 0 : index
    %c0_410 = arith.constant 0 : index
    %491 = vector.load %arg14[%c0_409, %c0_410] : memref<128x512xbf16, #tpu.memory_space<vmem>>, vector<128x512xbf16>
    %492 = arith.truncf %455 : vector<1x128xf32> to vector<1x128xbf16>
    %cst_411 = arith.constant dense<0.000000e+00> : vector<1x512xf32>
    %493 = tpu.matmul %492, %491, %cst_411 {dimension_numbers = #tpu.dot_dimension_numbers<[1], [0], [0], [1], [0, 0, 1, 1], [], []>} : vector<1x128xbf16>, vector<128x512xbf16>, vector<1x512xf32> -> vector<1x512xf32>
    %c0_412 = arith.constant 0 : index
    %c0_413 = arith.constant 0 : index
    %494 = vector.load %arg15[%c0_412, %c0_413] : memref<32x512xbf16, #tpu.memory_space<vmem>>, vector<32x512xbf16>
    %495 = arith.truncf %490 : vector<1x32xf32> to vector<1x32xbf16>
    %cst_414 = arith.constant dense<0.000000e+00> : vector<1x512xf32>
    %496 = tpu.matmul %495, %494, %cst_414 {dimension_numbers = #tpu.dot_dimension_numbers<[1], [0], [0], [1], [0, 0, 1, 1], [], []>} : vector<1x32xbf16>, vector<32x512xbf16>, vector<1x512xf32> -> vector<1x512xf32>
    %497 = arith.addf %493, %496 : vector<1x512xf32>
    %c0_415 = arith.constant 0 : index
    %c0_416 = arith.constant 0 : index
    %498 = vector.load %arg2[%c0_415, %c0_416] : memref<1x2xf32, #tpu.memory_space<vmem>>, vector<1x2xf32>
    %c0_417 = arith.constant 0 : index
    %c0_418 = arith.constant 0 : index
    %499 = vector.load %arg16[%c0_417, %c0_418] : memref<2x512xbf16, #tpu.memory_space<vmem>>, vector<2x512xbf16>
    %500 = arith.truncf %498 : vector<1x2xf32> to vector<1x2xbf16>
    %cst_419 = arith.constant dense<0.000000e+00> : vector<1x512xf32>
    %501 = tpu.matmul %500, %499, %cst_419 {dimension_numbers = #tpu.dot_dimension_numbers<[1], [0], [0], [1], [0, 0, 1, 1], [], []>} : vector<1x2xbf16>, vector<2x512xbf16>, vector<1x512xf32> -> vector<1x512xf32>
    %502 = arith.addf %497, %501 : vector<1x512xf32>
    %c0_420 = arith.constant 0 : index
    %c0_421 = arith.constant 0 : index
    %503 = vector.load %arg17[%c0_420, %c0_421] : memref<1x512xf32, #tpu.memory_space<vmem>>, vector<1x512xf32>
    %504 = arith.addf %502, %503 : vector<1x512xf32>
    %cst_422 = arith.constant 0.000000e+00 : f32
    %505 = vector.broadcast %cst_422 : f32 to vector<1x512xf32>
    %506 = arith.maximumf %504, %505 : vector<1x512xf32>
    %507 = vector.extract_strided_slice %506 {offsets = [0, 0], sizes = [1, 256], strides = [1, 1]} : vector<1x512xf32> to vector<1x256xf32>
    %c0_423 = arith.constant 0 : index
    %c0_424 = arith.constant 0 : index
    %508 = vector.load %arg18[%c0_423, %c0_424] : memref<256x256xbf16, #tpu.memory_space<vmem>>, vector<256x256xbf16>
    %509 = arith.truncf %507 : vector<1x256xf32> to vector<1x256xbf16>
    %cst_425 = arith.constant dense<0.000000e+00> : vector<1x256xf32>
    %510 = tpu.matmul %509, %508, %cst_425 {dimension_numbers = #tpu.dot_dimension_numbers<[1], [0], [0], [1], [0, 0, 1, 1], [], []>} : vector<1x256xbf16>, vector<256x256xbf16>, vector<1x256xf32> -> vector<1x256xf32>
    %c0_426 = arith.constant 0 : index
    %c0_427 = arith.constant 0 : index
    %511 = vector.load %arg19[%c0_426, %c0_427] : memref<1x256xf32, #tpu.memory_space<vmem>>, vector<1x256xf32>
    %512 = arith.addf %510, %511 : vector<1x256xf32>
    %cst_428 = arith.constant 0.000000e+00 : f32
    %513 = vector.broadcast %cst_428 : f32 to vector<1x256xf32>
    %514 = arith.maximumf %512, %513 : vector<1x256xf32>
    %515 = vector.extract_strided_slice %506 {offsets = [0, 256], sizes = [1, 256], strides = [1, 1]} : vector<1x512xf32> to vector<1x256xf32>
    %c0_429 = arith.constant 0 : index
    %c0_430 = arith.constant 0 : index
    %516 = vector.load %arg20[%c0_429, %c0_430] : memref<256x256xbf16, #tpu.memory_space<vmem>>, vector<256x256xbf16>
    %517 = arith.truncf %515 : vector<1x256xf32> to vector<1x256xbf16>
    %cst_431 = arith.constant dense<0.000000e+00> : vector<1x256xf32>
    %518 = tpu.matmul %517, %516, %cst_431 {dimension_numbers = #tpu.dot_dimension_numbers<[1], [0], [0], [1], [0, 0, 1, 1], [], []>} : vector<1x256xbf16>, vector<256x256xbf16>, vector<1x256xf32> -> vector<1x256xf32>
    %c0_432 = arith.constant 0 : index
    %c0_433 = arith.constant 0 : index
    %519 = vector.load %arg21[%c0_432, %c0_433] : memref<1x256xf32, #tpu.memory_space<vmem>>, vector<1x256xf32>
    %520 = arith.addf %518, %519 : vector<1x256xf32>
    %cst_434 = arith.constant 0.000000e+00 : f32
    %521 = vector.broadcast %cst_434 : f32 to vector<1x256xf32>
    %522 = arith.maximumf %520, %521 : vector<1x256xf32>
    %c0_435 = arith.constant 0 : index
    %c0_436 = arith.constant 0 : index
    %523 = vector.load %arg22[%c0_435, %c0_436] : memref<256x128xbf16, #tpu.memory_space<vmem>>, vector<256x128xbf16>
    %524 = arith.truncf %514 : vector<1x256xf32> to vector<1x256xbf16>
    %cst_437 = arith.constant dense<0.000000e+00> : vector<1x128xf32>
    %525 = tpu.matmul %524, %523, %cst_437 {dimension_numbers = #tpu.dot_dimension_numbers<[1], [0], [0], [1], [0, 0, 1, 1], [], []>} : vector<1x256xbf16>, vector<256x128xbf16>, vector<1x128xf32> -> vector<1x128xf32>
    %c0_438 = arith.constant 0 : index
    %c0_439 = arith.constant 0 : index
    %526 = vector.load %arg23[%c0_438, %c0_439] : memref<1x128xf32, #tpu.memory_space<vmem>>, vector<1x128xf32>
    %527 = arith.addf %525, %526 : vector<1x128xf32>
    %c0_440 = arith.constant 0 : index
    %c0_441 = arith.constant 0 : index
    %528 = vector.load %arg24[%c0_440, %c0_441] : memref<1x256xf32, #tpu.memory_space<vmem>>, vector<1x256xf32>
    %529 = arith.mulf %522, %528 : vector<1x256xf32>
    %cst_442 = arith.constant dense<0.000000e+00> : vector<1xf32>
    %530 = vector.multi_reduction <add>, %529, %cst_442 [1] : vector<1x256xf32> to vector<1xf32>
    %531 = vector.shape_cast %530 : vector<1xf32> to vector<1x1xf32>
    %c0_443 = arith.constant 0 : index
    %c0_444 = arith.constant 0 : index
    %532 = vector.load %arg25[%c0_443, %c0_444] : memref<1x1xf32, #tpu.memory_space<vmem>>, vector<1x1xf32>
    %533 = arith.addf %531, %532 : vector<1x1xf32>
    %534 = tpu.iota {dimensions = array<i32: 1>} : vector<1x128xi32>
    %c127_i32 = arith.constant 127 : i32
    %535 = vector.broadcast %c127_i32 : i32 to vector<1x128xi32>
    %536 = arith.cmpi eq, %534, %535 : vector<1x128xi32>
    %cst_445 = arith.constant 0.000000e+00 : f32
    %537 = vector.shape_cast %533 : vector<1x1xf32> to vector<1x1xf32>
    %538 = vector.broadcast %537 : vector<1x1xf32> to vector<1x128xf32>
    %539 = vector.broadcast %cst_445 : f32 to vector<1x128xf32>
    %540 = arith.select %536, %538, %539 : vector<1x128xi1>, vector<1x128xf32>
    %541 = arith.addf %527, %540 : vector<1x128xf32>
    %c0_446 = arith.constant 0 : index
    %c0_447 = arith.constant 0 : index
    %542 = vector.load %arg26[%c0_446, %c0_447] : memref<1x128xf32, #tpu.memory_space<vmem>>, vector<1x128xf32>
    tpu.vector_store %arg26[%c0_446, %c0_447], %541 {strides = array<i32>} : memref<1x128xf32, #tpu.memory_space<vmem>>, vector<1x128xf32>,
    return
  }
}

</mosaic_0001>

<bundles_post_ra>
// kernel: _forward_impl.1
= control target key start
LH: loop header
LB: loop body
LE: loop exit
PB: predicated region body
PF: predicated region fallthrough
CT: control target
= control target key end

     0   :  { %s9316_s0 = inlined_call_operand.vmem [shape: f32[225,9], index: 0, kind: input, shape index: {}]   ;;  %s9317_s1 = inlined_call_operand.vmem [shape: f32[4,4], index: 1, kind: input, shape index: {}]   ;;  %s9318_s2 = inlined_call_operand.vmem [shape: f32[1,2], index: 2, kind: input, shape index: {}]   ;;  %s9319_s3 = inlined_call_operand.vmem [shape: bf16[9,16], index: 3, kind: input, shape index: {}]   ;;  %s9320_s4 = inlined_call_operand.hbm [shape: f32[1,16], index: 4, kind: input, shape index: {}]   ;;  %s9321_s5 = inlined_call_operand.vmem [shape: bf16[576,225], index: 5, kind: input, shape index: {}]   ;;  %s9322_s6 = inlined_call_operand.hbm [shape: bf16[9,16,32], index: 6, kind: input, shape index: {}]   ;;  %s9323_s7 = inlined_call_operand.hbm [shape: f32[1,32], index: 7, kind: input, shape index: {}]   ;;  %s9324_s8 = inlined_call_operand.hbm [shape: bf16[64,32,128], index: 8, kind: input, shape index: {}]   ;;  %s9325_s9 = inlined_call_operand.hbm [shape: f32[1,128], index: 9, kind: input, shape index: {}]   ;;  %s9326_s10 = inlined_call_operand.hbm [shape: bf16[4,8], index: 10, kind: input, shape index: {}]   ;;  %s9327_s11 = inlined_call_operand.hbm [shape: f32[1,8], index: 11, kind: input, shape index: {}]   ;;  %s9328_s12 = inlined_call_operand.hbm [shape: bf16[4,8,32], index: 12, kind: input, shape index: {}]   ;;  %s9329_s13 = inlined_call_operand.hbm [shape: f32[1,32], index: 13, kind: input, shape index: {}]   ;;  %s9330_s14 = inlined_call_operand.vmem [shape: bf16[128,512], index: 14, kind: input, shape index: {}]   ;;  %s9331_s15 = inlined_call_operand.hbm [shape: bf16[32,512], index: 15, kind: input, shape index: {}]   ;;  %s9332_s16 = inlined_call_operand.vmem [shape: bf16[2,512], index: 16, kind: input, shape index: {}]   ;;  %s9333_s17 = inlined_call_operand.hbm [shape: f32[1,512], index: 17, kind: input, shape index: {}]   ;;  %s9334_s18 = inlined_call_operand.hbm [shape: bf16[256,256], index: 18, kind: input, shape index: {}]   ;;  %s9335_s19 = inlined_call_operand.vmem [shape: f32[1,256], index: 19, kind: input, shape index: {}]   ;;  %s9336_s20 = inlined_call_operand.hbm [shape: bf16[256,256], index: 20, kind: input, shape index: {}]   ;;  %s9337_s21 = inlined_call_operand.hbm [shape: f32[1,256], index: 21, kind: input, shape index: {}]   ;;  %s9338_s22 = inlined_call_operand.vmem [shape: bf16[256,128], index: 22, kind: input, shape index: {}]   ;;  %s9339_s23 = inlined_call_operand.hbm [shape: f32[1,128], index: 23, kind: input, shape index: {}]   ;;  %s9340_s24 = inlined_call_operand.hbm [shape: f32[1,256], index: 24, kind: input, shape index: {}]   ;;  %s9341_s25 = inlined_call_operand.<no memory space> [shape: f32[1,1], index: 25, kind: input, shape index: {}]   ;;  %s9342_s26 = inlined_call_operand.vmem [shape: f32[1,128], index: 26, kind: output, shape index: {}]  }
   0x1   :  { %9346 = sst [smem:[#allocation39_spill]] %s9316_s0  ;;  %v31_v0 = vstv %s9341_s25 }
   0x2   :  { %9347 = sst [smem:[#allocation40_spill]] %s9317_s1  ;;  %32 = vst [vmem:[#allocation4] sm:$0x1] %v31_v0 }
   0x3   :  { %9348 = sst [smem:[#allocation41_spill]] %s9318_s2 }
   0x4   :  { %9349 = sst [smem:[#allocation42_spill]] %s9319_s3 }
   0x5   :  { %9350 = sst [smem:[#allocation43_spill]] %s9320_s4 }
   0x6   :  { %9351 = sst [smem:[#allocation44_spill]] %s9321_s5 }
   0x7   :  { %9352 = sst [smem:[#allocation45_spill]] %s9322_s6 }
   0x8   :  { %9353 = sst [smem:[#allocation46_spill]] %s9323_s7 }
   0x9   :  { %9354 = sst [smem:[#allocation47_spill]] %s9324_s8 }
   0xa   :  { %9355 = sst [smem:[#allocation48_spill]] %s9325_s9 }
   0xb   :  { %9356 = sst [smem:[#allocation49_spill]] %s9326_s10 }
   0xc   :  { %9357 = sst [smem:[#allocation50_spill]] %s9335_s19 }
   0xd   :  { %9358 = sst [smem:[#allocation51_spill]] %s9342_s26 }
   0xe   :  { %33 = vsyncpa [#allocation6], 0 }
   0xf   :  { %34 = vsyncpa [#allocation8], 0 }
  0x10   :  { %35 = vsyncpa [#allocation11], 0 }
  0x11   :  { %36 = vsyncpa [#allocation14], 0 }
  0x12   :  { %37 = vsyncpa [#allocation17], 0 }
  0x13   :  { %38 = vsyncpa [#allocation20], 0 }
  0x14   :  { %39 = vsyncpa [#allocation23], 0 }
  0x15   :  { %40 = vsyncpa [#allocation26], 0  ;;  %s9359_s8 = sld [smem:[#allocation45_spill]] }
  0x1b   :  { %s67_s4 = sshll.u32 %s9359_s8, 4  ;;  %s68_s4 = int_to_ptr.hbm [resolvable:$true] %s67_s4 }
  0x1c   :  { %41 = vsyncpa [#allocation29], 0  ;;  %s7842_s29 = smov [#allocation7]   ;;  %s9360_s30 = sld [smem:[#allocation47_spill]] }
  0x1d   :  { %s69_s0 = sshll.u32 %s7842_s29, 4  ;;  %s7843_s5 = smov 64   ;;  %s70_s0 = int_to_ptr.vmem [resolvable:$true] %s69_s0 }
  0x1e   :  { %s7844_s10 = smov 4   ;;  %s7845_s6 = smov [#allocation10]  }
  0x1f   :  { %75 = dma.hbm_to_vmem [thread:$0]  %s68_s4, 1152, %s70_s0, [#allocation8], %s7843_s5, %s7843_s5, %s7844_s10  }
  0x20   :  { %s93_s1 = sshll.u32 %s7845_s6, 4  ;;  %s9361_s26 = sld [smem:[#allocation49_spill]]  ;;  %s94_s1 = int_to_ptr.vmem [resolvable:$true] %s93_s1 }
  0x21   :  { %s137_s29 = sshll.u32 %s9328_s12, 4  ;;  %s7846_s19 = smov [#allocation13]   ;;  %s138_s29 = int_to_ptr.hbm [resolvable:$true] %s137_s29 }
  0x22   :  { %s91_s2 = sshll.u32 %s9360_s30, 4  ;;  %s118_s9 = sshll.u32 %s7846_s19, 4  ;;  %s92_s2 = int_to_ptr.hbm [resolvable:$true] %s91_s2  ;;  %s119_s9 = int_to_ptr.vmem [resolvable:$true] %s118_s9 }
  0x23   :  { %99 = dma.hbm_to_vmem [thread:$0]  %s92_s2, 16384, %s94_s1, [#allocation11], %s7843_s5, %s7843_s5, %s7844_s10  }
  0x24   :  { %s7847_s4 = smov [#allocation16]   ;;  %s163_s6 = sshll.u32 %s9331_s15, 4  ;;  %s164_s6 = int_to_ptr.hbm [resolvable:$true] %s163_s6 }
  0x25   :  { %s139_s0 = sshll.u32 %s7847_s4, 4  ;;  %s189_s12 = sshll.u32 %s9334_s18, 4  ;;  %s140_s0 = int_to_ptr.vmem [resolvable:$true] %s139_s0  ;;  %s190_s12 = int_to_ptr.hbm [resolvable:$true] %s189_s12 }
  0x26   :  { %s116_s7 = sshll.u32 %s9361_s26, 4  ;;  %s7848_s26 = smov [#allocation19]   ;;  %s117_s7 = int_to_ptr.hbm [resolvable:$true] %s116_s7 }
  0x27   :  { %121 = dma.hbm_to_vmem [thread:$0]  %s117_s7, 32, %s119_s9, [#allocation14]  }
  0x28   :  { %145 = dma.hbm_to_vmem [thread:$0]  %s138_s29, 256, %s140_s0, [#allocation17], %s7843_s5, %s7843_s5, %s7844_s10  }
  0x29   :  { %s165_s2 = sshll.u32 %s7848_s26, 4  ;;  %s7849_s19 = smov 256   ;;  %s166_s2 = int_to_ptr.vmem [resolvable:$true] %s165_s2 }
  0x2a   :  { %s7850_s3 = smov 16   ;;  %s7851_s7 = smov [#allocation22]  }
  0x2b   :  { %171 = dma.hbm_to_vmem [thread:$0]  %s164_s6, 1024, %s166_s2, [#allocation20], %s7849_s19, %s7849_s19, %s7850_s3  }
  0x2c   :  { %s191_s28 = sshll.u32 %s7851_s7, 4  ;;  %s7852_s8 = smov 128   ;;  %s192_s28 = int_to_ptr.vmem [resolvable:$true] %s191_s28 }
  0x2d   :  { %s7853_s9 = smov 8   ;;  %s218_s10 = sshll.u32 %s9337_s21, 4  ;;  %s219_s10 = int_to_ptr.hbm [resolvable:$true] %s218_s10 }
  0x2e   :  { %197 = dma.hbm_to_vmem [thread:$0]  %s190_s12, 4096, %s192_s28, [#allocation23], %s7852_s8, %s7852_s8, %s7853_s9  }
  0x2f   :  { %s7854_s29 = smov [#allocation25]   ;;  %s9362_s25 = sld [smem:[#allocation43_spill]] }
  0x30   :  { %s220_s18 = sshll.u32 %s7854_s29, 4  ;;  %s7855_s6 = smov [#allocation5]   ;;  %s221_s18 = int_to_ptr.vmem [resolvable:$true] %s220_s18 }
  0x31   :  { %223 = dma.hbm_to_vmem [thread:$0]  %s219_s10, 32, %s221_s18, [#allocation26]  }
  0x32   :  { %s57_s26 = sshll.u32 %s7855_s6, 4  ;;  %s9363_s27 = sld [smem:[#allocation46_spill]]  ;;  %s58_s26 = int_to_ptr.vmem [resolvable:$true] %s57_s26 }
  0x33   :  { %s9364_s3 = sld [smem:[#allocation48_spill]]  ;;  %s7856_s28 = smov [#allocation9]  }
  0x34   :  { %s83_s15 = sshll.u32 %s7856_s28, 4  ;;  %s7857_s5 = smov [#allocation12]   ;;  %s84_s15 = int_to_ptr.vmem [resolvable:$true] %s83_s15 }
  0x35   :  { %s55_s30 = sshll.u32 %s9362_s25, 4  ;;  %s107_s10 = sshll.u32 %s7857_s5, 4  ;;  %s56_s30 = int_to_ptr.hbm [resolvable:$true] %s55_s30  ;;  %s108_s10 = int_to_ptr.vmem [resolvable:$true] %s107_s10 }
  0x36   :  { %60 = dma.hbm_to_vmem [thread:$0]  %s56_s30, 16, %s58_s26, [#allocation6]  }
  0x37   :  { %s127_s4 = sshll.u32 %s9327_s11, 4  ;;  %s151_s30 = sshll.u32 %s9329_s13, 4  ;;  %s128_s4 = int_to_ptr.hbm [resolvable:$true] %s127_s4  ;;  %s152_s30 = int_to_ptr.hbm [resolvable:$true] %s151_s30 }
  0x38   :  { %s81_s12 = sshll.u32 %s9363_s27, 4  ;;  %s7858_s6 = smov [#allocation15]   ;;  %s82_s12 = int_to_ptr.hbm [resolvable:$true] %s81_s12 }
  0x39   :  { %s105_s7 = sshll.u32 %s9364_s3, 4  ;;  %s129_s26 = sshll.u32 %s7858_s6, 4  ;;  %s106_s7 = int_to_ptr.hbm [resolvable:$true] %s105_s7  ;;  %s130_s26 = int_to_ptr.vmem [resolvable:$true] %s129_s26 }
  0x3a   :  { %86 = dma.hbm_to_vmem [thread:$0]  %s82_s12, 16, %s84_s15, [#allocation8]  }
  0x3b   :  { %110 = dma.hbm_to_vmem [thread:$0]  %s106_s7, 16, %s108_s10, [#allocation11]  }
  0x3c   :  { %132 = dma.hbm_to_vmem [thread:$0]  %s128_s4, 16, %s130_s26, [#allocation14]  }
  0x3d   :  { %s7859_s2 = smov [#allocation18]   ;;  %s179_s21 = sshll.u32 %s9333_s17, 4  ;;  %s180_s21 = int_to_ptr.hbm [resolvable:$true] %s179_s21 }
  0x3e   :  { %s153_s1 = sshll.u32 %s7859_s2, 4  ;;  %s204_s3 = sshll.u32 %s9336_s20, 4  ;;  %s154_s1 = int_to_ptr.vmem [resolvable:$true] %s153_s1  ;;  %s205_s3 = int_to_ptr.hbm [resolvable:$true] %s204_s3 }
  0x3f   :  { %156 = dma.hbm_to_vmem [thread:$0]  %s152_s30, 16, %s154_s1, [#allocation17]  }
  0x40   :  { %s7860_s7 = smov [#allocation21]   ;;  %s7861_s28 = smov [#allocation24]  }
  0x41   :  { %s181_s13 = sshll.u32 %s7860_s7, 4  ;;  %s206_s15 = sshll.u32 %s7861_s28, 4  ;;  %s182_s13 = int_to_ptr.vmem [resolvable:$true] %s181_s13  ;;  %s207_s15 = int_to_ptr.vmem [resolvable:$true] %s206_s15 }
  0x42   :  { %184 = dma.hbm_to_vmem [thread:$0]  %s180_s21, 64, %s182_s13, [#allocation20]  }
  0x43   :  { %s231_s29 = sshll.u32 %s9339_s23, 4  ;;  %s242_s20 = sshll.u32 %s9340_s24, 4  ;;  %s232_s29 = int_to_ptr.hbm [resolvable:$true] %s231_s29  ;;  %s243_s20 = int_to_ptr.hbm [resolvable:$true] %s242_s20 }
  0x44   :  { %212 = dma.hbm_to_vmem [thread:$0]  %s205_s3, 4096, %s207_s15, [#allocation23], %s7852_s8, %s7852_s8, %s7853_s9  }
  0x45   :  { %s7862_s4 = smov [#allocation27]   ;;  %s7863_s25 = smov [#allocation28]  }
  0x46   :  { %s233_s0 = sshll.u32 %s7862_s4, 4  ;;  %s244_s30 = sshll.u32 %s7863_s25, 4  ;;  %s234_s0 = int_to_ptr.vmem [resolvable:$true] %s233_s0  ;;  %s245_s30 = int_to_ptr.vmem [resolvable:$true] %s244_s30 }
  0x47   :  { %236 = dma.hbm_to_vmem [thread:$0]  %s232_s29, 16, %s234_s0, [#allocation26]  }
  0x48   :  { %247 = dma.hbm_to_vmem [thread:$0]  %s243_s20, 32, %s245_s30, [#allocation29]  }
  0x49   :  { %7824 = dma.done.wait [#allocation6], 16  }
  0x4a   :  { %7825 = vsyncadd [#allocation6], 4294967280 }
  0x4b   :  { %7826 = dma.done.wait [#allocation8], 1168  }
  0x4c   :  { %7827 = vsyncadd [#allocation8], 4294966128 }
  0x4d   :  { %7828 = dma.done.wait [#allocation11], 16400  }
  0x4e   :  { %7829 = vsyncadd [#allocation11], 4294950896 }
  0x4f   :  { %7830 = dma.done.wait [#allocation14], 48  }
  0x50   :  { %7831 = vsyncadd [#allocation14], 4294967248 }
  0x51   :  { %7832 = dma.done.wait [#allocation17], 272  }
  0x52   :  { %7833 = vsyncadd [#allocation17], 4294967024 }
  0x53   :  { %7834 = dma.done.wait [#allocation20], 1088  }
  0x54   :  { %7835 = vsyncadd [#allocation20], 4294966208 }
  0x55   :  { %7836 = dma.done.wait [#allocation23], 8192  }
  0x56   :  { %7837 = vsyncadd [#allocation23], 4294959104 }
  0x57   :  { %7838 = dma.done.wait [#allocation26], 48  }
  0x58   :  { %7839 = vsyncadd [#allocation26], 4294967248 }
  0x59   :  { %7840 = dma.done.wait [#allocation29], 32  }
  0x5a   :  { %7841 = vsyncadd [#allocation29], 4294967264  ;;  %vm416_vm0 = vcmask 1043456   ;;  %vm417_vm1 = vcmask 1044480   ;;  %v7864_v1 = vmov 65535   ;;  %s9365_s8 = sld [smem:[#allocation42_spill]] }
  0x5b   :  { %v418_v2 = vsel %vm416_vm0, 4294967295, %v7864_v1  ;;  %s9366_s1 = sld [smem:[#allocation39_spill]]  ;;  %vm370_vm2 = vcmask 72704   ;;  %v8127_v36 = vld [vmem:[#allocation5] ss:$0 sm:$0xff]  ;;  %vm1055_vm3 = vcmask 1040384  }
  0x5c   :  { %v419_v5 = vsel %vm417_vm1, %v418_v2, 0  ;;  %s9367_s11 = sld [smem:[#allocation44_spill]]  ;;  %vm946_vm4 = vcmask 793600   ;;  %vm1452_vm5 = vcmask 130048   ;;  %vm2009_vm6 = vcmask 261120  }
  0x5d   :  { %vm4333_vm7 = vcmask 1041408   ;;  %s9368_s24 = sld [smem:[#allocation40_spill]]  ;;  %vm4329_vm8 = vcmask 31744   ;;  %vm4351_vm9 = vcmask 60416   ;;  %vm4357_vm10 = vcmask 64512  }
  0x5e   :  { %s9369_s17 = sld [smem:[#allocation41_spill]]  ;;  %vm4808_vm11 = vcmask 15360  }
  0x5f   :  { %s9370_s25 = sld [smem:[#allocation50_spill]] }
  0x60   :  { %v5600_v3 = vld [vmem:[%s9365_s8] sm:$0xf]  ;;  %v7082_v4 = vld [vmem:[%s9365_s8] sm:$0x10] }
  0x61   :  { %v5601_v6 = vor.u32 %v7082_v4, %v5600_v3  ;;  %v315_v7 = vld [vmem:[%s9366_s1] sm:$0xff]  ;;  %v316_v8 = vld [vmem:[%s9366_s1 + $0x8] sm:$0xff]  ;;  %v317_v11 = vld [vmem:[%s9366_s1 + $0x10] sm:$0xff] }
  0x62   :  { %v346_v10 = vpack.c.bf16 %v316_v8, %v315_v7  ;;  %v318_v12 = vld [vmem:[%s9366_s1 + $0x18] sm:$0xff]  ;;  %v319_v14 = vld [vmem:[%s9366_s1 + $0x20] sm:$0xff]  ;;  %v320_v15 = vld [vmem:[%s9366_s1 + $0x28] sm:$0xff] }
  0x63   :  { %v421_v9 = vand.u32 %v5601_v6, %v419_v5  ;;  %v347_v13 = vpack.c.bf16 %v318_v12, %v317_v11  ;;  %v348_v16 = vpack.c.bf16 %v320_v15, %v319_v14  ;;  %v321_v17 = vld [vmem:[%s9366_s1 + $0x30] sm:$0xff]  ;;  %v322_v18 = vld [vmem:[%s9366_s1 + $0x38] sm:$0xff]  ;;  %v323_v20 = vld [vmem:[%s9366_s1 + $0x40] sm:$0xff] }
  0x64   :  { %v349_v19 = vpack.c.bf16 %v322_v18, %v321_v17  ;;  %v324_v21 = vld [vmem:[%s9366_s1 + $0x48] sm:$0xff]  ;;  %v325_v23 = vld [vmem:[%s9366_s1 + $0x50] sm:$0xff]  ;;  %v326_v24 = vld [vmem:[%s9366_s1 + $0x58] sm:$0xff] }
  0x65   :  { %430 = vmatpush.bf16.msra.mxu0 %v421_v9  ;;  %v350_v22 = vpack.c.bf16 %v324_v21, %v323_v20  ;;  %v351_v25 = vpack.c.bf16 %v326_v24, %v325_v23  ;;  %v327_v26 = vld [vmem:[%s9366_s1 + $0x60] sm:$0xff]  ;;  %v328_v27 = vld [vmem:[%s9366_s1 + $0x68] sm:$0xff]  ;;  %v329_v29 = vld [vmem:[%s9366_s1 + $0x70] sm:$0xff] }
  0x66   :  { %v352_v28 = vpack.c.bf16 %v328_v27, %v327_v26  ;;  %v330_v30 = vld [vmem:[%s9366_s1 + $0x78] sm:$0xff]  ;;  %v331_v32 = vld [vmem:[%s9366_s1 + $0x80] sm:$0xff]  ;;  %v332_v33 = vld [vmem:[%s9366_s1 + $0x88] sm:$0xff] }
  0x67   :  { %v353_v31 = vpack.c.bf16 %v330_v30, %v329_v29  ;;  %v354_v34 = vpack.c.bf16 %v332_v33, %v331_v32  ;;  %v333_v42 = vld [vmem:[%s9366_s1 + $0x90] sm:$0xff]  ;;  %v334_v43 = vld [vmem:[%s9366_s1 + $0x98] sm:$0xff]  ;;  %v335_v52 = vld [vmem:[%s9366_s1 + $0xa0] sm:$0xff] }
  0x68   :  { %5602 = vmatmul.msk.bf16.vlgmr.msra.gmra.mxu0 %vm370_vm2, %v346_v10  ;;  %v355_v45 = vpack.c.bf16 %v334_v43, %v333_v42  ;;  %v336_v53 = vld [vmem:[%s9366_s1 + $0xa8] sm:$0xff]  ;;  %v337_v62 = vld [vmem:[%s9366_s1 + $0xb0] sm:$0xff]  ;;  %v338_v63 = vld [vmem:[%s9366_s1 + $0xb8] sm:$0xff] }
  0x69   :  { %v356_v55 = vpack.c.bf16 %v336_v53, %v335_v52  ;;  %v357_v1 = vpack.c.bf16 %v338_v63, %v337_v62  ;;  %v339_v4 = vld [vmem:[%s9366_s1 + $0xc0] sm:$0xff]  ;;  %v340_v5 = vld [vmem:[%s9366_s1 + $0xc8] sm:$0xff]  ;;  %v341_v9 = vld [vmem:[%s9366_s1 + $0xd0] sm:$0xff] }
  0x6a   :  { %v358_v6 = vpack.c.bf16 %v340_v5, %v339_v4  ;;  %v342_v10 = vld [vmem:[%s9366_s1 + $0xd8] sm:$0xff]  ;;  %v343_v14 = vld [vmem:[%s9366_s1 + $0xe0] sm:$0x1] }
  0x6b   :  { %v359_v11 = vpack.c.bf16 %v342_v10, %v341_v9  ;;  %v360_v15 = vpack.c.bf16 %v343_v14, %v343_v14  ;;  %v5627_v14 = vld [vmem:[%s9367_s11 + $0x10] sm:$0xf] }
  0x78   :  { %5603 = vmatmul.msk.bf16.gmra.mxu0 %vm370_vm2, %v347_v13 }
  0x88   :  { %5604 = vmatmul.msk.bf16.gmra.mxu0 %vm370_vm2, %v348_v16 }
  0x98   :  { %5605 = vmatmul.msk.bf16.gmra.mxu0 %vm370_vm2, %v349_v19 }
  0xa8   :  { %5606 = vmatmul.msk.bf16.gmra.mxu0 %vm370_vm2, %v350_v22 }
  0xb8   :  { %5607 = vmatmul.msk.bf16.gmra.mxu0 %vm370_vm2, %v351_v25 }
  0xc8   :  { %5608 = vmatmul.msk.bf16.gmra.mxu0 %vm370_vm2, %v352_v28 }
  0xd8   :  { %5609 = vmatmul.msk.bf16.gmra.mxu0 %vm370_vm2, %v353_v31 }
  0xe5   :  { %v432_v35 = vpop.f32.mrf.mxu0 }
  0xe6   :  { %v433_v37 = vadd.f32 %v8127_v36, %v432_v35 }
  0xe8   :  { %5610 = vmatmul.msk.bf16.gmra.mxu0 %vm370_vm2, %v354_v34  ;;  %v506_v40 = vmax.f32 %v433_v37, 0.0 }
  0xed   :  { %v434_v38 = vpop.f32.mrf.mxu0 }
  0xee   :  { %v435_v39 = vadd.f32 %v8127_v36, %v434_v38 }
  0xf0   :  { %v507_v41 = vmax.f32 %v435_v39, 0.0 }
  0xf2   :  { %v8138_v44 = vpack.c.bf16 %v507_v41, %v506_v40 }
  0xf5   :  { %v437_v46 = vpop.f32.mrf.mxu0 }
  0xf6   :  { %v438_v47 = vadd.f32 %v8127_v36, %v437_v46 }
  0xf8   :  { %5611 = vmatmul.msk.bf16.gmra.mxu0 %vm370_vm2, %v355_v45  ;;  %v508_v50 = vmax.f32 %v438_v47, 0.0 }
  0xfd   :  { %v439_v48 = vpop.f32.mrf.mxu0 }
  0xfe   :  { %v440_v49 = vadd.f32 %v8127_v36, %v439_v48 }
 0x100   :  { %v509_v51 = vmax.f32 %v440_v49, 0.0 }
 0x102   :  { %v8149_v54 = vpack.c.bf16 %v509_v51, %v508_v50 }
 0x105   :  { %v442_v56 = vpop.f32.mrf.mxu0 }
 0x106   :  { %v443_v57 = vadd.f32 %v8127_v36, %v442_v56 }
 0x108   :  { %5612 = vmatmul.msk.bf16.gmra.mxu0 %vm370_vm2, %v356_v55  ;;  %v510_v60 = vmax.f32 %v443_v57, 0.0  ;;  %v7865_v57 = vmov 0  }
 0x109   :  { %7436 = vset.pattern.permute.xlu0 %v7865_v57 }
 0x10d   :  { %v444_v58 = vpop.f32.mrf.mxu0 }
 0x10e   :  { %v445_v59 = vadd.f32 %v8127_v36, %v444_v58 }
 0x110   :  { %v511_v61 = vmax.f32 %v445_v59, 0.0 }
 0x112   :  { %v609_v0 = vpack.c.bf16 %v511_v61, %v510_v60  ;;  %v5619_v61 = vld [vmem:[%s9367_s11] sm:$0xf] }
 0x115   :  { %v447_v2 = vpop.f32.mrf.mxu0 }
 0x116   :  { %v448_v41 = vadd.f32 %v8127_v36, %v447_v2  ;;  %v1057_v2 = vsel %vm1055_vm3, 65535, %v7865_v57 }
 0x118   :  { %5613 = vmatmul.msk.bf16.gmra.mxu0 %vm370_vm2, %v357_v1  ;;  %v512_v47 = vmax.f32 %v448_v41, 0.0  ;;  %v7083_v41 = vld [vmem:[%s9367_s11 + $0x4] sm:$0xf] }
 0x11d   :  { %v449_v3 = vpop.f32.mrf.mxu0 }
 0x11e   :  { %v450_v38 = vadd.f32 %v8127_v36, %v449_v3 }
 0x120   :  { %v513_v45 = vmax.f32 %v450_v38, 0.0  ;;  %v5635_v38 = vld [vmem:[%s9367_s11 + $0x20] sm:$0xf] }
 0x122   :  { %v610_v48 = vpack.c.bf16 %v513_v45, %v512_v47  ;;  %v5643_v45 = vld [vmem:[%s9367_s11 + $0x30] sm:$0xf]  ;;  %v7085_v47 = vld [vmem:[%s9367_s11 + $0x14] sm:$0xf] }
 0x125   :  { %v452_v7 = vpop.f32.mrf.mxu0 }
 0x126   :  { %v453_v35 = vadd.f32 %v8127_v36, %v452_v7 }
 0x128   :  { %5614 = vmatmul.msk.bf16.gmra.mxu0 %vm370_vm2, %v358_v6  ;;  %v514_v42 = vmax.f32 %v453_v35, 0.0 }
 0x12d   :  { %v454_v8 = vpop.f32.mrf.mxu0 }
 0x12e   :  { %v455_v32 = vadd.f32 %v8127_v36, %v454_v8 }
 0x130   :  { %v515_v39 = vmax.f32 %v455_v32, 0.0 }
 0x132   :  { %v611_v46 = vpack.c.bf16 %v515_v39, %v514_v42  ;;  %v7088_v39 = vld [vmem:[%s9367_s11 + $0x24] sm:$0xf0] }
 0x135   :  { %v457_v12 = vpop.f32.mrf.mxu0 }
 0x136   :  { %v458_v29 = vadd.f32 %v8127_v36, %v457_v12 }
 0x138   :  { %5615 = vmatmul.msk.bf16.gmra.mxu0 %vm370_vm2, %v359_v11  ;;  %v516_v37 = vmax.f32 %v458_v29, 0.0 }
 0x13d   :  { %v459_v13 = vpop.f32.mrf.mxu0 }
 0x13e   :  { %v460_v26 = vadd.f32 %v8127_v36, %v459_v13 }
 0x140   :  { %v517_v33 = vmax.f32 %v460_v26, 0.0 }
 0x142   :  { %v612_v40 = vpack.c.bf16 %v517_v33, %v516_v37 }
 0x145   :  { %v462_v16 = vpop.f32.mrf.mxu0 }
 0x146   :  { %v463_v23 = vadd.f32 %v8127_v36, %v462_v16 }
 0x148   :  { %5616 = vmatmul.msk.bf16.gmra.mxu0 %vm370_vm2, %v360_v15  ;;  %v518_v30 = vmax.f32 %v463_v23, 0.0  ;;  %v7086_v15 = vld [vmem:[%s9367_s11 + $0x14] sm:$0xf0] }
 0x14d   :  { %v464_v17 = vpop.f32.mrf.mxu0 }
 0x14e   :  { %v465_v21 = vadd.f32 %v8127_v36, %v464_v17 }
 0x150   :  { %v519_v27 = vmax.f32 %v465_v21, 0.0 }
 0x152   :  { %v613_v34 = vpack.c.bf16 %v519_v27, %v518_v30 }
 0x155   :  { %v467_v18 = vpop.f32.mrf.mxu0 }
 0x156   :  { %v468_v19 = vadd.f32 %v8127_v36, %v467_v18  ;;  %v5628_v18 = vor.u32 %v7086_v15, %v5627_v14 }
 0x158   :  { %v520_v24 = vmax.f32 %v468_v19, 0.0 }
 0x15d   :  { %v469_v20 = vpop.f32.mrf.mxu0 }
 0x15e   :  { %v470_v22 = vadd.f32 %v8127_v36, %v469_v20 }
 0x160   :  { %v521_v25 = vmax.f32 %v470_v22, 0.0 }
 0x162   :  { %v614_v28 = vpack.c.bf16 %v521_v25, %v520_v24 }
 0x164   :  { %1061 = vmatpush.bf16.msra.mxu1 %v614_v28 }
 0x165   :  { %v8185_v31 = vpop.f32.mrf.mxu0 }
 0x166   :  { %v473_v33 = vadd.f32 %v8127_v36, %v8185_v31  ;;  %v5636_v31 = vor.u32 %v7088_v39, %v5635_v38  ;;  %v7101_v38 = vld [vmem:[%s9367_s11 + $0x94] sm:$0xf]  ;;  %v5693_v39 = vld [vmem:[%s9367_s11 + $0x98] sm:$0xf0] }
 0x168   :  { %1062 = vmatpush.bf16.msra.mxu1 %v613_v34 }
 0x16c   :  { %1063 = vmatpush.bf16.msra.mxu1 %v612_v40  ;;  %v522_v40 = vmax.f32 %v473_v33, 0.0 }
 0x16d   :  { %v8191_v43 = vpop.f32.mrf.mxu0 }
 0x16e   :  { %v475_v29 = vadd.f32 %v8127_v36, %v8191_v43 }
 0x170   :  { %1064 = vmatpush.bf16.msra.mxu1 %v611_v46  ;;  %v523_v35 = vmax.f32 %v475_v29, 0.0  ;;  %v7090_v46 = vld [vmem:[%s9367_s11 + $0x34] sm:$0xf0] }
 0x172   :  { %v615_v42 = vpack.c.bf16 %v523_v35, %v522_v40 }
 0x174   :  { %1065 = vmatpush.bf16.msra.mxu1 %v610_v48  ;;  %v5629_v48 = vld [vmem:[%s9367_s11 + $0x18] sm:$0xf0] }
 0x175   :  { %v477_v49 = vpop.f32.mrf.mxu0 }
 0x176   :  { %v478_v27 = vadd.f32 %v8127_v36, %v477_v49  ;;  %v5644_v49 = vor.u32 %v7090_v46, %v5643_v45  ;;  %v5696_v45 = vor.u32 %v7101_v38, %v5693_v39 }
 0x178   :  { %1066 = vmatpush.bf16.msra.mxu1 %v609_v0  ;;  %v524_v34 = vmax.f32 %v478_v27, 0.0  ;;  %v7099_v27 = vld [vmem:[%s9367_s11 + $0x84] sm:$0xf] }
 0x17c   :  { %1067 = vmatpush.bf16.msra.mxu1 %v8149_v54  ;;  %v7084_v54 = vld [vmem:[%s9367_s11 + $0x4] sm:$0xf0] }
 0x17d   :  { %v479_v50 = vpop.f32.mrf.mxu0 }
 0x17e   :  { %v480_v24 = vadd.f32 %v8127_v36, %v479_v50  ;;  %v5632_v50 = vor.u32 %v7085_v47, %v5629_v48 }
 0x180   :  { %1068 = vmatpush.bf16.msra.mxu1 %v8138_v44  ;;  %v5620_v44 = vor.u32 %v7084_v54, %v5619_v61  ;;  %v525_v30 = vmax.f32 %v480_v24, 0.0  ;;  %v5645_v61 = vld [vmem:[%s9367_s11 + $0x38] sm:$0xf0] }
 0x182   :  { %v616_v37 = vpack.c.bf16 %v525_v30, %v524_v34  ;;  %v5699_v30 = vld [vmem:[%s9367_s11 + $0xa0] sm:$0xf] }
 0x183   :  { %1069 = vmatmul.bf16.vlgmr.msra.gmra.mxu1 %v5620_v44  ;;  %v5667_v44 = vld [vmem:[%s9367_s11 + $0x60] sm:$0xf] }
 0x185   :  { %v482_v51 = vpop.f32.mrf.mxu0 }
 0x186   :  { %v483_v22 = vadd.f32 %v8127_v36, %v482_v51  ;;  %v5651_v51 = vld [vmem:[%s9367_s11 + $0x40] sm:$0xf] }
 0x188   :  { %v526_v28 = vmax.f32 %v483_v22, 0.0  ;;  %v5691_v22 = vld [vmem:[%s9367_s11 + $0x90] sm:$0xf] }
 0x18d   :  { %v484_v52 = vpop.f32.mrf.mxu0 }
 0x18e   :  { %v485_v19 = vadd.f32 %v8127_v36, %v484_v52  ;;  %v7092_v52 = vld [vmem:[%s9367_s11 + $0x44] sm:$0xf0] }
 0x190   :  { %v527_v25 = vmax.f32 %v485_v19, 0.0  ;;  %v5677_v19 = vld [vmem:[%s9367_s11 + $0x78] sm:$0xf0] }
 0x192   :  { %v617_v32 = vpack.c.bf16 %v527_v25, %v526_v28  ;;  %v5685_v28 = vld [vmem:[%s9367_s11 + $0x88] sm:$0xf0] }
 0x193   :  { %1074 = vmatmul.bf16.gmra.mxu1 %v5628_v18  ;;  %v7097_v18 = vld [vmem:[%s9367_s11 + $0x74] sm:$0xf]  ;;  %v5688_v33 = vor.u32 %v7099_v27, %v5685_v28 }
 0x194   :  { %v5680_v24 = vor.u32 %v7097_v18, %v5677_v19 }
 0x195   :  { %v487_v53 = vpop.f32.mrf.mxu0 }
 0x196   :  { %v488_v16 = vadd.f32 %v8127_v36, %v487_v53  ;;  %v7087_v53 = vld [vmem:[%s9367_s11 + $0x24] sm:$0xf] }
 0x198   :  { %v528_v23 = vmax.f32 %v488_v16, 0.0 }
 0x19d   :  { %v489_v55 = vpop.f32.mrf.mxu0 }
 0x19e   :  { %v490_v11 = vadd.f32 %v8127_v36, %v489_v55  ;;  %v5637_v55 = vld [vmem:[%s9367_s11 + $0x28] sm:$0xf0] }
 0x19f   :  { %v5640_v57 = vor.u32 %v7087_v53, %v5637_v55  ;;  %v5715_v55 = vld [vmem:[%s9367_s11 + $0xc0] sm:$0xf] }
 0x1a0   :  { %v529_v20 = vmax.f32 %v490_v11, 0.0  ;;  %v7100_v11 = vld [vmem:[%s9367_s11 + $0x84] sm:$0xf0] }
 0x1a2   :  { %v618_v26 = vpack.c.bf16 %v529_v20, %v528_v23  ;;  %v7102_v23 = vld [vmem:[%s9367_s11 + $0x94] sm:$0xf0] }
 0x1a3   :  { %1079 = vmatmul.bf16.gmra.mxu1 %v5636_v31  ;;  %v5692_v25 = vor.u32 %v7102_v23, %v5691_v22  ;;  %v7106_v31 = vld [vmem:[%s9367_s11 + $0xb4] sm:$0xf0] }
 0x1a5   :  { %v492_v56 = vpop.f32.mrf.mxu0 }
 0x1a6   :  { %v493_v9 = vadd.f32 %v8127_v36, %v492_v56  ;;  %v5652_v56 = vor.u32 %v7092_v52, %v5651_v51  ;;  %v5701_v51 = vld [vmem:[%s9367_s11 + $0xa8] sm:$0xf0] }
 0x1a8   :  { %v530_v17 = vmax.f32 %v493_v9, 0.0 }
 0x1ad   :  { %v494_v58 = vpop.f32.mrf.mxu0 }
 0x1ae   :  { %v495_v5 = vadd.f32 %v8127_v36, %v494_v58  ;;  %v5659_v58 = vld [vmem:[%s9367_s11 + $0x50] sm:$0xf] }
 0x1b0   :  { %v531_v12 = vmax.f32 %v495_v5, 0.0  ;;  %v7098_v5 = vld [vmem:[%s9367_s11 + $0x74] sm:$0xf0] }
 0x1b2   :  { %v619_v21 = vpack.c.bf16 %v531_v12, %v530_v17  ;;  %v7095_v12 = vld [vmem:[%s9367_s11 + $0x64] sm:$0xf] }
 0x1b3   :  { %1084 = vmatmul.bf16.gmra.mxu1 %v5644_v49 }
 0x1b5   :  { %v497_v59 = vpop.f32.mrf.mxu0 }
 0x1b6   :  { %v498_v3 = vadd.f32 %v8127_v36, %v497_v59  ;;  %v7094_v59 = vld [vmem:[%s9367_s11 + $0x54] sm:$0xf0] }
 0x1b7   :  { %v5660_v54 = vor.u32 %v7094_v59, %v5659_v58 }
 0x1b8   :  { %v532_v10 = vmax.f32 %v498_v3, 0.0 }
 0x1bd   :  { %v499_v60 = vpop.f32.mrf.mxu0 }
 0x1be   :  { %v500_v0 = vadd.f32 %v8127_v36, %v499_v60  ;;  %v7089_v60 = vld [vmem:[%s9367_s11 + $0x34] sm:$0xf] }
 0x1c0   :  { %v533_v6 = vmax.f32 %v500_v0, 0.0  ;;  %v7091_v0 = vld [vmem:[%s9367_s11 + $0x44] sm:$0xf] }
 0x1c2   :  { %v620_v13 = vpack.c.bf16 %v533_v6, %v532_v10  ;;  %v7093_v6 = vld [vmem:[%s9367_s11 + $0x54] sm:$0xf]  ;;  %v5683_v10 = vld [vmem:[%s9367_s11 + $0x80] sm:$0xf] }
 0x1c3   :  { %1089 = vmatmul.bf16.gmra.mxu1 %v5652_v56  ;;  %v5684_v14 = vor.u32 %v7100_v11, %v5683_v10  ;;  %v7108_v56 = vld [vmem:[%s9367_s11 + $0xc4] sm:$0xf0] }
 0x1c5   :  { %v502_v62 = vpop.f32.mrf.mxu0 }
 0x1c6   :  { %v503_v63 = vadd.f32 %v8127_v36, %v502_v62  ;;  %v5621_v36 = vld [vmem:[%s9367_s11 + $0x8] sm:$0xf0]  ;;  %v5648_v62 = vor.u32 %v7089_v60, %v5645_v61  ;;  %v5716_v60 = vor.u32 %v7108_v56, %v5715_v55 }
 0x1c7   :  { %v5624_v43 = vor.u32 %v7083_v41, %v5621_v36  ;;  %v5707_v36 = vld [vmem:[%s9367_s11 + $0xb0] sm:$0xf] }
 0x1c8   :  { %v534_v1 = vmax.f32 %v503_v63, 0.0  ;;  %v7096_v63 = vld [vmem:[%s9367_s11 + $0x64] sm:$0xf0]  ;;  %v5708_v46 = vor.u32 %v7106_v31, %v5707_v36 }
 0x1ca   :  { %v621_v4 = vpack.c.bf16 %v534_v1, %v534_v1  ;;  %v5653_v1 = vld [vmem:[%s9367_s11 + $0x48] sm:$0xf0] }
 0x1cb   :  { %v5656_v3 = vor.u32 %v7091_v0, %v5653_v1 }
 0x1cc   :  { %v1059_v7 = vand.u32 %v1057_v2, %v621_v4  ;;  %v5668_v2 = vor.u32 %v7096_v63, %v5667_v44  ;;  %v5675_v4 = vld [vmem:[%s9367_s11 + $0x70] sm:$0xf]  ;;  %v7105_v44 = vld [vmem:[%s9367_s11 + $0xb4] sm:$0xf]  ;;  %v5709_v63 = vld [vmem:[%s9367_s11 + $0xb8] sm:$0xf0] }
 0x1cd   :  { %v504_v8 = vpop.f32.mrf.mxu0 }
 0x1ce   :  { %1251 = vmatpush.bf16.msra.mxu2 %v1059_v7  ;;  %v5661_v7 = vld [vmem:[%s9367_s11 + $0x58] sm:$0xf0]  ;;  %v5676_v8 = vor.u32 %v7098_v5, %v5675_v4  ;;  %v7110_v4 = vld [vmem:[%s9367_s11 + $0xd4] sm:$0xf0] }
 0x1cf   :  { %v5664_v9 = vor.u32 %v7093_v6, %v5661_v7  ;;  %v5712_v7 = vor.u32 %v7105_v44, %v5709_v63 }
 0x1d2   :  { %1252 = vmatpush.bf16.msra.mxu2 %v620_v13  ;;  %v5669_v13 = vld [vmem:[%s9367_s11 + $0x68] sm:$0xf0] }
 0x1d3   :  { %1094 = vmatmul.bf16.gmra.mxu1 %v5660_v54  ;;  %v5672_v16 = vor.u32 %v7095_v12, %v5669_v13  ;;  %v7107_v12 = vld [vmem:[%s9367_s11 + $0xc4] sm:$0xf]  ;;  %v5717_v13 = vld [vmem:[%s9367_s11 + $0xc8] sm:$0xf0] }
 0x1d6   :  { %1253 = vmatpush.bf16.msra.mxu2 %v619_v21  ;;  %v7155_v21 = vld [vmem:[#allocation7] sm:$0xff] }
 0x1d7   :  { %1472 = vmatpush.bf16.msra.mxu3 %v7155_v21 }
 0x1da   :  { %1254 = vmatpush.bf16.msra.mxu2 %v618_v26 }
 0x1de   :  { %1255 = vmatpush.bf16.msra.mxu2 %v617_v32  ;;  %v7104_v32 = vld [vmem:[%s9367_s11 + $0xa4] sm:$0xf0] }
 0x1df   :  { %v5700_v34 = vor.u32 %v7104_v32, %v5699_v30  ;;  %v7114_v30 = vld [vmem:[%s9367_s11 + $0xf4] sm:$0xf0] }
 0x1e2   :  { %1256 = vmatpush.bf16.msra.mxu2 %v616_v37 }
 0x1e3   :  { %1099 = vmatmul.bf16.gmra.mxu1 %v5668_v2  ;;  %v7156_v2 = vld [vmem:[#allocation7 + $0x8] sm:$0xff] }
 0x1e4   :  { %1537 = vmatpush.bf16.msrb.mxu3 %v7156_v2  ;;  %v5749_v2 = vld [vmem:[%s9367_s11 + $0x108] sm:$0xf0] }
 0x1e6   :  { %1257 = vmatpush.bf16.msra.mxu2 %v615_v42 }
 0x1e9   :  { %5905 = vmatmul.msk.bf16.vlgmr.msra.gmra.mxu2 %vm946_vm4, %v5624_v43 }
 0x1f3   :  { %1104 = vmatmul.bf16.gmra.mxu1 %v5676_v8 }
 0x1f9   :  { %5906 = vmatmul.msk.bf16.gmra.mxu2 %vm946_vm4, %v5632_v50  ;;  %v7103_v50 = vld [vmem:[%s9367_s11 + $0xa4] sm:$0xf] }
 0x1fa   :  { %v5704_v59 = vor.u32 %v7103_v50, %v5701_v51 }
 0x200   :  { %v1070_v15 = vpop.f32.mrf.mxu1 }
 0x203   :  { %1109 = vmatmul.bf16.gmra.mxu1 %v5684_v14 }
 0x208   :  { %v1072_v17 = vpop.f32.mrf.mxu1 }
 0x209   :  { %5907 = vmatmul.msk.bf16.gmra.mxu2 %vm946_vm4, %v5640_v57 }
 0x210   :  { %v1075_v20 = vpop.f32.mrf.mxu1 }
 0x213   :  { %1114 = vmatmul.bf16.gmra.mxu1 %v5692_v25  ;;  %v7109_v25 = vld [vmem:[%s9367_s11 + $0xd4] sm:$0xf] }
 0x218   :  { %v1077_v26 = vpop.f32.mrf.mxu1 }
 0x219   :  { %5908 = vmatmul.msk.bf16.gmra.mxu2 %vm946_vm4, %v5648_v62 }
 0x220   :  { %v1080_v29 = vpop.f32.mrf.mxu1 }
 0x223   :  { %1119 = vmatmul.bf16.gmra.mxu1 %v5700_v34 }
 0x228   :  { %v1082_v37 = vpop.f32.mrf.mxu1 }
 0x229   :  { %5909 = vmatmul.msk.bf16.gmra.mxu2 %vm946_vm4, %v5656_v3  ;;  %v5723_v3 = vld [vmem:[%s9367_s11 + $0xd0] sm:$0xf] }
 0x22a   :  { %v5724_v8 = vor.u32 %v7110_v4, %v5723_v3 }
 0x230   :  { %v1085_v41 = vpop.f32.mrf.mxu1 }
 0x233   :  { %1124 = vmatmul.bf16.gmra.mxu1 %v5708_v46 }
 0x238   :  { %v1087_v49 = vpop.f32.mrf.mxu1 }
 0x239   :  { %5910 = vmatmul.msk.bf16.gmra.mxu2 %vm946_vm4, %v5664_v9 }
 0x240   :  { %v1090_v53 = vpop.f32.mrf.mxu1 }
 0x243   :  { %1129 = vmatmul.bf16.gmra.mxu1 %v5716_v60 }
 0x248   :  { %v1092_v62 = vpop.f32.mrf.mxu1 }
 0x249   :  { %5911 = vmatmul.msk.bf16.gmra.mxu2 %vm946_vm4, %v5672_v16  ;;  %v5731_v16 = vld [vmem:[%s9367_s11 + $0xe0] sm:$0xf] }
 0x250   :  { %v1095_v1 = vpop.f32.mrf.mxu1 }
 0x253   :  { %1134 = vmatmul.bf16.gmra.mxu1 %v5724_v8 }
 0x258   :  { %v1097_v11 = vpop.f32.mrf.mxu1 }
 0x259   :  { %5912 = vmatmul.msk.bf16.gmra.mxu2 %vm946_vm4, %v5680_v24 }
 0x269   :  { %5913 = vmatmul.msk.bf16.gmra.mxu2 %vm946_vm4, %v5688_v33 }
 0x26c   :  { %v1259_v35 = vpop.f32.mrf.mxu2 }
 0x26d   :  { %v1260_v42 = vadd.f32 %v1259_v35, %v1070_v15  ;;  %v1100_v15 = vpop.f32.mrf.mxu1 }
 0x274   :  { %v1261_v40 = vpop.f32.mrf.mxu2 }
 0x275   :  { %v1262_v43 = vadd.f32 %v1261_v40, %v1072_v17  ;;  %v7112_v17 = vld [vmem:[%s9367_s11 + $0xe4] sm:$0xf0]  ;;  %v1102_v24 = vpop.f32.mrf.mxu1  ;;  %v7111_v40 = vld [vmem:[%s9367_s11 + $0xe4] sm:$0xf] }
 0x276   :  { %v5732_v21 = vor.u32 %v7112_v17, %v5731_v16  ;;  %v5757_v16 = vld [vmem:[%s9367_s11 + $0x118] sm:$0xf0] }
 0x277   :  { %v1442_v47 = vpack.c.bf16 %v1262_v43, %v1260_v42  ;;  %v5747_v42 = vld [vmem:[%s9367_s11 + $0x100] sm:$0xf]  ;;  %v7116_v43 = vld [vmem:[%s9367_s11 + $0x104] sm:$0xf0] }
 0x278   :  { %1139 = vmatmul.bf16.gmra.mxu1 %v5732_v21 }
 0x279   :  { %5914 = vmatmul.msk.bf16.gmra.mxu2 %vm946_vm4, %v5696_v45  ;;  %5945 = vmatmul.msk.bf16.vlgmr.msra.gmra.mxu3 %vm1452_vm5, %v1442_v47 }
 0x27c   :  { %v1264_v48 = vpop.f32.mrf.mxu2 }
 0x27d   :  { %v1265_v57 = vadd.f32 %v1264_v48, %v1075_v20  ;;  %v5720_v20 = vor.u32 %v7107_v12, %v5717_v13  ;;  %v1105_v28 = vpop.f32.mrf.mxu1  ;;  %v5748_v48 = vor.u32 %v7116_v43, %v5747_v42  ;;  %v7159_v12 = vld [vmem:[#allocation7 + $0x20] sm:$0xff] }
 0x27e   :  { %1723 = vmatpush.bf16.msrb.mxu0 %v7159_v12  ;;  %v5789_v12 = vld [vmem:[%s9367_s11 + $0x158] sm:$0xf0] }
 0x284   :  { %v1266_v52 = vpop.f32.mrf.mxu2 }
 0x285   :  { %v1267_v58 = vadd.f32 %v1266_v52, %v1077_v26  ;;  %v5725_v26 = vld [vmem:[%s9367_s11 + $0xd8] sm:$0xf0]  ;;  %v1107_v39 = vpop.f32.mrf.mxu1  ;;  %v7113_v52 = vld [vmem:[%s9367_s11 + $0xf4] sm:$0xf] }
 0x286   :  { %v5728_v34 = vor.u32 %v7109_v25, %v5725_v26 }
 0x287   :  { %v1443_v61 = vpack.c.bf16 %v1267_v58, %v1265_v57  ;;  %v7157_v57 = vld [vmem:[#allocation7 + $0x10] sm:$0xff]  ;;  %v5755_v58 = vld [vmem:[%s9367_s11 + $0x110] sm:$0xf] }
 0x288   :  { %1599 = vmatpush.bf16.msra.mxu3 %v7157_v57 }
 0x289   :  { %5915 = vmatmul.msk.bf16.gmra.mxu2 %vm946_vm4, %v5704_v59  ;;  %5946 = vmatmul.msk.bf16.gmra.mxu3 %vm1452_vm5, %v1443_v61  ;;  %v7118_v59 = vld [vmem:[%s9367_s11 + $0x114] sm:$0xf0] }
 0x28c   :  { %v1269_v54 = vpop.f32.mrf.mxu2 }
 0x28d   :  { %v1270_v5 = vadd.f32 %v1269_v54, %v1080_v29  ;;  %v5739_v29 = vld [vmem:[%s9367_s11 + $0xf0] sm:$0xf]  ;;  %v1110_v31 = vpop.f32.mrf.mxu1 }
 0x28e   :  { %v5740_v35 = vor.u32 %v7114_v30, %v5739_v29  ;;  %v7119_v29 = vld [vmem:[%s9367_s11 + $0x124] sm:$0xf]  ;;  %v5765_v30 = vld [vmem:[%s9367_s11 + $0x128] sm:$0xf0] }
 0x290   :  { %1144 = vmatmul.bf16.gmra.mxu1 %v5740_v35  ;;  %v7124_v35 = vld [vmem:[%s9367_s11 + $0x144] sm:$0xf0] }
 0x294   :  { %v1271_v0 = vpop.f32.mrf.mxu2 }
 0x295   :  { %v1272_v6 = vadd.f32 %v1271_v0, %v1082_v37  ;;  %v1112_v51 = vpop.f32.mrf.mxu1 }
 0x297   :  { %v1444_v9 = vpack.c.bf16 %v1272_v6, %v1270_v5  ;;  %v5763_v5 = vld [vmem:[%s9367_s11 + $0x120] sm:$0xf]  ;;  %v7120_v6 = vld [vmem:[%s9367_s11 + $0x124] sm:$0xf0] }
 0x299   :  { %5916 = vmatmul.msk.bf16.gmra.mxu2 %vm946_vm4, %v5712_v7  ;;  %5947 = vmatmul.msk.bf16.gmra.mxu3 %vm1452_vm5, %v1444_v9 }
 0x29c   :  { %v1274_v10 = vpop.f32.mrf.mxu2 }
 0x29d   :  { %v1275_v18 = vadd.f32 %v1274_v10, %v1085_v41  ;;  %v5733_v41 = vld [vmem:[%s9367_s11 + $0xe8] sm:$0xf0]  ;;  %v1115_v56 = vpop.f32.mrf.mxu1  ;;  %v5764_v10 = vor.u32 %v7120_v6, %v5763_v5 }
 0x29e   :  { %v5736_v47 = vor.u32 %v7111_v40, %v5733_v41 }
 0x2a0   :  { %1149 = vmatmul.bf16.gmra.mxu1 %v5748_v48 }
 0x2a4   :  { %v1276_v14 = vpop.f32.mrf.mxu2 }
 0x2a5   :  { %v1277_v19 = vadd.f32 %v1276_v14, %v1087_v49  ;;  %v1117_v0 = vpop.f32.mrf.mxu1 }
 0x2a7   :  { %v1445_v22 = vpack.c.bf16 %v1277_v19, %v1275_v18  ;;  %v5771_v19 = vld [vmem:[%s9367_s11 + $0x130] sm:$0xf] }
 0x2a9   :  { %5917 = vmatmul.msk.bf16.gmra.mxu2 %vm946_vm4, %v5720_v20  ;;  %5948 = vmatmul.msk.bf16.gmra.mxu3 %vm1452_vm5, %v1445_v22  ;;  %v7122_v20 = vld [vmem:[%s9367_s11 + $0x134] sm:$0xf0] }
 0x2ac   :  { %v1279_v23 = vpop.f32.mrf.mxu2 }
 0x2ad   :  { %v1280_v32 = vadd.f32 %v1279_v23, %v1090_v53  ;;  %v5741_v53 = vld [vmem:[%s9367_s11 + $0xf8] sm:$0xf0]  ;;  %v1120_v4 = vpop.f32.mrf.mxu1 }
 0x2ae   :  { %v5744_v54 = vor.u32 %v7113_v52, %v5741_v53 }
 0x2b4   :  { %v1281_v27 = vpop.f32.mrf.mxu2 }
 0x2b5   :  { %v1282_v33 = vadd.f32 %v1281_v27, %v1092_v62  ;;  %v5756_v62 = vor.u32 %v7118_v59, %v5755_v58  ;;  %v1122_v14 = vpop.f32.mrf.mxu1 }
 0x2b7   :  { %v1508_v37 = vpack.c.bf16 %v1282_v33, %v1280_v32  ;;  %1154 = vmatmul.bf16.gmra.mxu1 %v5756_v62  ;;  %v5781_v62 = vld [vmem:[%s9367_s11 + $0x148] sm:$0xf0] }
 0x2b9   :  { %5918 = vmatmul.msk.bf16.gmra.mxu2 %vm946_vm4, %v5728_v34  ;;  %5953 = vmatmul.msk.bf16.vlgmr.msrb.gmra.mxu3 %vm1452_vm5, %v1508_v37  ;;  %v5779_v34 = vld [vmem:[%s9367_s11 + $0x140] sm:$0xf] }
 0x2ba   :  { %v5780_v41 = vor.u32 %v7124_v35, %v5779_v34 }
 0x2bc   :  { %v1284_v38 = vpop.f32.mrf.mxu2 }
 0x2bd   :  { %v1285_v45 = vadd.f32 %v1284_v38, %v1095_v1  ;;  %v7115_v1 = vld [vmem:[%s9367_s11 + $0x104] sm:$0xf]  ;;  %v1125_v18 = vpop.f32.mrf.mxu1 }
 0x2be   :  { %v5752_v9 = vor.u32 %v7115_v1, %v5749_v2  ;;  %v7128_v1 = vld [vmem:[%s9367_s11 + $0x164] sm:$0xf0] }
 0x2c4   :  { %v1286_v36 = vpop.f32.mrf.mxu2 }
 0x2c5   :  { %v1287_v46 = vadd.f32 %v1286_v36, %v1097_v11 }
 0x2c7   :  { %v1509_v49 = vpack.c.bf16 %v1287_v46, %v1285_v45  ;;  %1159 = vmatmul.bf16.gmra.mxu1 %v5764_v10  ;;  %v7121_v45 = vld [vmem:[%s9367_s11 + $0x134] sm:$0xf]  ;;  %v5773_v46 = vld [vmem:[%s9367_s11 + $0x138] sm:$0xf0] }
 0x2c9   :  { %5919 = vmatmul.msk.bf16.gmra.mxu2 %vm946_vm4, %v5736_v47  ;;  %5954 = vmatmul.msk.bf16.gmra.mxu3 %vm1452_vm5, %v1509_v49  ;;  %v7158_v49 = vld [vmem:[#allocation7 + $0x18] sm:$0xff] }
 0x2ca   :  { %1661 = vmatpush.bf16.msrb.mxu3 %v7158_v49 }
 0x2cc   :  { %v1289_v50 = vpop.f32.mrf.mxu2 }
 0x2cd   :  { %v1290_v60 = vadd.f32 %v1289_v50, %v1100_v15  ;;  %v7117_v15 = vld [vmem:[%s9367_s11 + $0x114] sm:$0xf]  ;;  %v5787_v50 = vld [vmem:[%s9367_s11 + $0x150] sm:$0xf] }
 0x2ce   :  { %v5760_v23 = vor.u32 %v7117_v15, %v5757_v16  ;;  %v5803_v15 = vld [vmem:[%s9367_s11 + $0x170] sm:$0xf]  ;;  %v7130_v16 = vld [vmem:[%s9367_s11 + $0x174] sm:$0xf0] }
 0x2d4   :  { %v1291_v55 = vpop.f32.mrf.mxu2 }
 0x2d5   :  { %v1292_v61 = vadd.f32 %v1291_v55, %v1102_v24  ;;  %v5772_v24 = vor.u32 %v7122_v20, %v5771_v19  ;;  %v5776_v55 = vor.u32 %v7121_v45, %v5773_v46 }
 0x2d7   :  { %v1510_v44 = vpack.c.bf16 %v1292_v61, %v1290_v60  ;;  %1164 = vmatmul.bf16.gmra.mxu1 %v5772_v24 }
 0x2d9   :  { %5920 = vmatmul.msk.bf16.gmra.mxu2 %vm946_vm4, %v5744_v54  ;;  %5955 = vmatmul.msk.bf16.gmra.mxu3 %vm1452_vm5, %v1510_v44  ;;  %v7123_v54 = vld [vmem:[%s9367_s11 + $0x144] sm:$0xf] }
 0x2dc   :  { %v1294_v63 = vpop.f32.mrf.mxu2 }
 0x2dd   :  { %v1295_v7 = vadd.f32 %v1294_v63, %v1105_v28  ;;  %v1127_v28 = vpop.f32.mrf.mxu1 }
 0x2e4   :  { %v1296_v3 = vpop.f32.mrf.mxu2 }
 0x2e5   :  { %v1297_v8 = vadd.f32 %v1296_v3, %v1107_v39  ;;  %v5768_v39 = vor.u32 %v7119_v29, %v5765_v30  ;;  %v1130_v40 = vpop.f32.mrf.mxu1  ;;  %v7127_v30 = vld [vmem:[%s9367_s11 + $0x164] sm:$0xf] }
 0x2e7   :  { %v1511_v11 = vpack.c.bf16 %v1297_v8, %v1295_v7  ;;  %1169 = vmatmul.bf16.gmra.mxu1 %v5780_v41 }
 0x2e9   :  { %5921 = vmatmul.msk.bf16.gmra.mxu2 %vm946_vm4, %v5752_v9  ;;  %5956 = vmatmul.msk.bf16.gmra.mxu3 %vm1452_vm5, %v1511_v11  ;;  %v7125_v11 = vld [vmem:[%s9367_s11 + $0x154] sm:$0xf] }
 0x2ea   :  { %v5792_v19 = vor.u32 %v7125_v11, %v5789_v12 }
 0x2ec   :  { %v1299_v13 = vpop.f32.mrf.mxu2 }
 0x2ed   :  { %v1300_v21 = vadd.f32 %v1299_v13, %v1110_v31  ;;  %v1132_v43 = vpop.f32.mrf.mxu1 }
 0x2f4   :  { %v1301_v17 = vpop.f32.mrf.mxu2 }
 0x2f5   :  { %v1302_v22 = vadd.f32 %v1301_v17, %v1112_v51  ;;  %v7126_v51 = vld [vmem:[%s9367_s11 + $0x154] sm:$0xf0] }
 0x2f6   :  { %v5788_v57 = vor.u32 %v7126_v51, %v5787_v50  ;;  %v7129_v50 = vld [vmem:[%s9367_s11 + $0x174] sm:$0xf]  ;;  %v5805_v51 = vld [vmem:[%s9367_s11 + $0x178] sm:$0xf0] }
 0x2f7   :  { %v1570_v25 = vpack.c.bf16 %v1302_v22, %v1300_v21  ;;  %v5804_v21 = vor.u32 %v7130_v16, %v5803_v15  ;;  %v8536_v22 = vld [vmem:[#allocation9] ss:$0 sm:$0xff] }
 0x2f8   :  { %1174 = vmatmul.bf16.gmra.mxu1 %v5788_v57 }
 0x2f9   :  { %5922 = vmatmul.msk.bf16.gmra.mxu2 %vm946_vm4, %v5760_v23  ;;  %5961 = vmatmul.msk.bf16.vlgmr.msra.gmra.mxu3 %vm1452_vm5, %v1570_v25 }
 0x2fc   :  { %v1304_v26 = vpop.f32.mrf.mxu2  ;;  %v8466_v27 = vpop.f32.mrf.mxu3 }
 0x2fd   :  { %v1305_v37 = vadd.f32 %v1304_v26, %v1115_v56  ;;  %v1135_v56 = vpop.f32.mrf.mxu1  ;;  %v1497_v24 = vadd.f32 %v8536_v22, %v8466_v27  ;;  %v5811_v27 = vld [vmem:[%s9367_s11 + $0x180] sm:$0xf] }
 0x304   :  { %v1306_v32 = vpop.f32.mrf.mxu2  ;;  %v8474_v33 = vpop.f32.mrf.mxu3 }
 0x305   :  { %v1307_v38 = vadd.f32 %v1306_v32, %v1117_v0  ;;  %v1137_v61 = vpop.f32.mrf.mxu1  ;;  %v5795_v0 = vld [vmem:[%s9367_s11 + $0x160] sm:$0xf]  ;;  %v5797_v32 = vld [vmem:[%s9367_s11 + $0x168] sm:$0xf0] }
 0x306   :  { %v5796_v6 = vor.u32 %v7128_v1, %v5795_v0 }
 0x307   :  { %v1571_v36 = vpack.c.bf16 %v1307_v38, %v1305_v37  ;;  %v7132_v37 = vld [vmem:[%s9367_s11 + $0x184] sm:$0xf0] }
 0x308   :  { %1179 = vmatmul.bf16.gmra.mxu1 %v5796_v6 }
 0x309   :  { %5923 = vmatmul.msk.bf16.gmra.mxu2 %vm946_vm4, %v5768_v39  ;;  %5962 = vmatmul.msk.bf16.gmra.mxu3 %vm1452_vm5, %v1571_v36  ;;  %v5812_v36 = vor.u32 %v7132_v37, %v5811_v27 }
 0x30c   :  { %v1309_v31 = vpop.f32.mrf.mxu2  ;;  %v8484_v42 = vpop.f32.mrf.mxu3 }
 0x30d   :  { %v1310_v52 = vadd.f32 %v1309_v31, %v1120_v4  ;;  %v5784_v4 = vor.u32 %v7123_v54, %v5781_v62  ;;  %v1140_v5 = vpop.f32.mrf.mxu1 }
 0x314   :  { %v1311_v47 = vpop.f32.mrf.mxu2  ;;  %v8492_v48 = vpop.f32.mrf.mxu3 }
 0x315   :  { %v1312_v53 = vadd.f32 %v1311_v47, %v1122_v14  ;;  %v1142_v10 = vpop.f32.mrf.mxu1 }
 0x317   :  { %v1572_v58 = vpack.c.bf16 %v1312_v53, %v1310_v52 }
 0x318   :  { %1184 = vmatmul.bf16.gmra.mxu1 %v5804_v21 }
 0x319   :  { %5924 = vmatmul.msk.bf16.gmra.mxu2 %vm946_vm4, %v5776_v55  ;;  %5963 = vmatmul.msk.bf16.gmra.mxu3 %vm1452_vm5, %v1572_v58  ;;  %v7134_v55 = vld [vmem:[%s9367_s11 + $0x194] sm:$0xf0]  ;;  %v5808_v58 = vor.u32 %v7129_v50, %v5805_v51 }
 0x31c   :  { %v1314_v59 = vpop.f32.mrf.mxu2  ;;  %v8502_v60 = vpop.f32.mrf.mxu3 }
 0x31d   :  { %v1315_v2 = vadd.f32 %v1314_v59, %v1125_v18  ;;  %v1145_v20 = vpop.f32.mrf.mxu1  ;;  %v1501_v62 = vadd.f32 %v8536_v22, %v8502_v60  ;;  %v5827_v60 = vld [vmem:[%s9367_s11 + $0x1a0] sm:$0xf] }
 0x324   :  { %v1316_v44 = vpop.f32.mrf.mxu2  ;;  %v8510_v63 = vpop.f32.mrf.mxu3 }
 0x325   :  { %v1317_v3 = vadd.f32 %v1316_v44, %v1127_v28  ;;  %v1147_v29 = vpop.f32.mrf.mxu1 }
 0x327   :  { %v1573_v7 = vpack.c.bf16 %v1317_v3, %v1315_v2  ;;  %v7131_v3 = vld [vmem:[%s9367_s11 + $0x184] sm:$0xf] }
 0x328   :  { %1189 = vmatmul.bf16.gmra.mxu1 %v5812_v36 }
 0x329   :  { %5925 = vmatmul.msk.bf16.gmra.mxu2 %vm946_vm4, %v5784_v4  ;;  %5964 = vmatmul.msk.bf16.gmra.mxu3 %vm1452_vm5, %v1573_v7  ;;  %v5813_v4 = vld [vmem:[%s9367_s11 + $0x188] sm:$0xf0]  ;;  %v7136_v7 = vld [vmem:[%s9367_s11 + $0x1a4] sm:$0xf0] }
 0x32a   :  { %v5816_v11 = vor.u32 %v7131_v3, %v5813_v4 }
 0x32c   :  { %v1319_v8 = vpop.f32.mrf.mxu2  ;;  %v8520_v9 = vpop.f32.mrf.mxu3 }
 0x32d   :  { %v1320_v17 = vadd.f32 %v1319_v8, %v1130_v40  ;;  %v5800_v40 = vor.u32 %v7127_v30, %v5797_v32  ;;  %v1150_v41 = vpop.f32.mrf.mxu1  ;;  %v1503_v16 = vadd.f32 %v8536_v22, %v8520_v9  ;;  %v5835_v9 = vld [vmem:[%s9367_s11 + $0x1b0] sm:$0xf] }
 0x334   :  { %v1321_v13 = vpop.f32.mrf.mxu2  ;;  %v8528_v14 = vpop.f32.mrf.mxu3 }
 0x335   :  { %v1322_v18 = vadd.f32 %v1321_v13, %v1132_v43  ;;  %v1499_v43 = vadd.f32 %v8536_v22, %v8484_v42  ;;  %v1152_v49 = vpop.f32.mrf.mxu1  ;;  %v5819_v42 = vld [vmem:[%s9367_s11 + $0x190] sm:$0xf]  ;;  %v5828_v13 = vor.u32 %v7136_v7, %v5827_v60 }
 0x337   :  { %v1632_v23 = vpack.c.bf16 %v1322_v18, %v1320_v17 }
 0x339   :  { %5926 = vmatmul.msk.bf16.gmra.mxu2 %vm946_vm4, %v5792_v19  ;;  %5969 = vmatmul.msk.bf16.vlgmr.msrb.gmra.mxu3 %vm1452_vm5, %v1632_v23  ;;  %v5821_v23 = vld [vmem:[%s9367_s11 + $0x198] sm:$0xf0] }
 0x33c   :  { %v1324_v25 = vpop.f32.mrf.mxu2  ;;  %v1539_v26 = vpop.f32.mrf.mxu3 }
 0x33d   :  { %v8542_v28 = vadd.f32 %v1539_v26, %v1497_v24  ;;  %v1325_v38 = vadd.f32 %v1324_v25, %v1135_v56  ;;  %v1155_v59 = vpop.f32.mrf.mxu1  ;;  %v7138_v26 = vld [vmem:[%s9367_s11 + $0x1b4] sm:$0xf0] }
 0x33e   :  { %v5836_v27 = vor.u32 %v7138_v26, %v5835_v9 }
 0x344   :  { %v1326_v34 = vpop.f32.mrf.mxu2  ;;  %v8550_v35 = vpop.f32.mrf.mxu3 }
 0x345   :  { %v1327_v39 = vadd.f32 %v1326_v34, %v1137_v61  ;;  %v5820_v61 = vor.u32 %v7134_v55, %v5819_v42  ;;  %v1157_v2 = vpop.f32.mrf.mxu1 }
 0x347   :  { %v1633_v31 = vpack.c.bf16 %v1327_v39, %v1325_v38  ;;  %1194 = vmatmul.bf16.gmra.mxu1 %v5820_v61 }
 0x349   :  { %5927 = vmatmul.msk.bf16.gmra.mxu2 %vm946_vm4, %v5800_v40  ;;  %5970 = vmatmul.msk.bf16.gmra.mxu3 %vm1452_vm5, %v1633_v31  ;;  %v5829_v31 = vld [vmem:[%s9367_s11 + $0x1a8] sm:$0xf0] }
 0x34c   :  { %v1329_v45 = vpop.f32.mrf.mxu2  ;;  %v1544_v46 = vpop.f32.mrf.mxu3 }
 0x34d   :  { %v8562_v47 = vadd.f32 %v1544_v46, %v1499_v43  ;;  %v1330_v56 = vadd.f32 %v1329_v45, %v1140_v5  ;;  %v1160_v12 = vpop.f32.mrf.mxu1  ;;  %v5843_v46 = vld [vmem:[%s9367_s11 + $0x1c0] sm:$0xf] }
 0x354   :  { %v1331_v52 = vpop.f32.mrf.mxu2  ;;  %v8570_v53 = vpop.f32.mrf.mxu3 }
 0x355   :  { %v1332_v57 = vadd.f32 %v1331_v52, %v1142_v10  ;;  %v1162_v21 = vpop.f32.mrf.mxu1 }
 0x357   :  { %v1634_v54 = vpack.c.bf16 %v1332_v57, %v1330_v56  ;;  %1199 = vmatmul.bf16.gmra.mxu1 %v5828_v13 }
 0x359   :  { %5928 = vmatmul.msk.bf16.gmra.mxu2 %vm946_vm4, %v5808_v58  ;;  %5971 = vmatmul.msk.bf16.gmra.mxu3 %vm1452_vm5, %v1634_v54  ;;  %v5837_v54 = vld [vmem:[%s9367_s11 + $0x1b8] sm:$0xf0] }
 0x35c   :  { %v1334_v44 = vpop.f32.mrf.mxu2  ;;  %v1549_v0 = vpop.f32.mrf.mxu3 }
 0x35d   :  { %v8582_v1 = vadd.f32 %v1549_v0, %v1501_v62  ;;  %v1335_v8 = vadd.f32 %v1334_v44, %v1145_v20  ;;  %v7133_v20 = vld [vmem:[%s9367_s11 + $0x194] sm:$0xf]  ;;  %v1165_v34 = vpop.f32.mrf.mxu1 }
 0x35e   :  { %v5824_v32 = vor.u32 %v7133_v20, %v5821_v23  ;;  %v7160_v0 = vld [vmem:[#allocation7 + $0x28] sm:$0xff] }
 0x35f   :  { %1785 = vmatpush.bf16.msra.mxu3 %v7160_v0 }
 0x364   :  { %v1336_v5 = vpop.f32.mrf.mxu2  ;;  %v8590_v6 = vpop.f32.mrf.mxu3 }
 0x365   :  { %v1337_v10 = vadd.f32 %v1336_v5, %v1147_v29  ;;  %v1167_v36 = vpop.f32.mrf.mxu1 }
 0x367   :  { %v1635_v15 = vpack.c.bf16 %v1337_v10, %v1335_v8  ;;  %1204 = vmatmul.bf16.gmra.mxu1 %v5836_v27 }
 0x369   :  { %5929 = vmatmul.msk.bf16.gmra.mxu2 %vm946_vm4, %v5816_v11  ;;  %5972 = vmatmul.msk.bf16.gmra.mxu3 %vm1452_vm5, %v1635_v15 }
 0x36c   :  { %v1339_v17 = vpop.f32.mrf.mxu2  ;;  %v1554_v18 = vpop.f32.mrf.mxu3 }
 0x36d   :  { %v8602_v19 = vadd.f32 %v1554_v18, %v1503_v16  ;;  %v1340_v29 = vadd.f32 %v1339_v17, %v1150_v41  ;;  %v7135_v41 = vld [vmem:[%s9367_s11 + $0x1a4] sm:$0xf]  ;;  %v1170_v52 = vpop.f32.mrf.mxu1  ;;  %v5845_v16 = vld [vmem:[%s9367_s11 + $0x1c8] sm:$0xf0] }
 0x36e   :  { %v5832_v51 = vor.u32 %v7135_v41, %v5829_v31  ;;  %v5867_v41 = vld [vmem:[%s9367_s11 + $0x1f0] sm:$0xf] }
 0x374   :  { %v1341_v24 = vpop.f32.mrf.mxu2  ;;  %v8610_v25 = vpop.f32.mrf.mxu3 }
 0x375   :  { %v1342_v30 = vadd.f32 %v1341_v24, %v1152_v49  ;;  %v1172_v61 = vpop.f32.mrf.mxu1 }
 0x377   :  { %v1694_v37 = vpack.c.bf16 %v1342_v30, %v1340_v29 }
 0x379   :  { %5930 = vmatmul.msk.bf16.gmra.mxu2 %vm946_vm4, %v5824_v32  ;;  %5977 = vmatmul.msk.bf16.vlgmr.msrb.gmra.mxu0 %vm1452_vm5, %v1694_v37 }
 0x37c   :  { %v1344_v38 = vpop.f32.mrf.mxu2  ;;  %v1601_v39 = vpop.f32.mrf.mxu3 }
 0x37d   :  { %v8621_v40 = vadd.f32 %v1601_v39, %v8542_v28  ;;  %v7140_v28 = vld [vmem:[%s9367_s11 + $0x1c4] sm:$0xf0]  ;;  %v1345_v49 = vadd.f32 %v1344_v38, %v1155_v59  ;;  %v7137_v59 = vld [vmem:[%s9367_s11 + $0x1b4] sm:$0xf]  ;;  %v1175_v60 = vpop.f32.mrf.mxu1  ;;  %v5853_v38 = vld [vmem:[%s9367_s11 + $0x1d8] sm:$0xf0] }
 0x37e   :  { %v5844_v42 = vor.u32 %v7140_v28, %v5843_v46  ;;  %v5840_v5 = vor.u32 %v7137_v59, %v5837_v54  ;;  %v5875_v54 = vld [vmem:[%s9367_s11 + $0x200] sm:$0xf] }
 0x380   :  { %1209 = vmatmul.bf16.gmra.mxu1 %v5844_v42 }
 0x384   :  { %v1346_v43 = vpop.f32.mrf.mxu2  ;;  %v8629_v45 = vpop.f32.mrf.mxu3 }
 0x385   :  { %v1347_v50 = vadd.f32 %v1346_v43, %v1157_v2  ;;  %v5851_v2 = vld [vmem:[%s9367_s11 + $0x1d0] sm:$0xf]  ;;  %v1177_v15 = vpop.f32.mrf.mxu1 }
 0x387   :  { %v1695_v55 = vpack.c.bf16 %v1347_v50, %v1345_v49 }
 0x389   :  { %5931 = vmatmul.msk.bf16.gmra.mxu2 %vm946_vm4, %v5832_v51  ;;  %5978 = vmatmul.msk.bf16.gmra.mxu0 %vm1452_vm5, %v1695_v55 }
 0x38c   :  { %v1349_v56 = vpop.f32.mrf.mxu2  ;;  %v1606_v57 = vpop.f32.mrf.mxu3 }
 0x38d   :  { %v8640_v58 = vadd.f32 %v1606_v57, %v8562_v47  ;;  %v7142_v47 = vld [vmem:[%s9367_s11 + $0x1d4] sm:$0xf0]  ;;  %v1350_v3 = vadd.f32 %v1349_v56, %v1160_v12  ;;  %v7139_v12 = vld [vmem:[%s9367_s11 + $0x1c4] sm:$0xf]  ;;  %v1180_v9 = vpop.f32.mrf.mxu1  ;;  %v5861_v57 = vld [vmem:[%s9367_s11 + $0x1e8] sm:$0xf0] }
 0x38e   :  { %v5852_v7 = vor.u32 %v7142_v47, %v5851_v2  ;;  %v5848_v24 = vor.u32 %v7139_v12, %v5845_v16  ;;  %v7161_v16 = vld [vmem:[#allocation7 + $0x30] sm:$0xff] }
 0x38f   :  { %1847 = vmatpush.bf16.msra.mxu0 %v7161_v16 }
 0x390   :  { %1214 = vmatmul.bf16.gmra.mxu1 %v5852_v7 }
 0x394   :  { %v1351_v62 = vpop.f32.mrf.mxu2  ;;  %v8648_v44 = vpop.f32.mrf.mxu3 }
 0x395   :  { %v1352_v4 = vadd.f32 %v1351_v62, %v1162_v21  ;;  %v5859_v21 = vld [vmem:[%s9367_s11 + $0x1e0] sm:$0xf]  ;;  %v1182_v37 = vpop.f32.mrf.mxu1 }
 0x397   :  { %v1696_v8 = vpack.c.bf16 %v1352_v4, %v1350_v3 }
 0x399   :  { %5932 = vmatmul.msk.bf16.gmra.mxu2 %vm946_vm4, %v5840_v5  ;;  %5979 = vmatmul.msk.bf16.gmra.mxu0 %vm1452_vm5, %v1696_v8 }
 0x39c   :  { %v1354_v10 = vpop.f32.mrf.mxu2  ;;  %v1611_v11 = vpop.f32.mrf.mxu3 }
 0x39d   :  { %v8659_v13 = vadd.f32 %v1611_v11, %v8582_v1  ;;  %v7144_v1 = vld [vmem:[%s9367_s11 + $0x1e4] sm:$0xf0]  ;;  %v1355_v20 = vadd.f32 %v1354_v10, %v1165_v34  ;;  %v7141_v34 = vld [vmem:[%s9367_s11 + $0x1d4] sm:$0xf]  ;;  %v1185_v28 = vpop.f32.mrf.mxu1  ;;  %v5869_v11 = vld [vmem:[%s9367_s11 + $0x1f8] sm:$0xf0] }
 0x39e   :  { %v5860_v26 = vor.u32 %v7144_v1, %v5859_v21  ;;  %v5856_v46 = vor.u32 %v7141_v34, %v5853_v38  ;;  %v5877_v34 = vld [vmem:[%s9367_s11 + $0x208] sm:$0xf0] }
 0x3a0   :  { %1219 = vmatmul.bf16.gmra.mxu1 %v5860_v26  ;;  %v5883_v26 = vld [vmem:[%s9367_s11 + $0x210] sm:$0xf] }
 0x3a4   :  { %v1356_v17 = vpop.f32.mrf.mxu2  ;;  %v8667_v18 = vpop.f32.mrf.mxu3 }
 0x3a5   :  { %v1357_v23 = vadd.f32 %v1356_v17, %v1167_v36  ;;  %v1187_v56 = vpop.f32.mrf.mxu1 }
 0x3a7   :  { %v1697_v29 = vpack.c.bf16 %v1357_v23, %v1355_v20 }
 0x3a9   :  { %5933 = vmatmul.msk.bf16.gmra.mxu2 %vm946_vm4, %v5848_v24  ;;  %5980 = vmatmul.msk.bf16.gmra.mxu0 %vm1452_vm5, %v1697_v29  ;;  %v7150_v29 = vld [vmem:[%s9367_s11 + $0x214] sm:$0xf0] }
 0x3ac   :  { %v1359_v30 = vpop.f32.mrf.mxu2  ;;  %v1616_v32 = vpop.f32.mrf.mxu3 }
 0x3ad   :  { %v8678_v27 = vadd.f32 %v1616_v32, %v8602_v19  ;;  %v7146_v19 = vld [vmem:[%s9367_s11 + $0x1f4] sm:$0xf0]  ;;  %v1360_v31 = vadd.f32 %v1359_v30, %v1170_v52  ;;  %v7143_v52 = vld [vmem:[%s9367_s11 + $0x1e4] sm:$0xf]  ;;  %v1190_v47 = vpop.f32.mrf.mxu1  ;;  %v5884_v32 = vor.u32 %v7150_v29, %v5883_v26 }
 0x3ae   :  { %v5868_v49 = vor.u32 %v7146_v19, %v5867_v41  ;;  %v5864_v2 = vor.u32 %v7143_v52, %v5861_v57  ;;  %v7149_v52 = vld [vmem:[%s9367_s11 + $0x214] sm:$0xf]  ;;  %v5885_v57 = vld [vmem:[%s9367_s11 + $0x218] sm:$0xf0] }
 0x3b0   :  { %1224 = vmatmul.bf16.gmra.mxu1 %v5868_v49 }
 0x3b4   :  { %v1361_v39 = vpop.f32.mrf.mxu2  ;;  %v8686_v36 = vpop.f32.mrf.mxu3 }
 0x3b5   :  { %v1362_v43 = vadd.f32 %v1361_v39, %v1172_v61  ;;  %v1192_v10 = vpop.f32.mrf.mxu1 }
 0x3b7   :  { %v1756_v50 = vpack.c.bf16 %v1362_v43, %v1360_v31 }
 0x3b9   :  { %5934 = vmatmul.msk.bf16.gmra.mxu2 %vm946_vm4, %v5856_v46  ;;  %5985 = vmatmul.msk.bf16.vlgmr.msra.gmra.mxu3 %vm1452_vm5, %v1756_v50  ;;  %v5891_v50 = vld [vmem:[%s9367_s11 + $0x220] sm:$0xf] }
 0x3bc   :  { %v1364_v51 = vpop.f32.mrf.mxu2  ;;  %v1663_v42 = vpop.f32.mrf.mxu3 }
 0x3bd   :  { %v8697_v55 = vadd.f32 %v1663_v42, %v8621_v40  ;;  %v7148_v40 = vld [vmem:[%s9367_s11 + $0x204] sm:$0xf0]  ;;  %v1365_v62 = vadd.f32 %v1364_v51, %v1175_v60  ;;  %v7145_v60 = vld [vmem:[%s9367_s11 + $0x1f4] sm:$0xf] }
 0x3be   :  { %v5876_v3 = vor.u32 %v7148_v40, %v5875_v54  ;;  %v5872_v1 = vor.u32 %v7145_v60, %v5869_v11  ;;  %v7152_v51 = vld [vmem:[%s9367_s11 + $0x224] sm:$0xf0]  ;;  %v5893_v60 = vld [vmem:[%s9367_s11 + $0x228] sm:$0xf0] }
 0x3bf   :  { %v5892_v42 = vor.u32 %v7152_v51, %v5891_v50 }
 0x3c0   :  { %1229 = vmatmul.bf16.gmra.mxu1 %v5876_v3 }
 0x3c4   :  { %v1366_v61 = vpop.f32.mrf.mxu2  ;;  %v8705_v59 = vpop.f32.mrf.mxu3 }
 0x3c5   :  { %v1367_v0 = vadd.f32 %v1366_v61, %v1177_v15  ;;  %v1195_v20 = vpop.f32.mrf.mxu1 }
 0x3c7   :  { %v1757_v4 = vpack.c.bf16 %v1367_v0, %v1365_v62  ;;  %v5888_v62 = vor.u32 %v7149_v52, %v5885_v57 }
 0x3c9   :  { %5935 = vmatmul.msk.bf16.gmra.mxu2 %vm946_vm4, %v5864_v2  ;;  %5986 = vmatmul.msk.bf16.gmra.mxu3 %vm1452_vm5, %v1757_v4 }
 0x3cc   :  { %v1369_v5 = vpop.f32.mrf.mxu2  ;;  %v1668_v7 = vpop.f32.mrf.mxu3 }
 0x3cd   :  { %v8716_v8 = vadd.f32 %v1668_v7, %v8640_v58  ;;  %v1370_v17 = vadd.f32 %v1369_v5, %v1180_v9  ;;  %v1197_v30 = vpop.f32.mrf.mxu1  ;;  %v5899_v5 = vld [vmem:[%s9367_s11 + $0x230] sm:$0xf] }
 0x3d0   :  { %1234 = vmatmul.bf16.gmra.mxu1 %v5884_v32  ;;  %v7162_v32 = vld [vmem:[#allocation7 + $0x38] sm:$0xff] }
 0x3d1   :  { %1909 = vmatpush.bf16.msrb.mxu3 %v7162_v32 }
 0x3d4   :  { %v1371_v15 = vpop.f32.mrf.mxu2  ;;  %v8724_v12 = vpop.f32.mrf.mxu3 }
 0x3d5   :  { %v1372_v21 = vadd.f32 %v1371_v15, %v1182_v37  ;;  %v7147_v37 = vld [vmem:[%s9367_s11 + $0x204] sm:$0xf]  ;;  %v1200_v43 = vpop.f32.mrf.mxu1 }
 0x3d6   :  { %v5880_v31 = vor.u32 %v7147_v37, %v5877_v34 }
 0x3d7   :  { %v1758_v58 = vpack.c.bf16 %v1372_v21, %v1370_v17 }
 0x3d9   :  { %5936 = vmatmul.msk.bf16.gmra.mxu2 %vm946_vm4, %v5872_v1  ;;  %5987 = vmatmul.msk.bf16.gmra.mxu3 %vm1452_vm5, %v1758_v58 }
 0x3dc   :  { %v1374_v23 = vpop.f32.mrf.mxu2  ;;  %v1673_v24 = vpop.f32.mrf.mxu3 }
 0x3dd   :  { %v8735_v9 = vadd.f32 %v1673_v24, %v8659_v13  ;;  %v1375_v41 = vadd.f32 %v1374_v23, %v1185_v28 }
 0x3e0   :  { %1239 = vmatmul.bf16.gmra.mxu1 %v5892_v42 }
 0x3e4   :  { %v1376_v38 = vpop.f32.mrf.mxu2  ;;  %v8743_v39 = vpop.f32.mrf.mxu3 }
 0x3e5   :  { %v1377_v19 = vadd.f32 %v1376_v38, %v1187_v56  ;;  %v1202_v56 = vpop.f32.mrf.mxu1 }
 0x3e7   :  { %v1759_v13 = vpack.c.bf16 %v1377_v19, %v1375_v41 }
 0x3e9   :  { %5937 = vmatmul.msk.bf16.gmra.mxu2 %vm946_vm4, %v5880_v31  ;;  %5988 = vmatmul.msk.bf16.gmra.mxu3 %vm1452_vm5, %v1759_v13 }
 0x3ec   :  { %v1379_v46 = vpop.f32.mrf.mxu2  ;;  %v1678_v49 = vpop.f32.mrf.mxu3 }
 0x3ed   :  { %v1689_v28 = vadd.f32 %v1678_v49, %v8678_v27  ;;  %v1380_v54 = vadd.f32 %v1379_v46, %v1190_v47  ;;  %v1205_v27 = vpop.f32.mrf.mxu1  ;;  %v7154_v47 = vld [vmem:[%s9367_s11 + $0x234] sm:$0xf0]  ;;  %v7163_v46 = vld [vmem:[#allocation7 + $0x40] sm:$0xff] }
 0x3ee   :  { %v5900_v7 = vor.u32 %v7154_v47, %v5899_v5  ;;  %1971 = vmatpush.bf16.msrb.mxu0 %v7163_v46 }
 0x3f0   :  { %1244 = vmatmul.bf16.gmra.mxu1 %v5900_v7 }
 0x3f4   :  { %v1381_v61 = vpop.f32.mrf.mxu2 }
 0x3f5   :  { %v1382_v40 = vadd.f32 %v1381_v61, %v1192_v10  ;;  %v1207_v15 = vpop.f32.mrf.mxu1 }
 0x3f6   :  { %v1725_v0 = vpop.f32.mrf.mxu0 }
 0x3f7   :  { %v1818_v2 = vpack.c.bf16 %v1382_v40, %v1380_v54  ;;  %v8761_v3 = vadd.f32 %v1725_v0, %v8697_v55  ;;  %v7151_v55 = vld [vmem:[%s9367_s11 + $0x224] sm:$0xf] }
 0x3f8   :  { %v5896_v21 = vor.u32 %v7151_v55, %v5893_v60 }
 0x3f9   :  { %5938 = vmatmul.msk.bf16.gmra.mxu2 %vm946_vm4, %v5888_v62  ;;  %5993 = vmatmul.msk.bf16.vlgmr.msra.gmra.mxu0 %vm1452_vm5, %v1818_v2  ;;  %v7225_v62 = vld [vmem:[#allocation10 + $0x1e8] sm:$0xff] }
 0x3fa   :  { %3126 = vmatpush.bf16.msrb.mxu1 %v7225_v62 }
 0x3fc   :  { %v1384_v4 = vpop.f32.mrf.mxu2 }
 0x3fd   :  { %v1385_v16 = vadd.f32 %v1384_v4, %v1195_v20  ;;  %v1210_v29 = vpop.f32.mrf.mxu1  ;;  %v7153_v20 = vld [vmem:[%s9367_s11 + $0x234] sm:$0xf] }
 0x3fe   :  { %v8771_v10 = vpop.f32.mrf.mxu0 }
 0x404   :  { %v1386_v11 = vpop.f32.mrf.mxu2 }
 0x405   :  { %v1387_v17 = vadd.f32 %v1386_v11, %v1197_v30  ;;  %v5901_v30 = vld [vmem:[%s9367_s11 + $0x238] sm:$0xf0]  ;;  %v1212_v13 = vpop.f32.mrf.mxu1  ;;  %s9371_s11 = sld [smem:[#allocation51_spill]] }
 0x406   :  { %v1730_v1 = vpop.f32.mrf.mxu0  ;;  %v5904_v38 = vor.u32 %v7153_v20, %v5901_v30 }
 0x407   :  { %v1819_v58 = vpack.c.bf16 %v1387_v17, %v1385_v16  ;;  %v8780_v23 = vadd.f32 %v1730_v1, %v8716_v8 }
 0x409   :  { %5939 = vmatmul.msk.bf16.gmra.mxu2 %vm946_vm4, %v5896_v21  ;;  %5994 = vmatmul.msk.bf16.gmra.mxu0 %vm1452_vm5, %v1819_v58 }
 0x40c   :  { %v1389_v24 = vpop.f32.mrf.mxu2 }
 0x40d   :  { %v1390_v37 = vadd.f32 %v1389_v24, %v1200_v43  ;;  %v1215_v51 = vpop.f32.mrf.mxu1 }
 0x40e   :  { %v8784_v26 = vpop.f32.mrf.mxu0 }
 0x414   :  { %v1391_v8 = vpop.f32.mrf.mxu2 }
 0x415   :  { %v1392_v34 = vadd.f32 %v1391_v8, %v1202_v56  ;;  %v1217_v40 = vpop.f32.mrf.mxu1 }
 0x416   :  { %v1735_v41 = vpop.f32.mrf.mxu0 }
 0x417   :  { %v1820_v19 = vpack.c.bf16 %v1392_v34, %v1390_v37  ;;  %v8793_v31 = vadd.f32 %v1735_v41, %v8735_v9  ;;  %v7223_v9 = vld [vmem:[#allocation10 + $0x1d8] sm:$0xff] }
 0x418   :  { %3090 = vmatpush.bf16.msrb.mxu2 %v7223_v9 }
 0x419   :  { %5940 = vmatmul.msk.bf16.gmra.mxu2 %vm946_vm4, %v5904_v38  ;;  %5995 = vmatmul.msk.bf16.gmra.mxu0 %vm1452_vm5, %v1820_v19 }
 0x41c   :  { %v1394_v49 = vpop.f32.mrf.mxu2 }
 0x41d   :  { %v1395_v43 = vadd.f32 %v1394_v49, %v1205_v27  ;;  %v1220_v5 = vpop.f32.mrf.mxu1 }
 0x41e   :  { %v8797_v50 = vpop.f32.mrf.mxu0 }
 0x424   :  { %v1396_v42 = vpop.f32.mrf.mxu2 }
 0x425   :  { %v1397_v56 = vadd.f32 %v1396_v42, %v1207_v15  ;;  %v1222_v7 = vpop.f32.mrf.mxu1 }
 0x426   :  { %v1740_v52 = vpop.f32.mrf.mxu0 }
 0x427   :  { %v1821_v57 = vpack.c.bf16 %v1397_v56, %v1395_v43  ;;  %v8799_v61 = vadd.f32 %v1740_v52, %v1689_v28 }
 0x429   :  { %5996 = vmatmul.msk.bf16.gmra.mxu0 %vm1452_vm5, %v1821_v57 }
 0x42c   :  { %v1399_v54 = vpop.f32.mrf.mxu2 }
 0x42d   :  { %v1400_v2 = vadd.f32 %v1399_v54, %v1210_v29  ;;  %v1225_v15 = vpop.f32.mrf.mxu1 }
 0x434   :  { %v1401_v0 = vpop.f32.mrf.mxu2 }
 0x435   :  { %v1402_v4 = vadd.f32 %v1401_v0, %v1212_v13  ;;  %v1227_v21 = vpop.f32.mrf.mxu1 }
 0x437   :  { %v1880_v47 = vpack.c.bf16 %v1402_v4, %v1400_v2 }
 0x439   :  { %6001 = vmatmul.msk.bf16.vlgmr.msrb.gmra.mxu3 %vm1452_vm5, %v1880_v47 }
 0x43c   :  { %v1404_v27 = vpop.f32.mrf.mxu2 }
 0x43d   :  { %v1405_v28 = vadd.f32 %v1404_v27, %v1215_v51  ;;  %v1230_v32 = vpop.f32.mrf.mxu1 }
 0x444   :  { %v1406_v55 = vpop.f32.mrf.mxu2 }
 0x445   :  { %v1407_v60 = vadd.f32 %v1406_v55, %v1217_v40  ;;  %v1232_v34 = vpop.f32.mrf.mxu1  ;;  %v8808_v40 = vpop.f32.mrf.mxu3 }
 0x446   :  { %v8811_v55 = vpop.f32.mrf.mxu0 }
 0x447   :  { %v1881_v11 = vpack.c.bf16 %v1407_v60, %v1405_v28 }
 0x449   :  { %6002 = vmatmul.msk.bf16.gmra.mxu3 %vm1452_vm5, %v1881_v11 }
 0x44c   :  { %v1409_v16 = vpop.f32.mrf.mxu2 }
 0x44d   :  { %v1410_v1 = vadd.f32 %v1409_v16, %v1220_v5  ;;  %v1235_v41 = vpop.f32.mrf.mxu1  ;;  %v1787_v5 = vpop.f32.mrf.mxu3 }
 0x454   :  { %v1411_v17 = vpop.f32.mrf.mxu2 }
 0x455   :  { %v1412_v58 = vadd.f32 %v1411_v17, %v1222_v7  ;;  %v1237_v51 = vpop.f32.mrf.mxu1  ;;  %v1789_v28 = vpop.f32.mrf.mxu3  ;;  %v7165_v17 = vld [vmem:[#allocation10 + $0x8] sm:$0xff] }
 0x456   :  { %2046 = vmatpush.bf16.msra.mxu3 %v7165_v17  ;;  %v7222_v17 = vld [vmem:[#allocation10 + $0x1d0] sm:$0xff] }
 0x457   :  { %v1882_v24 = vpack.c.bf16 %v1412_v58, %v1410_v1  ;;  %3091 = vmatpush.bf16.msrb.mxu2 %v7222_v17 }
 0x459   :  { %6003 = vmatmul.msk.bf16.gmra.mxu3 %vm1452_vm5, %v1882_v24 }
 0x45c   :  { %v1414_v29 = vpop.f32.mrf.mxu2 }
 0x45d   :  { %v1415_v30 = vadd.f32 %v1414_v29, %v1225_v15  ;;  %v1240_v52 = vpop.f32.mrf.mxu1  ;;  %v1792_v58 = vpop.f32.mrf.mxu3 }
 0x464   :  { %v1416_v20 = vpop.f32.mrf.mxu2 }
 0x465   :  { %v1417_v8 = vadd.f32 %v1416_v20, %v1227_v21  ;;  %v1242_v62 = vpop.f32.mrf.mxu1  ;;  %v8814_v29 = vpop.f32.mrf.mxu3 }
 0x467   :  { %v1883_v37 = vpack.c.bf16 %v1417_v8, %v1415_v30  ;;  %v7164_v30 = vld [vmem:[#allocation10] sm:$0xff] }
 0x468   :  { %2047 = vmatpush.bf16.msra.mxu3 %v7164_v30 }
 0x469   :  { %6004 = vmatmul.msk.bf16.gmra.mxu3 %vm1452_vm5, %v1883_v37 }
 0x46c   :  { %v1419_v38 = vpop.f32.mrf.mxu2 }
 0x46d   :  { %v1420_v13 = vadd.f32 %v1419_v38, %v1230_v32  ;;  %v1245_v27 = vpop.f32.mrf.mxu1  ;;  %v8816_v20 = vpop.f32.mrf.mxu3 }
 0x474   :  { %v1421_v19 = vpop.f32.mrf.mxu2 }
 0x475   :  { %v1422_v46 = vadd.f32 %v1421_v19, %v1232_v34  ;;  %v1247_v60 = vpop.f32.mrf.mxu1  ;;  %v8820_v37 = vpop.f32.mrf.mxu3 }
 0x476   :  { %v1849_v1 = vpop.f32.mrf.mxu0 }
 0x477   :  { %v1942_v49 = vpack.c.bf16 %v1422_v46, %v1420_v13  ;;  %v7171_v13 = vld [vmem:[#allocation10 + $0x38] sm:$0xff]  ;;  %v7170_v46 = vld [vmem:[#allocation10 + $0x30] sm:$0xff] }
 0x478   :  { %2154 = vmatpush.bf16.msra.mxu0 %v7171_v13 }
 0x479   :  { %6009 = vmatmul.msk.bf16.vlgmr.msrb.gmra.mxu0 %vm1452_vm5, %v1942_v49 }
 0x47c   :  { %v1424_v42 = vpop.f32.mrf.mxu2  ;;  %2155 = vmatpush.bf16.msra.mxu0 %v7170_v46 }
 0x47d   :  { %v1425_v43 = vadd.f32 %v1424_v42, %v1235_v41  ;;  %v8824_v38 = vpop.f32.mrf.mxu3  ;;  %v7167_v42 = vld [vmem:[#allocation10 + $0x18] sm:$0xff] }
 0x47e   :  { %v1851_v24 = vpop.f32.mrf.mxu0  ;;  %2082 = vmatpush.bf16.msrb.mxu3 %v7167_v42 }
 0x484   :  { %v1426_v56 = vpop.f32.mrf.mxu2 }
 0x485   :  { %v1427_v57 = vadd.f32 %v1426_v56, %v1237_v51  ;;  %v8828_v19 = vpop.f32.mrf.mxu3  ;;  %v7175_v56 = vld [vmem:[#allocation10 + $0x58] sm:$0xff] }
 0x486   :  { %v1854_v32 = vpop.f32.mrf.mxu0  ;;  %2226 = vmatpush.bf16.msrb.mxu0 %v7175_v56 }
 0x487   :  { %v1943_v9 = vpack.c.bf16 %v1427_v57, %v1425_v43  ;;  %v7166_v43 = vld [vmem:[#allocation10 + $0x10] sm:$0xff] }
 0x488   :  { %2083 = vmatpush.bf16.msrb.mxu3 %v7166_v43 }
 0x489   :  { %6010 = vmatmul.msk.bf16.gmra.mxu0 %vm1452_vm5, %v1943_v9  ;;  %v1498_v9 = vadd.f32 %v8536_v22, %v8474_v33 }
 0x48c   :  { %v1429_v54 = vpop.f32.mrf.mxu2 }
 0x48d   :  { %v1430_v0 = vadd.f32 %v1429_v54, %v1240_v52  ;;  %v7174_v54 = vld [vmem:[#allocation10 + $0x50] sm:$0xff] }
 0x48e   :  { %v8818_v8 = vpop.f32.mrf.mxu0  ;;  %2227 = vmatpush.bf16.msrb.mxu0 %v7174_v54  ;;  %v7231_v54 = vld [vmem:[#allocation10 + $0x218] sm:$0xff] }
 0x48f   :  { %3234 = vmatpush.bf16.msra.mxu2 %v7231_v54 }
 0x494   :  { %v1431_v2 = vpop.f32.mrf.mxu2 }
 0x495   :  { %v1432_v4 = vadd.f32 %v1431_v2, %v1242_v62  ;;  %v1560_v62 = vadd.f32 %v8550_v35, %v1498_v9 }
 0x496   :  { %v8822_v34 = vpop.f32.mrf.mxu0 }
 0x497   :  { %v1944_v47 = vpack.c.bf16 %v1432_v4, %v1430_v0  ;;  %v1807_v0 = vadd.f32 %v1787_v5, %v8761_v3  ;;  %v1622_v2 = vadd.f32 %v8629_v45, %v1560_v62  ;;  %v7233_v62 = vld [vmem:[#allocation10 + $0x228] sm:$0xff] }
 0x499   :  { %6011 = vmatmul.msk.bf16.gmra.mxu0 %vm1452_vm5, %v1944_v47  ;;  %v1869_v4 = vadd.f32 %v1849_v1, %v1807_v0  ;;  %v1684_v47 = vadd.f32 %v8705_v59, %v1622_v2  ;;  %v1500_v59 = vadd.f32 %v8536_v22, %v8492_v48  ;;  %v1809_v1 = vadd.f32 %v1792_v58, %v8780_v23  ;;  %v7178_v58 = vld [vmem:[#allocation10 + $0x70] sm:$0xff] }
 0x49a   :  { %v7230_v2 = vld [vmem:[#allocation10 + $0x210] sm:$0xff] }
 0x49b   :  { %v1871_v43 = vadd.f32 %v1854_v32, %v1809_v1  ;;  %3235 = vmatpush.bf16.msra.mxu2 %v7230_v2 }
 0x49c   :  { %v1434_v7 = vpop.f32.mrf.mxu2 }
 0x49d   :  { %v1435_v11 = vadd.f32 %v1434_v7, %v1245_v27 }
 0x49e   :  { %v8826_v41 = vpop.f32.mrf.mxu0 }
 0x4a4   :  { %v1436_v15 = vpop.f32.mrf.mxu2 }
 0x4a5   :  { %v1437_v16 = vadd.f32 %v1436_v15, %v1247_v60  ;;  %v1746_v60 = vadd.f32 %v8771_v10, %v1684_v47  ;;  %v1562_v10 = vadd.f32 %v8570_v53, %v1500_v59  ;;  %v7168_v53 = vld [vmem:[#allocation10 + $0x20] sm:$0xff] }
 0x4a6   :  { %v8830_v49 = vpop.f32.mrf.mxu0 }
 0x4a7   :  { %v1945_v21 = vpack.c.bf16 %v1437_v16, %v1435_v11  ;;  %v1808_v16 = vadd.f32 %v1789_v28, %v1746_v60  ;;  %v7169_v28 = vld [vmem:[#allocation10 + $0x28] sm:$0xff]  ;;  %v1624_v42 = vadd.f32 %v8648_v44, %v1562_v10  ;;  %v7182_v10 = vld [vmem:[#allocation10 + $0x90] sm:$0xff] }
 0x4a9   :  { %6012 = vmatmul.msk.bf16.gmra.mxu0 %vm1452_vm5, %v1945_v21  ;;  %v7224_v21 = vld [vmem:[#allocation10 + $0x1e0] sm:$0xff]  ;;  %v1870_v35 = vadd.f32 %v1851_v24, %v1808_v16  ;;  %v7179_v24 = vld [vmem:[#allocation10 + $0x78] sm:$0xff]  ;;  %v1686_v48 = vadd.f32 %v8724_v12, %v1624_v42 }
 0x4aa   :  { %3127 = vmatpush.bf16.msrb.mxu1 %v7224_v21  ;;  %v7183_v21 = vld [vmem:[#allocation10 + $0x98] sm:$0xff] }
 0x4ab   :  { %v1748_v44 = vadd.f32 %v8784_v26, %v1686_v48  ;;  %v1502_v26 = vadd.f32 %v8536_v22, %v8510_v63 }
 0x4ad   :  { %v1810_v0 = vadd.f32 %v8814_v29, %v1748_v44  ;;  %v1564_v16 = vadd.f32 %v8590_v6, %v1502_v26  ;;  %v7187_v44 = vld [vmem:[#allocation10 + $0xb8] sm:$0xff]  ;;  %v7249_v26 = vld [vmem:[#allocation10 + $0x2a8] sm:$0xff] }
 0x4ae   :  { %v8832_v52 = vpop.f32.mrf.mxu0  ;;  %3270 = vmatpush.bf16.msra.mxu1 %v7233_v62  ;;  %v7177_v62 = vld [vmem:[#allocation10 + $0x68] sm:$0xff] }
 0x4af   :  { %v1872_v47 = vadd.f32 %v8818_v8, %v1810_v0  ;;  %v7173_v8 = vld [vmem:[#allocation10 + $0x48] sm:$0xff] }
 0x4bc   :  { %v1911_v51 = vpop.f32.mrf.mxu3 }
 0x4bd   :  { %v1931_v27 = vadd.f32 %v1911_v51, %v1869_v4  ;;  %v7232_v4 = vld [vmem:[#allocation10 + $0x220] sm:$0xff] }
 0x4be   :  { %3271 = vmatpush.bf16.msra.mxu1 %v7232_v4 }
 0x4c4   :  { %v1913_v57 = vpop.f32.mrf.mxu3 }
 0x4c5   :  { %v1932_v45 = vadd.f32 %v1913_v57, %v1870_v35  ;;  %v1626_v35 = vadd.f32 %v8667_v18, %v1564_v16 }
 0x4c7   :  { %v1688_v63 = vadd.f32 %v8743_v39, %v1626_v35 }
 0x4c9   :  { %v1750_v18 = vadd.f32 %v8797_v50, %v1688_v63  ;;  %v7180_v63 = vld [vmem:[#allocation10 + $0x80] sm:$0xff] }
 0x4cb   :  { %v1812_v1 = vadd.f32 %v8820_v37, %v1750_v18  ;;  %v7238_v37 = vld [vmem:[#allocation10 + $0x250] sm:$0xff] }
 0x4cc   :  { %v1916_v15 = vpop.f32.mrf.mxu3 }
 0x4cd   :  { %v1933_v9 = vadd.f32 %v1916_v15, %v1871_v43 }
 0x4d4   :  { %v1918_v13 = vpop.f32.mrf.mxu3 }
 0x4f6   :  { %v1973_v7 = vpop.f32.mrf.mxu0 }
 0x4f7   :  { %v1993_v11 = vadd.f32 %v1973_v7, %v1931_v27  ;;  %v1921_v27 = vpop.f32.mrf.mxu3  ;;  %v1934_v7 = vadd.f32 %v1918_v13, %v1872_v47 }
 0x4f9   :  { %v2001_v33 = vmax.f32 %v1993_v11, 0.0 }
 0x4fb   :  { %2010 = vst.msk [vmem:[#allocation2] sm:$0xff] %vm2009_vm6, %v2001_v33  ;;  %v1811_v33 = vadd.f32 %v8816_v20, %v8793_v31  ;;  %v7172_v20 = vld [vmem:[#allocation10 + $0x40] sm:$0xff] }
 0x4fe   :  { %v1975_v3 = vpop.f32.mrf.mxu0 }
 0x4ff   :  { %v1994_v5 = vadd.f32 %v1975_v3, %v1932_v45  ;;  %v1873_v45 = vadd.f32 %v8822_v34, %v1811_v33  ;;  %v1923_v6 = vpop.f32.mrf.mxu3  ;;  %v7248_v33 = vld [vmem:[#allocation10 + $0x2a0] sm:$0xff] }
 0x501   :  { %v2002_v30 = vmax.f32 %v1994_v5, 0.0  ;;  %v1935_v5 = vadd.f32 %v1921_v27, %v1873_v45  ;;  %v7181_v45 = vld [vmem:[#allocation10 + $0x88] sm:$0xff] }
 0x502   :  { %v2019_v46 = vld [vmem:[#allocation2] sm:$0x1]  ;;  %v2126_v51 = vld [vmem:[#allocation2 + $0x3] sm:$0x1]  ;;  %v2054_v15 = vld [vmem:[#allocation2 + $0x1] sm:$0x1] }
 0x503   :  { %2011 = vst.msk [vmem:[#allocation2 + $0x8] sm:$0xff] %vm2009_vm6, %v2002_v30  ;;  %v2024_v56 = vpack.c.bf16 %v2019_v46, %v2019_v46  ;;  %v2132_v57 = vpack.c.bf16 %v2126_v51, %v2126_v51  ;;  %v2198_v29 = vld [vmem:[#allocation2 + $0x5] sm:$0x1]  ;;  %v2060_v3 = vpack.c.bf16 %v2054_v15, %v2054_v15  ;;  %v7241_v46 = vld [vmem:[#allocation10 + $0x268] sm:$0xff]  ;;  %v1874_v51 = vadd.f32 %v8826_v41, %v1812_v1  ;;  %v2090_v41 = vld [vmem:[#allocation2 + $0x2] sm:$0x1] }
 0x504   :  { %v2204_v59 = vpack.c.bf16 %v2198_v29, %v2198_v29  ;;  %v7254_v1 = vld [vmem:[#allocation10 + $0x2d0] sm:$0xff] }
 0x505   :  { %6021 = vmatmul.msk.bf16.vlgmr.msra.gmra.mxu3 %vm2009_vm6, %v2024_v56  ;;  %6048 = vmatmul.msk.bf16.vlgmr.msra.gmra.mxu0 %vm2009_vm6, %v2132_v57  ;;  %v1936_v43 = vadd.f32 %v1923_v6, %v1874_v51  ;;  %v7240_v56 = vld [vmem:[#allocation10 + $0x260] sm:$0xff]  ;;  %v1504_v57 = vadd.f32 %v8536_v22, %v8528_v14  ;;  %v2096_v14 = vpack.c.bf16 %v2090_v41, %v2090_v41  ;;  %v7262_v41 = vld [vmem:[#allocation10 + $0x310] sm:$0xff] }
 0x506   :  { %v1978_v23 = vpop.f32.mrf.mxu0  ;;  %2118 = vmatpush.bf16.msra.mxu3 %v7169_v28  ;;  %2298 = vmatpush.bf16.msra.mxu0 %v7179_v24  ;;  %v7239_v28 = vld [vmem:[#allocation10 + $0x258] sm:$0xff] }
 0x507   :  { %v1995_v32 = vadd.f32 %v1978_v23, %v1933_v9  ;;  %v1926_v9 = vpop.f32.mrf.mxu3  ;;  %v1566_v23 = vadd.f32 %v8610_v25, %v1504_v57  ;;  %v7265_v57 = vld [vmem:[#allocation10 + $0x328] sm:$0xff] }
 0x509   :  { %v2003_v12 = vmax.f32 %v1995_v32, 0.0  ;;  %v1628_v32 = vadd.f32 %v8686_v36, %v1566_v23 }
 0x50a   :  { %2119 = vmatpush.bf16.msra.mxu3 %v7168_v53  ;;  %2299 = vmatpush.bf16.msra.mxu0 %v7178_v58  ;;  %v2270_v53 = vld [vmem:[#allocation2 + $0x7] sm:$0x1]  ;;  %v1813_v58 = vadd.f32 %v8824_v38, %v8799_v61  ;;  %v7176_v61 = vld [vmem:[#allocation10 + $0x60] sm:$0xff]  ;;  %v2306_v23 = vld [vmem:[#allocation2 + $0x8] sm:$0x1] }
 0x50b   :  { %2012 = vst.msk [vmem:[#allocation2 + $0x10] sm:$0xff] %vm2009_vm6, %v2003_v12  ;;  %v2276_v22 = vpack.c.bf16 %v2270_v53, %v2270_v53  ;;  %v1690_v12 = vadd.f32 %v8808_v40, %v1628_v32  ;;  %v7186_v38 = vld [vmem:[#allocation10 + $0xb0] sm:$0xff]  ;;  %v7247_v40 = vld [vmem:[#allocation10 + $0x298] sm:$0xff]  ;;  %v7264_v53 = vld [vmem:[#allocation10 + $0x320] sm:$0xff] }
 0x50c   :  { %v1875_v0 = vadd.f32 %v8830_v49, %v1813_v58  ;;  %v2486_v58 = vld [vmem:[#allocation2 + $0xd] sm:$0x1] }
 0x50d   :  { %v1752_v36 = vadd.f32 %v8811_v55, %v1690_v12  ;;  %v2492_v32 = vpack.c.bf16 %v2486_v58, %v2486_v58 }
 0x50e   :  { %v1980_v60 = vpop.f32.mrf.mxu0  ;;  %v1937_v2 = vadd.f32 %v1926_v9, %v1875_v0  ;;  %v7188_v0 = vld [vmem:[#allocation10 + $0xc0] sm:$0xff] }
 0x50f   :  { %v1996_v11 = vadd.f32 %v1980_v60, %v1934_v7  ;;  %v1814_v27 = vadd.f32 %v8828_v19, %v1752_v36  ;;  %v1928_v60 = vpop.f32.mrf.mxu3  ;;  %v7246_v19 = vld [vmem:[#allocation10 + $0x290] sm:$0xff] }
 0x510   :  { %v7270_v36 = vld [vmem:[#allocation10 + $0x350] sm:$0xff] }
 0x511   :  { %v2004_v17 = vmax.f32 %v1996_v11, 0.0  ;;  %v1876_v11 = vadd.f32 %v8832_v52, %v1814_v27  ;;  %v7191_v52 = vld [vmem:[#allocation10 + $0xd8] sm:$0xff]  ;;  %v7193_v27 = vld [vmem:[#allocation10 + $0xe8] sm:$0xff] }
 0x512   :  { %v2774_v58 = vld [vmem:[#allocation2 + $0x15] sm:$0x1] }
 0x513   :  { %2013 = vst.msk [vmem:[#allocation2 + $0x18] sm:$0xff] %vm2009_vm6, %v2004_v17  ;;  %v1938_v16 = vadd.f32 %v1928_v60, %v1876_v11  ;;  %v7202_v11 = vld [vmem:[#allocation10 + $0x130] sm:$0xff] }
 0x515   :  { %6030 = vmatmul.msk.bf16.vlgmr.msrb.gmra.mxu3 %vm2009_vm6, %v2060_v3  ;;  %6066 = vmatmul.msk.bf16.vlgmr.msrb.gmra.mxu0 %vm2009_vm6, %v2204_v59 }
 0x516   :  { %v1983_v31 = vpop.f32.mrf.mxu0  ;;  %2190 = vmatpush.bf16.msrb.mxu3 %v7173_v8  ;;  %2370 = vmatpush.bf16.msrb.mxu0 %v7183_v21  ;;  %v2162_v8 = vld [vmem:[#allocation2 + $0x4] sm:$0x1]  ;;  %v2342_v21 = vld [vmem:[#allocation2 + $0x9] sm:$0x1] }
 0x517   :  { %v1997_v34 = vadd.f32 %v1983_v31, %v1935_v5  ;;  %v2168_v3 = vpack.c.bf16 %v2162_v8, %v2162_v8  ;;  %v2348_v59 = vpack.c.bf16 %v2342_v21, %v2342_v21  ;;  %v7190_v5 = vld [vmem:[#allocation10 + $0xd0] sm:$0xff]  ;;  %v7280_v8 = vld [vmem:[#allocation10 + $0x3a0] sm:$0xff]  ;;  %v2450_v21 = vld [vmem:[#allocation2 + $0xc] sm:$0x1] }
 0x519   :  { %v2005_v30 = vmax.f32 %v1997_v34, 0.0 }
 0x51a   :  { %v3062_v13 = vld [vmem:[#allocation2 + $0x1d] sm:$0x1]  ;;  %v3098_v39 = vld [vmem:[#allocation2 + $0x1e] sm:$0x1]  ;;  %2191 = vmatpush.bf16.msrb.mxu3 %v7172_v20  ;;  %2371 = vmatpush.bf16.msrb.mxu0 %v7182_v10  ;;  %v7255_v20 = vld [vmem:[#allocation10 + $0x2d8] sm:$0xff] }
 0x51b   :  { %2014 = vst.msk [vmem:[#allocation2 + $0x20] sm:$0xff] %vm2009_vm6, %v2005_v30  ;;  %v3068_v24 = vpack.c.bf16 %v3062_v13, %v3062_v13  ;;  %v3104_v42 = vpack.c.bf16 %v3098_v39, %v3098_v39  ;;  %v7257_v10 = vld [vmem:[#allocation10 + $0x2e8] sm:$0xff]  ;;  %v7256_v30 = vld [vmem:[#allocation10 + $0x2e0] sm:$0xff]  ;;  %v2414_v13 = vld [vmem:[#allocation2 + $0xb] sm:$0x1] }
 0x51c   :  { %v7185_v39 = vld [vmem:[#allocation10 + $0xa8] sm:$0xff] }
 0x51d   :  { %6282 = vmatmul.msk.bf16.vlgmr.msrb.gmra.mxu2 %vm2009_vm6, %v3068_v24  ;;  %6291 = vmatmul.msk.bf16.vlgmr.msrb.gmra.mxu1 %vm2009_vm6, %v3104_v42  ;;  %v2420_v24 = vpack.c.bf16 %v2414_v13, %v2414_v13  ;;  %v7184_v42 = vld [vmem:[#allocation10 + $0xa0] sm:$0xff] }
 0x51e   :  { %v1985_v50 = vpop.f32.mrf.mxu0  ;;  %3378 = vmatpush.bf16.msrb.mxu2 %v7239_v28  ;;  %3414 = vmatpush.bf16.msrb.mxu1 %v7241_v46  ;;  %v2234_v28 = vld [vmem:[#allocation2 + $0x6] sm:$0x1]  ;;  %v7195_v46 = vld [vmem:[#allocation10 + $0xf8] sm:$0xff]  ;;  %v2702_v13 = vld [vmem:[#allocation2 + $0x13] sm:$0x1] }
 0x51f   :  { %v1998_v48 = vadd.f32 %v1985_v50, %v1936_v43  ;;  %v2240_v51 = vpack.c.bf16 %v2234_v28, %v2234_v28  ;;  %v7194_v43 = vld [vmem:[#allocation10 + $0xf0] sm:$0xff]  ;;  %v2522_v28 = vld [vmem:[#allocation2 + $0xe] sm:$0x1] }
 0x521   :  { %v2006_v54 = vmax.f32 %v1998_v48, 0.0 }
 0x522   :  { %3379 = vmatpush.bf16.msrb.mxu2 %v7238_v37  ;;  %3415 = vmatpush.bf16.msrb.mxu1 %v7240_v56  ;;  %v3206_v49 = vld [vmem:[#allocation2 + $0x21] sm:$0x1]  ;;  %v3242_v47 = vld [vmem:[#allocation2 + $0x22] sm:$0x1]  ;;  %v3350_v6 = vld [vmem:[#allocation2 + $0x25] sm:$0x1] }
 0x523   :  { %2015 = vst.msk [vmem:[#allocation2 + $0x28] sm:$0xff] %vm2009_vm6, %v2006_v54  ;;  %v3212_v15 = vpack.c.bf16 %v3206_v49, %v3206_v49  ;;  %v3248_v29 = vpack.c.bf16 %v3242_v47, %v3242_v47  ;;  %v3386_v31 = vld [vmem:[#allocation2 + $0x26] sm:$0x1]  ;;  %v3356_v18 = vpack.c.bf16 %v3350_v6, %v3350_v6  ;;  %v7263_v56 = vld [vmem:[#allocation10 + $0x318] sm:$0xff]  ;;  %v7189_v54 = vld [vmem:[#allocation10 + $0xc8] sm:$0xff] }
 0x524   :  { %v3392_v34 = vpack.c.bf16 %v3386_v31, %v3386_v31  ;;  %v2378_v49 = vld [vmem:[#allocation2 + $0xa] sm:$0x1]  ;;  %v2558_v47 = vld [vmem:[#allocation2 + $0xf] sm:$0x1] }
 0x525   :  { %6039 = vmatmul.msk.bf16.vlgmr.msra.gmra.mxu3 %vm2009_vm6, %v2096_v14  ;;  %6084 = vmatmul.msk.bf16.vlgmr.msra.gmra.mxu0 %vm2009_vm6, %v2276_v22  ;;  %v7198_v14 = vld [vmem:[#allocation10 + $0x110] sm:$0xff]  ;;  %v2384_v60 = vpack.c.bf16 %v2378_v49, %v2378_v49 }
 0x526   :  { %v1988_v25 = vpop.f32.mrf.mxu0  ;;  %2262 = vmatpush.bf16.msra.mxu3 %v7177_v62  ;;  %2442 = vmatpush.bf16.msra.mxu0 %v7187_v44  ;;  %v7199_v62 = vld [vmem:[#allocation10 + $0x118] sm:$0xff]  ;;  %v2312_v44 = vpack.c.bf16 %v2306_v23, %v2306_v23 }
 0x527   :  { %v1999_v4 = vadd.f32 %v1988_v25, %v1937_v2  ;;  %v7271_v2 = vld [vmem:[#allocation10 + $0x358] sm:$0xff]  ;;  %v7273_v25 = vld [vmem:[#allocation10 + $0x368] sm:$0xff] }
 0x528   :  { %v2594_v23 = vld [vmem:[#allocation2 + $0x10] sm:$0x1] }
 0x529   :  { %v2007_v7 = vmax.f32 %v1999_v4, 0.0  ;;  %v7272_v4 = vld [vmem:[#allocation10 + $0x360] sm:$0xff] }
 0x52a   :  { %2263 = vmatpush.bf16.msra.mxu3 %v7176_v61  ;;  %2443 = vmatpush.bf16.msra.mxu0 %v7186_v38  ;;  %v3494_v50 = vld [vmem:[#allocation2 + $0x29] sm:$0x1]  ;;  %v3530_v37 = vld [vmem:[#allocation2 + $0x2a] sm:$0x1]  ;;  %v3638_v22 = vld [vmem:[#allocation2 + $0x2d] sm:$0x1] }
 0x52b   :  { %2016 = vst.msk [vmem:[#allocation2 + $0x30] sm:$0xff] %vm2009_vm6, %v2007_v7  ;;  %v3500_v48 = vpack.c.bf16 %v3494_v50, %v3494_v50  ;;  %v3536_v9 = vpack.c.bf16 %v3530_v37, %v3530_v37  ;;  %v3674_v12 = vld [vmem:[#allocation2 + $0x2e] sm:$0x1]  ;;  %v3644_v61 = vpack.c.bf16 %v3638_v22, %v3638_v22  ;;  %v7210_v50 = vld [vmem:[#allocation10 + $0x170] sm:$0xff]  ;;  %v7204_v22 = vld [vmem:[#allocation10 + $0x140] sm:$0xff] }
 0x52c   :  { %v3680_v38 = vpack.c.bf16 %v3674_v12, %v3674_v12  ;;  %v7203_v7 = vld [vmem:[#allocation10 + $0x138] sm:$0xff]  ;;  %v7216_v12 = vld [vmem:[#allocation10 + $0x1a0] sm:$0xff] }
 0x52d   :  { %6318 = vmatmul.msk.bf16.vlgmr.msra.gmra.mxu2 %vm2009_vm6, %v3212_v15  ;;  %6327 = vmatmul.msk.bf16.vlgmr.msra.gmra.mxu1 %vm2009_vm6, %v3248_v29 }
 0x52e   :  { %v1990_v55 = vpop.f32.mrf.mxu0  ;;  %3522 = vmatpush.bf16.msra.mxu2 %v7247_v40  ;;  %3558 = vmatpush.bf16.msra.mxu1 %v7249_v26  ;;  %v2564_v40 = vpack.c.bf16 %v2558_v47, %v2558_v47  ;;  %v7192_v26 = vld [vmem:[#allocation10 + $0xe0] sm:$0xff] }
 0x52f   :  { %v2000_v17 = vadd.f32 %v1990_v55, %v1938_v16  ;;  %v7279_v16 = vld [vmem:[#allocation10 + $0x398] sm:$0xff]  ;;  %v7281_v55 = vld [vmem:[#allocation10 + $0x3a8] sm:$0xff] }
 0x531   :  { %v2008_v35 = vmax.f32 %v2000_v17, 0.0  ;;  %v7278_v17 = vld [vmem:[#allocation10 + $0x390] sm:$0xff] }
 0x532   :  { %3523 = vmatpush.bf16.msra.mxu2 %v7246_v19  ;;  %3559 = vmatpush.bf16.msra.mxu1 %v7248_v33  ;;  %v3782_v15 = vld [vmem:[#allocation2 + $0x31] sm:$0x1]  ;;  %v3818_v29 = vld [vmem:[#allocation2 + $0x32] sm:$0x1]  ;;  %v3926_v6 = vld [vmem:[#allocation2 + $0x35] sm:$0x1] }
 0x533   :  { %2017 = vst.msk [vmem:[#allocation2 + $0x38] sm:$0xff] %vm2009_vm6, %v2008_v35  ;;  %v3788_v19 = vpack.c.bf16 %v3782_v15, %v3782_v15  ;;  %v3824_v33 = vpack.c.bf16 %v3818_v29, %v3818_v29  ;;  %v2630_v35 = vld [vmem:[#allocation2 + $0x11] sm:$0x1]  ;;  %v3962_v31 = vld [vmem:[#allocation2 + $0x36] sm:$0x1]  ;;  %v7209_v29 = vld [vmem:[#allocation10 + $0x168] sm:$0xff] }
 0x535   :  { %6057 = vmatmul.msk.bf16.vlgmr.msrb.gmra.mxu3 %vm2009_vm6, %v2168_v3  ;;  %6102 = vmatmul.msk.bf16.vlgmr.msrb.gmra.mxu0 %vm2009_vm6, %v2348_v59  ;;  %v2456_v3 = vpack.c.bf16 %v2450_v21, %v2450_v21  ;;  %v2636_v59 = vpack.c.bf16 %v2630_v35, %v2630_v35 }
 0x536   :  { %2334 = vmatpush.bf16.msrb.mxu3 %v7181_v45  ;;  %2514 = vmatpush.bf16.msrb.mxu0 %v7191_v52  ;;  %v7197_v45 = vld [vmem:[#allocation10 + $0x108] sm:$0xff]  ;;  %v7207_v52 = vld [vmem:[#allocation10 + $0x158] sm:$0xff] }
 0x53a   :  { %2335 = vmatpush.bf16.msrb.mxu3 %v7180_v63  ;;  %2515 = vmatpush.bf16.msrb.mxu0 %v7190_v5  ;;  %v7196_v63 = vld [vmem:[#allocation10 + $0x100] sm:$0xff]  ;;  %v7206_v5 = vld [vmem:[#allocation10 + $0x150] sm:$0xff] }
 0x53d   :  { %6354 = vmatmul.msk.bf16.vlgmr.msrb.gmra.mxu2 %vm2009_vm6, %v3356_v18  ;;  %6363 = vmatmul.msk.bf16.vlgmr.msrb.gmra.mxu1 %vm2009_vm6, %v3392_v34  ;;  %v3932_v18 = vpack.c.bf16 %v3926_v6, %v3926_v6  ;;  %v3968_v34 = vpack.c.bf16 %v3962_v31, %v3962_v31  ;;  %v2954_v6 = vld [vmem:[#allocation2 + $0x1a] sm:$0x1] }
 0x53e   :  { %3666 = vmatpush.bf16.msrb.mxu2 %v7255_v20  ;;  %3702 = vmatpush.bf16.msrb.mxu1 %v7257_v10  ;;  %v7287_v20 = vld [vmem:[#allocation10 + $0x3d8] sm:$0xff]  ;;  %v7289_v10 = vld [vmem:[#allocation10 + $0x3e8] sm:$0xff] }
 0x542   :  { %3667 = vmatpush.bf16.msrb.mxu2 %v7254_v1  ;;  %3703 = vmatpush.bf16.msrb.mxu1 %v7256_v30  ;;  %v7286_v1 = vld [vmem:[#allocation10 + $0x3d0] sm:$0xff]  ;;  %v7288_v30 = vld [vmem:[#allocation10 + $0x3e0] sm:$0xff] }
 0x545   :  { %6075 = vmatmul.msk.bf16.vlgmr.msra.gmra.mxu3 %vm2009_vm6, %v2240_v51  ;;  %6120 = vmatmul.msk.bf16.vlgmr.msra.gmra.mxu0 %vm2009_vm6, %v2420_v24  ;;  %v7211_v51 = vld [vmem:[#allocation10 + $0x178] sm:$0xff]  ;;  %v2528_v24 = vpack.c.bf16 %v2522_v28, %v2522_v28  ;;  %v7226_v28 = vld [vmem:[#allocation10 + $0x1f0] sm:$0xff] }
 0x546   :  { %2406 = vmatpush.bf16.msra.mxu3 %v7185_v39  ;;  %2586 = vmatpush.bf16.msra.mxu0 %v7195_v46  ;;  %v7201_v46 = vld [vmem:[#allocation10 + $0x128] sm:$0xff] }
 0x54a   :  { %2407 = vmatpush.bf16.msra.mxu3 %v7184_v42  ;;  %2587 = vmatpush.bf16.msra.mxu0 %v7194_v43  ;;  %v2708_v42 = vpack.c.bf16 %v2702_v13, %v2702_v13  ;;  %v7200_v43 = vld [vmem:[#allocation10 + $0x120] sm:$0xff] }
 0x54d   :  { %6390 = vmatmul.msk.bf16.vlgmr.msra.gmra.mxu2 %vm2009_vm6, %v3500_v48  ;;  %6399 = vmatmul.msk.bf16.vlgmr.msra.gmra.mxu1 %vm2009_vm6, %v3536_v9 }
 0x54e   :  { %3810 = vmatpush.bf16.msra.mxu2 %v7263_v56  ;;  %3846 = vmatpush.bf16.msra.mxu1 %v7265_v57  ;;  %v4070_v56 = vld [vmem:[#allocation2 + $0x39] sm:$0x1]  ;;  %v4106_v57 = vld [vmem:[#allocation2 + $0x3a] sm:$0x1] }
 0x54f   :  { %v4076_v9 = vpack.c.bf16 %v4070_v56, %v4070_v56  ;;  %v2990_v56 = vld [vmem:[#allocation2 + $0x1b] sm:$0x1] }
 0x552   :  { %3811 = vmatpush.bf16.msra.mxu2 %v7262_v41  ;;  %3847 = vmatpush.bf16.msra.mxu1 %v7264_v53  ;;  %v4112_v41 = vpack.c.bf16 %v4106_v57, %v4106_v57 }
 0x555   :  { %6093 = vmatmul.msk.bf16.vlgmr.msrb.gmra.mxu3 %vm2009_vm6, %v2312_v44  ;;  %6138 = vmatmul.msk.bf16.vlgmr.msrb.gmra.mxu0 %vm2009_vm6, %v2492_v32  ;;  %v7217_v44 = vld [vmem:[#allocation10 + $0x1a8] sm:$0xff]  ;;  %v2600_v32 = vpack.c.bf16 %v2594_v23, %v2594_v23  ;;  %v2996_v23 = vpack.c.bf16 %v2990_v56, %v2990_v56  ;;  %v7259_v56 = vld [vmem:[#allocation10 + $0x2f8] sm:$0xff] }
 0x556   :  { %2478 = vmatpush.bf16.msrb.mxu3 %v7189_v54  ;;  %2658 = vmatpush.bf16.msrb.mxu0 %v7199_v62  ;;  %v7205_v62 = vld [vmem:[#allocation10 + $0x148] sm:$0xff] }
 0x55a   :  { %2479 = vmatpush.bf16.msrb.mxu3 %v7188_v0  ;;  %2659 = vmatpush.bf16.msrb.mxu0 %v7198_v14  ;;  %v2780_v0 = vpack.c.bf16 %v2774_v58, %v2774_v58  ;;  %v2018_v14 = vld [vmem:[#allocation12] sm:$0x1]  ;;  %v7214_v58 = vld [vmem:[#allocation10 + $0x190] sm:$0xff] }
 0x55d   :  { %6426 = vmatmul.msk.bf16.vlgmr.msrb.gmra.mxu2 %vm2009_vm6, %v3644_v61  ;;  %6435 = vmatmul.msk.bf16.vlgmr.msrb.gmra.mxu1 %vm2009_vm6, %v3680_v38  ;;  %v4214_v61 = vld [vmem:[#allocation2 + $0x3d] sm:$0x1]  ;;  %v4250_v38 = vld [vmem:[#allocation2 + $0x3e] sm:$0x1] }
 0x55e   :  { %3954 = vmatpush.bf16.msrb.mxu2 %v7271_v2  ;;  %3990 = vmatpush.bf16.msrb.mxu1 %v7273_v25  ;;  %v4220_v47 = vpack.c.bf16 %v4214_v61, %v4214_v61  ;;  %v3134_v61 = vld [vmem:[#allocation2 + $0x1f] sm:$0x1] }
 0x562   :  { %3955 = vmatpush.bf16.msrb.mxu2 %v7270_v36  ;;  %3991 = vmatpush.bf16.msrb.mxu1 %v7272_v4 }
 0x565   :  { %6111 = vmatmul.msk.bf16.vlgmr.msra.gmra.mxu3 %vm2009_vm6, %v2384_v60  ;;  %6156 = vmatmul.msk.bf16.vlgmr.msra.gmra.mxu0 %vm2009_vm6, %v2564_v40  ;;  %v2666_v40 = vld [vmem:[#allocation2 + $0x12] sm:$0x1] }
 0x566   :  { %2550 = vmatpush.bf16.msra.mxu3 %v7193_v27  ;;  %2730 = vmatpush.bf16.msra.mxu0 %v7203_v7  ;;  %v4256_v27 = vpack.c.bf16 %v4250_v38, %v4250_v38 }
 0x56a   :  { %2551 = vmatpush.bf16.msra.mxu3 %v7192_v26  ;;  %2731 = vmatpush.bf16.msra.mxu0 %v7202_v11  ;;  %v2846_v26 = vld [vmem:[#allocation2 + $0x17] sm:$0x1] }
 0x56d   :  { %6462 = vmatmul.msk.bf16.vlgmr.msra.gmra.mxu2 %vm2009_vm6, %v3788_v19  ;;  %6471 = vmatmul.msk.bf16.vlgmr.msra.gmra.mxu1 %vm2009_vm6, %v3824_v33  ;;  %v2852_v19 = vpack.c.bf16 %v2846_v26, %v2846_v26  ;;  %v7208_v33 = vld [vmem:[#allocation10 + $0x160] sm:$0xff]  ;;  %v7242_v26 = vld [vmem:[#allocation10 + $0x270] sm:$0xff] }
 0x56e   :  { %4098 = vmatpush.bf16.msra.mxu2 %v7279_v16  ;;  %4134 = vmatpush.bf16.msra.mxu1 %v7281_v55  ;;  %v7219_v16 = vld [vmem:[#allocation10 + $0x1b8] sm:$0xff]  ;;  %v2672_v55 = vpack.c.bf16 %v2666_v40, %v2666_v40  ;;  %v7220_v40 = vld [vmem:[#allocation10 + $0x1c0] sm:$0xff] }
 0x572   :  { %4099 = vmatpush.bf16.msra.mxu2 %v7278_v17  ;;  %4135 = vmatpush.bf16.msra.mxu1 %v7280_v8  ;;  %v7218_v17 = vld [vmem:[#allocation10 + $0x1b0] sm:$0xff] }
 0x575   :  { %6129 = vmatmul.msk.bf16.vlgmr.msrb.gmra.mxu3 %vm2009_vm6, %v2456_v3  ;;  %6174 = vmatmul.msk.bf16.vlgmr.msrb.gmra.mxu0 %vm2009_vm6, %v2636_v59 }
 0x576   :  { %2622 = vmatpush.bf16.msrb.mxu3 %v7197_v45  ;;  %2802 = vmatpush.bf16.msrb.mxu0 %v7207_v52 }
 0x57a   :  { %2623 = vmatpush.bf16.msrb.mxu3 %v7196_v63  ;;  %2803 = vmatpush.bf16.msrb.mxu0 %v7206_v5  ;;  %v2738_v5 = vld [vmem:[#allocation2 + $0x14] sm:$0x1] }
 0x57d   :  { %6498 = vmatmul.msk.bf16.vlgmr.msrb.gmra.mxu2 %vm2009_vm6, %v3932_v18  ;;  %6507 = vmatmul.msk.bf16.vlgmr.msrb.gmra.mxu1 %vm2009_vm6, %v3968_v34  ;;  %v7227_v18 = vld [vmem:[#allocation10 + $0x1f8] sm:$0xff]  ;;  %v2744_v34 = vpack.c.bf16 %v2738_v5, %v2738_v5 }
 0x57e   :  { %4242 = vmatpush.bf16.msrb.mxu2 %v7287_v20  ;;  %4278 = vmatpush.bf16.msrb.mxu1 %v7289_v10  ;;  %v7213_v10 = vld [vmem:[#allocation10 + $0x188] sm:$0xff] }
 0x582   :  { %v8910_v39 = vpop.f32.mrf.mxu0  ;;  %4243 = vmatpush.bf16.msrb.mxu2 %v7286_v1  ;;  %4279 = vmatpush.bf16.msrb.mxu1 %v7288_v30  ;;  %v2960_v1 = vpack.c.bf16 %v2954_v6, %v2954_v6  ;;  %v7212_v30 = vld [vmem:[#allocation10 + $0x180] sm:$0xff] }
 0x585   :  { %6147 = vmatmul.msk.bf16.vlgmr.msra.gmra.mxu3 %vm2009_vm6, %v2528_v24  ;;  %6192 = vmatmul.msk.bf16.vlgmr.msra.gmra.mxu0 %vm2009_vm6, %v2708_v42 }
 0x586   :  { %2694 = vmatpush.bf16.msra.mxu3 %v7201_v46  ;;  %2874 = vmatpush.bf16.msra.mxu0 %v7211_v51 }
 0x588   :  { %v2049_v37 = vpop.f32.mrf.mxu3 }
 0x589   :  { %v2053_v2 = vadd.f32 %v2049_v37, %v2018_v14  ;;  %v2810_v37 = vld [vmem:[#allocation2 + $0x16] sm:$0x1] }
 0x58a   :  { %v2159_v48 = vpop.f32.mrf.mxu0  ;;  %2695 = vmatpush.bf16.msra.mxu3 %v7200_v43  ;;  %2875 = vmatpush.bf16.msra.mxu0 %v7210_v50 }
 0x58d   :  { %6534 = vmatmul.msk.bf16.vlgmr.msra.gmra.mxu2 %vm2009_vm6, %v4076_v9  ;;  %6543 = vmatmul.msk.bf16.vlgmr.msra.gmra.mxu1 %vm2009_vm6, %v4112_v41  ;;  %v7215_v9 = vld [vmem:[#allocation10 + $0x198] sm:$0xff] }
 0x58e   :  { %v7235_v41 = vld [vmem:[#allocation10 + $0x238] sm:$0xff] }
 0x590   :  { %v2051_v53 = vpop.f32.mrf.mxu3 }
 0x591   :  { %v2816_v53 = vpack.c.bf16 %v2810_v37, %v2810_v37  ;;  %v7237_v37 = vld [vmem:[#allocation10 + $0x248] sm:$0xff] }
 0x592   :  { %v8916_v54 = vpop.f32.mrf.mxu0 }
 0x595   :  { %6165 = vmatmul.msk.bf16.vlgmr.msrb.gmra.mxu3 %vm2009_vm6, %v2600_v32  ;;  %6210 = vmatmul.msk.bf16.vlgmr.msrb.gmra.mxu0 %vm2009_vm6, %v2780_v0 }
 0x596   :  { %2766 = vmatpush.bf16.msrb.mxu3 %v7205_v62  ;;  %2982 = vmatpush.bf16.msrb.mxu0 %v7217_v44 }
 0x598   :  { %v2085_v25 = vpop.f32.mrf.mxu3 }
 0x599   :  { %v2089_v36 = vadd.f32 %v2085_v25, %v2053_v2  ;;  %v2882_v25 = vld [vmem:[#allocation2 + $0x18] sm:$0x1] }
 0x59a   :  { %v2231_v4 = vpop.f32.mrf.mxu0  ;;  %v8920_v49 = vpop.f32.mrf.mxu1  ;;  %2767 = vmatpush.bf16.msrb.mxu3 %v7204_v22  ;;  %2983 = vmatpush.bf16.msrb.mxu0 %v7216_v12 }
 0x59b   :  { %v7221_v4 = vld [vmem:[#allocation10 + $0x1c8] sm:$0xff] }
 0x59d   :  { %6570 = vmatmul.msk.bf16.vlgmr.msrb.gmra.mxu2 %vm2009_vm6, %v4220_v47  ;;  %6579 = vmatmul.msk.bf16.vlgmr.msrb.gmra.mxu1 %vm2009_vm6, %v4256_v27  ;;  %v7243_v47 = vld [vmem:[#allocation10 + $0x278] sm:$0xff]  ;;  %v2888_v27 = vpack.c.bf16 %v2882_v25, %v2882_v25 }
 0x5a0   :  { %v2087_v7 = vpop.f32.mrf.mxu3  ;;  %v8924_v60 = vpop.f32.mrf.mxu2 }
 0x5a1   :  { %v3140_v7 = vpack.c.bf16 %v3134_v61, %v3134_v61 }
 0x5a2   :  { %v8926_v11 = vpop.f32.mrf.mxu0  ;;  %v3131_v15 = vpop.f32.mrf.mxu1 }
 0x5a5   :  { %6183 = vmatmul.msk.bf16.vlgmr.msra.gmra.mxu3 %vm2009_vm6, %v2672_v55  ;;  %6228 = vmatmul.msk.bf16.vlgmr.msra.gmra.mxu0 %vm2009_vm6, %v2852_v19 }
 0x5a6   :  { %2838 = vmatpush.bf16.msra.mxu3 %v7209_v29  ;;  %3018 = vmatpush.bf16.msra.mxu0 %v7219_v16 }
 0x5a8   :  { %v2121_v8 = vpop.f32.mrf.mxu3  ;;  %v3095_v21 = vpop.f32.mrf.mxu2 }
 0x5a9   :  { %v2125_v35 = vadd.f32 %v2121_v8, %v2089_v36  ;;  %v2918_v8 = vld [vmem:[#allocation2 + $0x19] sm:$0x1]  ;;  %v3278_v21 = vld [vmem:[#allocation2 + $0x23] sm:$0x1] }
 0x5aa   :  { %v2303_v45 = vpop.f32.mrf.mxu0  ;;  %v8930_v52 = vpop.f32.mrf.mxu1  ;;  %2839 = vmatpush.bf16.msra.mxu3 %v7208_v33  ;;  %3019 = vmatpush.bf16.msra.mxu0 %v7218_v17  ;;  %v2924_v5 = vpack.c.bf16 %v2918_v8, %v2918_v8  ;;  %v3284_v6 = vpack.c.bf16 %v3278_v21, %v3278_v21  ;;  %v3314_v8 = vld [vmem:[#allocation2 + $0x24] sm:$0x1]  ;;  %v3710_v21 = vld [vmem:[#allocation2 + $0x2f] sm:$0x1] }
 0x5ab   :  { %v2161_v3 = vadd.f32 %v8910_v39, %v2125_v35 }
 0x5b0   :  { %v2123_v59 = vpop.f32.mrf.mxu3  ;;  %v8933_v63 = vpop.f32.mrf.mxu2 }
 0x5b1   :  { %v7251_v59 = vld [vmem:[#allocation10 + $0x2b8] sm:$0xff] }
 0x5b2   :  { %v8935_v31 = vpop.f32.mrf.mxu0  ;;  %v3275_v20 = vpop.f32.mrf.mxu1 }
 0x5b3   :  { %v7228_v20 = vld [vmem:[#allocation10 + $0x200] sm:$0xff] }
 0x5b5   :  { %6201 = vmatmul.msk.bf16.vlgmr.msrb.gmra.mxu3 %vm2009_vm6, %v2744_v34  ;;  %6255 = vmatmul.msk.bf16.vlgmr.msrb.gmra.mxu0 %vm2009_vm6, %v2960_v1 }
 0x5b6   :  { %2910 = vmatpush.bf16.msrb.mxu3 %v7213_v10  ;;  %3162 = vmatpush.bf16.msrb.mxu0 %v7227_v18 }
 0x5b8   :  { %v2193_v13 = vpop.f32.mrf.mxu3  ;;  %v3239_v39 = vpop.f32.mrf.mxu2 }
 0x5b9   :  { %v2197_v46 = vadd.f32 %v2193_v13, %v2161_v3  ;;  %v7229_v3 = vld [vmem:[#allocation10 + $0x208] sm:$0xff] }
 0x5ba   :  { %v2375_v51 = vpop.f32.mrf.mxu0  ;;  %v8939_v24 = vpop.f32.mrf.mxu1  ;;  %2911 = vmatpush.bf16.msrb.mxu3 %v7212_v30  ;;  %3163 = vmatpush.bf16.msrb.mxu0 %v7226_v28 }
 0x5bb   :  { %v2233_v42 = vadd.f32 %v8916_v54, %v2197_v46  ;;  %v7234_v54 = vld [vmem:[#allocation10 + $0x230] sm:$0xff]  ;;  %v3026_v46 = vld [vmem:[#allocation2 + $0x1c] sm:$0x1] }
 0x5bc   :  { %v3422_v51 = vld [vmem:[#allocation2 + $0x27] sm:$0x1] }
 0x5c0   :  { %v2195_v43 = vpop.f32.mrf.mxu3  ;;  %v8942_v50 = vpop.f32.mrf.mxu2 }
 0x5c2   :  { %v8944_v57 = vpop.f32.mrf.mxu0  ;;  %v3419_v48 = vpop.f32.mrf.mxu1 }
 0x5c3   :  { %v3032_v48 = vpack.c.bf16 %v3026_v46, %v3026_v46 }
 0x5c5   :  { %6219 = vmatmul.msk.bf16.vlgmr.msra.gmra.mxu3 %vm2009_vm6, %v2816_v53  ;;  %6264 = vmatmul.msk.bf16.vlgmr.msra.gmra.mxu0 %vm2009_vm6, %v2996_v23 }
 0x5c6   :  { %2946 = vmatpush.bf16.msra.mxu3 %v7215_v9  ;;  %3306 = vmatpush.bf16.msra.mxu0 %v7235_v41  ;;  %v3428_v9 = vpack.c.bf16 %v3422_v51, %v3422_v51  ;;  %v7236_v41 = vld [vmem:[#allocation10 + $0x240] sm:$0xff] }
 0x5c8   :  { %v2265_v62 = vpop.f32.mrf.mxu3  ;;  %v3383_v44 = vpop.f32.mrf.mxu2 }
 0x5c9   :  { %v2269_v32 = vadd.f32 %v2265_v62, %v2233_v42 }
 0x5ca   :  { %v2447_v0 = vpop.f32.mrf.mxu0  ;;  %v8948_v14 = vpop.f32.mrf.mxu1  ;;  %2947 = vmatpush.bf16.msra.mxu3 %v7214_v58  ;;  %3307 = vmatpush.bf16.msra.mxu0 %v7234_v54 }
 0x5cb   :  { %v2305_v22 = vadd.f32 %v8926_v11, %v2269_v32 }
 0x5d0   :  { %v2267_v12 = vpop.f32.mrf.mxu3  ;;  %v8951_v2 = vpop.f32.mrf.mxu2 }
 0x5d1   :  { %v3566_v12 = vld [vmem:[#allocation2 + $0x2b] sm:$0x1] }
 0x5d2   :  { %v8953_v38 = vpop.f32.mrf.mxu0  ;;  %v3563_v36 = vpop.f32.mrf.mxu1 }
 0x5d3   :  { %v7245_v36 = vld [vmem:[#allocation10 + $0x288] sm:$0xff] }
 0x5d5   :  { %6237 = vmatmul.msk.bf16.vlgmr.msrb.gmra.mxu3 %vm2009_vm6, %v2888_v27  ;;  %6300 = vmatmul.msk.bf16.vlgmr.msrb.gmra.mxu0 %vm2009_vm6, %v3140_v7  ;;  %v3572_v27 = vpack.c.bf16 %v3566_v12, %v3566_v12  ;;  %v7244_v7 = vld [vmem:[#allocation10 + $0x280] sm:$0xff] }
 0x5d6   :  { %3054 = vmatpush.bf16.msrb.mxu3 %v7221_v4  ;;  %3450 = vmatpush.bf16.msrb.mxu0 %v7243_v47  ;;  %v7267_v4 = vld [vmem:[#allocation10 + $0x338] sm:$0xff] }
 0x5d8   :  { %v2337_v11 = vpop.f32.mrf.mxu3  ;;  %v3527_v15 = vpop.f32.mrf.mxu2 }
 0x5d9   :  { %v2341_v29 = vadd.f32 %v2337_v11, %v2305_v22  ;;  %v3170_v22 = vld [vmem:[#allocation2 + $0x20] sm:$0x1] }
 0x5da   :  { %v2519_v16 = vpop.f32.mrf.mxu0  ;;  %v8957_v55 = vpop.f32.mrf.mxu1  ;;  %3055 = vmatpush.bf16.msrb.mxu3 %v7220_v40  ;;  %3451 = vmatpush.bf16.msrb.mxu0 %v7242_v26  ;;  %v3176_v47 = vpack.c.bf16 %v3170_v22, %v3170_v22 }
 0x5db   :  { %v2377_v19 = vadd.f32 %v8935_v31, %v2341_v29  ;;  %v7250_v31 = vld [vmem:[#allocation10 + $0x2b0] sm:$0xff] }
 0x5e0   :  { %v2339_v33 = vpop.f32.mrf.mxu3  ;;  %v8960_v17 = vpop.f32.mrf.mxu2 }
 0x5e2   :  { %v8962_v35 = vpop.f32.mrf.mxu0  ;;  %v3707_v45 = vpop.f32.mrf.mxu1 }
 0x5e5   :  { %6246 = vmatmul.msk.bf16.vlgmr.msra.gmra.mxu3 %vm2009_vm6, %v2924_v5  ;;  %6336 = vmatmul.msk.bf16.vlgmr.msra.gmra.mxu0 %vm2009_vm6, %v3284_v6  ;;  %v7275_v5 = vld [vmem:[#allocation10 + $0x378] sm:$0xff]  ;;  %v3320_v6 = vpack.c.bf16 %v3314_v8, %v3314_v8 }
 0x5e6   :  { %3198 = vmatpush.bf16.msra.mxu3 %v7229_v3  ;;  %3594 = vmatpush.bf16.msra.mxu0 %v7251_v59  ;;  %v7253_v59 = vld [vmem:[#allocation10 + $0x2c8] sm:$0xff]  ;;  %v3746_v8 = vld [vmem:[#allocation2 + $0x30] sm:$0x1] }
 0x5e8   :  { %v2409_v10 = vpop.f32.mrf.mxu3  ;;  %v3671_v18 = vpop.f32.mrf.mxu2 }
 0x5e9   :  { %v2413_v34 = vadd.f32 %v2409_v10, %v2377_v19  ;;  %v7274_v10 = vld [vmem:[#allocation10 + $0x370] sm:$0xff] }
 0x5ea   :  { %v2591_v1 = vpop.f32.mrf.mxu0  ;;  %v8966_v30 = vpop.f32.mrf.mxu1  ;;  %3199 = vmatpush.bf16.msra.mxu3 %v7228_v20  ;;  %3595 = vmatpush.bf16.msra.mxu0 %v7250_v31  ;;  %v3716_v20 = vpack.c.bf16 %v3710_v21, %v3710_v21  ;;  %v7252_v31 = vld [vmem:[#allocation10 + $0x2c0] sm:$0xff]  ;;  %v4142_v21 = vld [vmem:[#allocation2 + $0x3b] sm:$0x1] }
 0x5eb   :  { %v2449_v28 = vadd.f32 %v8944_v57, %v2413_v34  ;;  %v7258_v57 = vld [vmem:[#allocation10 + $0x2f0] sm:$0xff] }
 0x5f0   :  { %v2411_v13 = vpop.f32.mrf.mxu3  ;;  %v8969_v39 = vpop.f32.mrf.mxu2 }
 0x5f2   :  { %v8971_v42 = vpop.f32.mrf.mxu0  ;;  %v3851_v43 = vpop.f32.mrf.mxu1 }
 0x5f3   :  { %v3458_v43 = vld [vmem:[#allocation2 + $0x28] sm:$0x1] }
 0x5f5   :  { %6273 = vmatmul.msk.bf16.vlgmr.msrb.gmra.mxu3 %vm2009_vm6, %v3032_v48  ;;  %6372 = vmatmul.msk.bf16.vlgmr.msrb.gmra.mxu0 %vm2009_vm6, %v3428_v9  ;;  %v7261_v9 = vld [vmem:[#allocation10 + $0x308] sm:$0xff] }
 0x5f6   :  { %3342 = vmatpush.bf16.msrb.mxu3 %v7237_v37  ;;  %3738 = vmatpush.bf16.msrb.mxu0 %v7259_v56  ;;  %v3854_v37 = vld [vmem:[#allocation2 + $0x33] sm:$0x1] }
 0x5f8   :  { %v2481_v53 = vpop.f32.mrf.mxu3  ;;  %v3815_v23 = vpop.f32.mrf.mxu2 }
 0x5f9   :  { %v2485_v58 = vadd.f32 %v2481_v53, %v2449_v28  ;;  %v3860_v53 = vpack.c.bf16 %v3854_v37, %v3854_v37  ;;  %v7260_v23 = vld [vmem:[#allocation10 + $0x300] sm:$0xff] }
 0x5fa   :  { %v2663_v54 = vpop.f32.mrf.mxu0  ;;  %v8975_v62 = vpop.f32.mrf.mxu1  ;;  %3343 = vmatpush.bf16.msrb.mxu3 %v7236_v41  ;;  %3739 = vmatpush.bf16.msrb.mxu0 %v7258_v57  ;;  %v7283_v41 = vld [vmem:[#allocation10 + $0x3b8] sm:$0xff]  ;;  %v3464_v57 = vpack.c.bf16 %v3458_v43, %v3458_v43 }
 0x5fb   :  { %v2521_v44 = vadd.f32 %v8953_v38, %v2485_v58  ;;  %v7266_v38 = vld [vmem:[#allocation10 + $0x330] sm:$0xff] }
 0x5fc   :  { %v7282_v58 = vld [vmem:[#allocation10 + $0x3b0] sm:$0xff] }
 0x600   :  { %v2483_v32 = vpop.f32.mrf.mxu3  ;;  %v8978_v0 = vpop.f32.mrf.mxu2 }
 0x602   :  { %v8980_v25 = vpop.f32.mrf.mxu0  ;;  %v3995_v61 = vpop.f32.mrf.mxu1 }
 0x603   :  { %v3602_v61 = vld [vmem:[#allocation2 + $0x2c] sm:$0x1] }
 0x605   :  { %6309 = vmatmul.msk.bf16.vlgmr.msra.gmra.mxu3 %vm2009_vm6, %v3176_v47  ;;  %6408 = vmatmul.msk.bf16.vlgmr.msra.gmra.mxu0 %vm2009_vm6, %v3572_v27  ;;  %v7269_v47 = vld [vmem:[#allocation10 + $0x348] sm:$0xff]  ;;  %v7291_v27 = vld [vmem:[#allocation10 + $0x3f8] sm:$0xff] }
 0x606   :  { %3486 = vmatpush.bf16.msra.mxu3 %v7245_v36  ;;  %3882 = vmatpush.bf16.msra.mxu0 %v7267_v4  ;;  %v3998_v36 = vld [vmem:[#allocation2 + $0x37] sm:$0x1] }
 0x608   :  { %v2553_v40 = vpop.f32.mrf.mxu3  ;;  %v3959_v26 = vpop.f32.mrf.mxu2 }
 0x609   :  { %v2557_v11 = vadd.f32 %v2553_v40, %v2521_v44  ;;  %v7268_v40 = vld [vmem:[#allocation10 + $0x340] sm:$0xff]  ;;  %v7290_v26 = vld [vmem:[#allocation10 + $0x3f0] sm:$0xff] }
 0x60a   :  { %v2735_v15 = vpop.f32.mrf.mxu0  ;;  %v8984_v29 = vpop.f32.mrf.mxu1  ;;  %3487 = vmatpush.bf16.msra.mxu3 %v7244_v7  ;;  %3883 = vmatpush.bf16.msra.mxu0 %v7266_v38  ;;  %v3608_v7 = vpack.c.bf16 %v3602_v61, %v3602_v61  ;;  %v4004_v38 = vpack.c.bf16 %v3998_v36, %v3998_v36 }
 0x60b   :  { %v2593_v16 = vadd.f32 %v8962_v35, %v2557_v11 }
 0x610   :  { %v2555_v19 = vpop.f32.mrf.mxu3  ;;  %v8987_v33 = vpop.f32.mrf.mxu2 }
 0x612   :  { %v2805_v45 = vpop.f32.mrf.mxu0  ;;  %v4139_v3 = vpop.f32.mrf.mxu1 }
 0x615   :  { %6345 = vmatmul.msk.bf16.vlgmr.msrb.gmra.mxu3 %vm2009_vm6, %v3320_v6  ;;  %6444 = vmatmul.msk.bf16.vlgmr.msrb.gmra.mxu0 %vm2009_vm6, %v3716_v20  ;;  %v4148_v6 = vpack.c.bf16 %v4142_v21, %v4142_v21  ;;  %v7276_v20 = vld [vmem:[#allocation10 + $0x380] sm:$0xff] }
 0x616   :  { %3630 = vmatpush.bf16.msrb.mxu3 %v7253_v59  ;;  %4026 = vmatpush.bf16.msrb.mxu0 %v7275_v5  ;;  %v7277_v59 = vld [vmem:[#allocation10 + $0x388] sm:$0xff]  ;;  %v3752_v5 = vpack.c.bf16 %v3746_v8, %v3746_v8 }
 0x618   :  { %v2625_v35 = vpop.f32.mrf.mxu3  ;;  %v4103_v18 = vpop.f32.mrf.mxu2 }
 0x619   :  { %v2629_v34 = vadd.f32 %v2625_v35, %v2593_v16 }
 0x61a   :  { %v2807_v1 = vpop.f32.mrf.mxu0  ;;  %v8991_v28 = vpop.f32.mrf.mxu1  ;;  %3631 = vmatpush.bf16.msrb.mxu3 %v7252_v31  ;;  %4027 = vmatpush.bf16.msrb.mxu0 %v7274_v10 }
 0x61b   :  { %v2665_v13 = vadd.f32 %v8971_v42, %v2629_v34  ;;  %v4286_v1 = vld [vmem:[#allocation2 + $0x3f] sm:$0x1] }
 0x61c   :  { %v4292_v37 = vpack.c.bf16 %v4286_v1, %v4286_v1 }
 0x620   :  { %v2627_v46 = vpop.f32.mrf.mxu3  ;;  %v8994_v51 = vpop.f32.mrf.mxu2 }
 0x621   :  { %v7285_v46 = vld [vmem:[#allocation10 + $0x3c8] sm:$0xff] }
 0x622   :  { %v2877_v56 = vpop.f32.mrf.mxu0  ;;  %v4283_v48 = vpop.f32.mrf.mxu1 }
 0x623   :  { %v7284_v48 = vld [vmem:[#allocation10 + $0x3c0] sm:$0xff] }
 0x625   :  { %6381 = vmatmul.msk.bf16.vlgmr.msra.gmra.mxu3 %vm2009_vm6, %v3464_v57  ;;  %6480 = vmatmul.msk.bf16.vlgmr.msra.gmra.mxu0 %vm2009_vm6, %v3860_v53 }
 0x626   :  { %3774 = vmatpush.bf16.msra.mxu3 %v7261_v9  ;;  %4170 = vmatpush.bf16.msra.mxu0 %v7283_v41 }
 0x628   :  { %v2697_v42 = vpop.f32.mrf.mxu3  ;;  %v4247_v54 = vpop.f32.mrf.mxu2 }
 0x629   :  { %v2701_v44 = vadd.f32 %v2697_v42, %v2665_v13 }
 0x62a   :  { %v2879_v32 = vpop.f32.mrf.mxu0  ;;  %3775 = vmatpush.bf16.msra.mxu3 %v7260_v23  ;;  %4171 = vmatpush.bf16.msra.mxu0 %v7282_v58  ;;  %v4034_v23 = vld [vmem:[#allocation2 + $0x38] sm:$0x1] }
 0x62b   :  { %v2737_v22 = vadd.f32 %v8980_v25, %v2701_v44  ;;  %v4040_v42 = vpack.c.bf16 %v4034_v23, %v4034_v23 }
 0x630   :  { %v2699_v12 = vpop.f32.mrf.mxu3 }
 0x632   :  { %v2985_v4 = vpop.f32.mrf.mxu0 }
 0x635   :  { %6417 = vmatmul.msk.bf16.vlgmr.msrb.gmra.mxu3 %vm2009_vm6, %v3608_v7  ;;  %6516 = vmatmul.msk.bf16.vlgmr.msrb.gmra.mxu0 %vm2009_vm6, %v4004_v38 }
 0x636   :  { %3918 = vmatpush.bf16.msrb.mxu3 %v7269_v47  ;;  %4314 = vmatpush.bf16.msrb.mxu0 %v7291_v27  ;;  %v4178_v47 = vld [vmem:[#allocation2 + $0x3c] sm:$0x1] }
 0x637   :  { %v4184_v7 = vpack.c.bf16 %v4178_v47, %v4178_v47 }
 0x638   :  { %v2769_v11 = vpop.f32.mrf.mxu3 }
 0x639   :  { %v2773_v15 = vadd.f32 %v2769_v11, %v2737_v22 }
 0x63a   :  { %v2987_v16 = vpop.f32.mrf.mxu0  ;;  %3919 = vmatpush.bf16.msrb.mxu3 %v7268_v40  ;;  %4315 = vmatpush.bf16.msrb.mxu0 %v7290_v26 }
 0x63b   :  { %v2809_v25 = vadd.f32 %v2805_v45, %v2773_v15  ;;  %v3890_v45 = vld [vmem:[#allocation2 + $0x34] sm:$0x1]  ;;  %v4322_v16 = vld [vmem:[%s9368_s24] sm:$0xf] }
 0x63c   :  { %v3896_v43 = vpack.c.bf16 %v3890_v45, %v3890_v45 }
 0x640   :  { %v2771_v19 = vpop.f32.mrf.mxu3 }
 0x641   :  { %v4324_v19 = vpack.c.bf16 %v4322_v16, %v4322_v16  ;;  %v4428_v16 = vld [vmem:[#allocation16 + $0xc] sm:$0xf] }
 0x642   :  { %v3021_v3 = vpop.f32.mrf.mxu0 }
 0x645   :  { %6453 = vmatmul.msk.bf16.vlgmr.msra.gmra.mxu3 %vm2009_vm6, %v3752_v5  ;;  %6552 = vmatmul.msk.bf16.vlgmr.msra.gmra.mxu0 %vm2009_vm6, %v4148_v6 }
 0x646   :  { %4062 = vmatpush.bf16.msra.mxu3 %v7277_v59 }
 0x648   :  { %v2841_v31 = vpop.f32.mrf.mxu3 }
 0x649   :  { %v2845_v10 = vadd.f32 %v2841_v31, %v2809_v25 }
 0x64a   :  { %v3023_v35 = vpop.f32.mrf.mxu0  ;;  %4063 = vmatpush.bf16.msra.mxu3 %v7276_v20 }
 0x64b   :  { %v2881_v18 = vadd.f32 %v2877_v56, %v2845_v10  ;;  %v4323_v56 = vld [vmem:[#allocation13] sm:$0x3] }
 0x64c   :  { %v4335_v54 = vsel %vm4333_vm7, %v4323_v56, 0 }
 0x650   :  { %v2843_v34 = vpop.f32.mrf.mxu3 }
 0x652   :  { %v3165_v13 = vpop.f32.mrf.mxu0 }
 0x655   :  { %6489 = vmatmul.msk.bf16.vlgmr.msrb.gmra.mxu3 %vm2009_vm6, %v3896_v43  ;;  %6588 = vmatmul.msk.bf16.vlgmr.msrb.gmra.mxu0 %vm2009_vm6, %v4292_v37 }
 0x656   :  { %4206 = vmatpush.bf16.msrb.mxu3 %v7285_v46 }
 0x658   :  { %v2913_v9 = vpop.f32.mrf.mxu3 }
 0x659   :  { %v2917_v41 = vadd.f32 %v2913_v9, %v2881_v18 }
 0x65a   :  { %v3167_v57 = vpop.f32.mrf.mxu0  ;;  %4207 = vmatpush.bf16.msrb.mxu3 %v7284_v48 }
 0x660   :  { %v2915_v53 = vpop.f32.mrf.mxu3 }
 0x662   :  { %v3309_v58 = vpop.f32.mrf.mxu0 }
 0x665   :  { %6525 = vmatmul.msk.bf16.vlgmr.msra.gmra.mxu3 %vm2009_vm6, %v4040_v42 }
 0x666   :  { %4344 = vmatpush.bf16.msra.mxu3 %v4335_v54 }
 0x668   :  { %v2949_v44 = vpop.f32.mrf.mxu3 }
 0x669   :  { %v2953_v32 = vadd.f32 %v2949_v44, %v2917_v41 }
 0x66a   :  { %v3311_v22 = vpop.f32.mrf.mxu0 }
 0x66b   :  { %v2989_v12 = vadd.f32 %v2985_v4, %v2953_v32 }
 0x66d   :  { %v3025_v61 = vadd.f32 %v3021_v3, %v2989_v12 }
 0x670   :  { %v2951_v36 = vpop.f32.mrf.mxu3 }
 0x672   :  { %v3453_v27 = vpop.f32.mrf.mxu0 }
 0x675   :  { %6561 = vmatmul.msk.bf16.vlgmr.msrb.gmra.mxu3 %vm2009_vm6, %v4184_v7 }
 0x678   :  { %v3057_v38 = vpop.f32.mrf.mxu3 }
 0x679   :  { %v3061_v40 = vadd.f32 %v3057_v38, %v3025_v61 }
 0x67a   :  { %v3455_v26 = vpop.f32.mrf.mxu0 }
 0x67b   :  { %v3097_v11 = vadd.f32 %v8924_v60, %v3061_v40  ;;  %v4355_v40 = vld [vmem:[#allocation16] sm:$0xf] }
 0x67c   :  { %v4362_v26 = vsel %vm416_vm0, %v4355_v40, 0  ;;  %v7323_v40 = vld [vmem:[%s9330_s14 + $0xf4] sm:$0xf0] }
 0x67d   :  { %v3133_v15 = vadd.f32 %v8920_v49, %v3097_v11  ;;  %4371 = vmatpush.bf16.msra.mxu2 %v4362_v26  ;;  %v7321_v26 = vld [vmem:[%s9330_s14 + $0xec] sm:$0xf] }
 0x67f   :  { %v3169_v25 = vadd.f32 %v3165_v13, %v3133_v15 }
 0x680   :  { %v3059_v4 = vpop.f32.mrf.mxu3 }
 0x681   :  { %v4434_v4 = vsel %vm416_vm0, %v4428_v16, 0  ;;  %v7318_v16 = vld [vmem:[%s9330_s14 + $0xcc] sm:$0xf0] }
 0x682   :  { %v3597_v8 = vpop.f32.mrf.mxu0  ;;  %4443 = vmatpush.bf16.msrb.mxu3 %v4434_v4 }
 0x685   :  { %6589 = vmatmul.msk.bf16.vlgmr.msra.gmra.mxu3 %vm4329_vm8, %v4324_v19 }
 0x688   :  { %v3201_v21 = vpop.f32.mrf.mxu3 }
 0x689   :  { %v3205_v3 = vadd.f32 %v3201_v21, %v3169_v25  ;;  %v4380_v25 = vld [vmem:[#allocation16 + $0x4] sm:$0xf] }
 0x68a   :  { %v3599_v59 = vpop.f32.mrf.mxu0 }
 0x68b   :  { %v3241_v5 = vadd.f32 %v8933_v63, %v3205_v3  ;;  %v6612_v59 = vld [vmem:[#allocation19 + $0x20] sm:$0xf] }
 0x68d   :  { %v3277_v6 = vadd.f32 %v8930_v52, %v3241_v5  ;;  %v7330_v5 = vld [vmem:[#allocation19 + $0x2c] sm:$0xf0] }
 0x68f   :  { %v3313_v60 = vadd.f32 %v3309_v58, %v3277_v6 }
 0x690   :  { %v3203_v20 = vpop.f32.mrf.mxu3 }
 0x691   :  { %v6620_v20 = vld [vmem:[#allocation19 + $0x28] sm:$0xf] }
 0x692   :  { %v3741_v49 = vpop.f32.mrf.mxu0 }
 0x698   :  { %v3345_v31 = vpop.f32.mrf.mxu3 }
 0x699   :  { %v3349_v10 = vadd.f32 %v3345_v31, %v3313_v60  ;;  %v6614_v60 = vld [vmem:[#allocation19 + $0x30] sm:$0xf0] }
 0x69a   :  { %v3743_v35 = vpop.f32.mrf.mxu0 }
 0x69b   :  { %v3385_v18 = vadd.f32 %v8942_v50, %v3349_v10  ;;  %v7329_v35 = vld [vmem:[#allocation19 + $0x2c] sm:$0xf] }
 0x69d   :  { %v3421_v34 = vadd.f32 %v8939_v24, %v3385_v18  ;;  %v6622_v18 = vld [vmem:[#allocation19 + $0x38] sm:$0xf0] }
 0x69f   :  { %v3457_v45 = vadd.f32 %v3453_v27, %v3421_v34 }
 0x6a0   :  { %v3347_v1 = vpop.f32.mrf.mxu3 }
 0x6a2   :  { %v3885_v13 = vpop.f32.mrf.mxu0 }
 0x6a8   :  { %v3489_v46 = vpop.f32.mrf.mxu3 }
 0x6a9   :  { %v3493_v43 = vadd.f32 %v3489_v46, %v3457_v45  ;;  %v6625_v45 = vor.u32 %v7329_v35, %v6622_v18  ;;  %v7313_v18 = vld [vmem:[%s9330_s14 + $0xac] sm:$0xf] }
 0x6aa   :  { %v3887_v37 = vpop.f32.mrf.mxu0 }
 0x6ab   :  { %v3529_v63 = vadd.f32 %v8951_v2, %v3493_v43  ;;  %4580 = vmatpush.bf16.msra.mxu3 %v6625_v45  ;;  %v7439_v43 = vld [vmem:[#allocation15] ss:$0 sm:$0xff] }
 0x6ad   :  { %v3565_v52 = vadd.f32 %v8948_v14, %v3529_v63 }
 0x6af   :  { %v3601_v48 = vadd.f32 %v3597_v8, %v3565_v52  ;;  %v4404_v8 = vld [vmem:[#allocation16 + $0x8] sm:$0xf] }
 0x6b0   :  { %v3491_v9 = vpop.f32.mrf.mxu3  ;;  %v4410_v21 = vsel %vm416_vm0, %v4404_v8, 0 }
 0x6b1   :  { %4419 = vmatpush.bf16.msra.mxu0 %v4410_v21 }
 0x6b2   :  { %v4029_v41 = vpop.f32.mrf.mxu0 }
 0x6b8   :  { %v3633_v57 = vpop.f32.mrf.mxu3 }
 0x6b9   :  { %v3637_v53 = vadd.f32 %v3633_v57, %v3601_v48 }
 0x6ba   :  { %v4031_v23 = vpop.f32.mrf.mxu0 }
 0x6bb   :  { %v3673_v50 = vadd.f32 %v8960_v17, %v3637_v53 }
 0x6bd   :  { %v3709_v24 = vadd.f32 %v8957_v55, %v3673_v50 }
 0x6bf   :  { %v3745_v56 = vadd.f32 %v3741_v49, %v3709_v24  ;;  %v7331_v49 = vld [vmem:[#allocation19 + $0x34] sm:$0xf0]  ;;  %v6596_v24 = vld [vmem:[#allocation19] sm:$0xf] }
 0x6c0   :  { %v3635_v58 = vpop.f32.mrf.mxu3  ;;  %v6621_v10 = vor.u32 %v7331_v49, %v6620_v20  ;;  %v6714_v20 = vld [vmem:[%s9330_s14 + $0xb0] sm:$0xf0]  ;;  %v6720_v49 = vld [vmem:[%s9330_s14 + $0xa8] sm:$0xf] }
 0x6c1   :  { %v7324_v58 = vld [vmem:[#allocation19 + $0x4] sm:$0xf] }
 0x6c2   :  { %v4173_v42 = vpop.f32.mrf.mxu0  ;;  %4567 = vmatpush.bf16.msrb.mxu0 %v6621_v10 }
 0x6c8   :  { %v3777_v54 = vpop.f32.mrf.mxu3 }
 0x6c9   :  { %v3781_v44 = vadd.f32 %v3777_v54, %v3745_v56  ;;  %v7326_v56 = vld [vmem:[#allocation19 + $0xc] sm:$0xf0]  ;;  %v6598_v54 = vld [vmem:[#allocation19 + $0x10] sm:$0xf0] }
 0x6ca   :  { %v4175_v32 = vpop.f32.mrf.mxu0 }
 0x6cb   :  { %v3817_v2 = vadd.f32 %v8969_v39, %v3781_v44  ;;  %v6604_v44 = vld [vmem:[#allocation19 + $0x8] sm:$0xf]  ;;  %v7327_v32 = vld [vmem:[#allocation19 + $0x14] sm:$0xf0] }
 0x6cd   :  { %v3853_v14 = vadd.f32 %v8966_v30, %v3817_v2  ;;  %v6601_v2 = vor.u32 %v7324_v58, %v6598_v54  ;;  %v6688_v58 = vld [vmem:[%s9330_s14 + $0x68] sm:$0xf] }
 0x6cf   :  { %v3889_v22 = vadd.f32 %v3885_v13, %v3853_v14  ;;  %v6605_v14 = vor.u32 %v7327_v32, %v6604_v44  ;;  %v7305_v32 = vld [vmem:[%s9330_s14 + $0x6c] sm:$0xf] }
 0x6d0   :  { %v3779_v12 = vpop.f32.mrf.mxu3 }
 0x6d1   :  { %v6606_v12 = vld [vmem:[#allocation19 + $0x18] sm:$0xf0]  ;;  %4568 = vmatpush.bf16.msrb.mxu0 %v6605_v14  ;;  %v6664_v14 = vld [vmem:[%s9330_s14 + $0x40] sm:$0xf] }
 0x6d2   :  { %v4317_v61 = vpop.f32.mrf.mxu0 }
 0x6d8   :  { %v3921_v36 = vpop.f32.mrf.mxu3 }
 0x6d9   :  { %v3925_v47 = vadd.f32 %v3921_v36, %v3889_v22  ;;  %v7325_v22 = vld [vmem:[#allocation19 + $0xc] sm:$0xf] }
 0x6da   :  { %v4319_v27 = vpop.f32.mrf.mxu0  ;;  %v6609_v36 = vor.u32 %v7325_v22, %v6606_v12  ;;  %v7302_v12 = vld [vmem:[%s9330_s14 + $0x4c] sm:$0xf0] }
 0x6db   :  { %v3961_v17 = vadd.f32 %v8978_v0, %v3925_v47  ;;  %v4386_v0 = vsel %vm416_vm0, %v4380_v25, 0  ;;  %v7322_v47 = vld [vmem:[%s9330_s14 + $0xec] sm:$0xf0]  ;;  %v7320_v27 = vld [vmem:[%s9330_s14 + $0xe4] sm:$0xf] }
 0x6dc   :  { %4395 = vmatpush.bf16.msra.mxu1 %v4386_v0  ;;  %4581 = vmatpush.bf16.msra.mxu3 %v6609_v36  ;;  %v7316_v25 = vld [vmem:[%s9330_s14 + $0xc4] sm:$0xf]  ;;  %v6730_v0 = vld [vmem:[%s9330_s14 + $0xd0] sm:$0xf0] }
 0x6dd   :  { %v3997_v55 = vadd.f32 %v8975_v62, %v3961_v17  ;;  %v6746_v17 = vld [vmem:[%s9330_s14 + $0xf0] sm:$0xf0]  ;;  %v6733_v8 = vor.u32 %v7316_v25, %v6730_v0  ;;  %v7299_v25 = vld [vmem:[%s9330_s14 + $0x34] sm:$0xf0]  ;;  %v6658_v0 = vld [vmem:[%s9330_s14 + $0x38] sm:$0xf0] }
 0x6de   :  { %v6666_v36 = vld [vmem:[%s9330_s14 + $0x50] sm:$0xf0] }
 0x6df   :  { %v4033_v7 = vadd.f32 %v4029_v41, %v3997_v55 }
 0x6e0   :  { %v3923_v38 = vpop.f32.mrf.mxu3 }
 0x6e1   :  { %v6752_v38 = vld [vmem:[%s9330_s14 + $0xe8] sm:$0xf] }
 0x6e8   :  { %v4065_v11 = vpop.f32.mrf.mxu3 }
 0x6e9   :  { %v4069_v39 = vadd.f32 %v4065_v11, %v4033_v7  ;;  %v6749_v7 = vor.u32 %v7320_v27, %v6746_v17  ;;  %v6753_v11 = vor.u32 %v7323_v40, %v6752_v38  ;;  %v7303_v27 = vld [vmem:[%s9330_s14 + $0x54] sm:$0xf0]  ;;  %v7301_v17 = vld [vmem:[%s9330_s14 + $0x4c] sm:$0xf] }
 0x6eb   :  { %v4105_v30 = vadd.f32 %v8987_v33, %v4069_v39  ;;  %v7328_v33 = vld [vmem:[#allocation19 + $0x24] sm:$0xf]  ;;  %v6754_v39 = vld [vmem:[%s9330_s14 + $0xf8] sm:$0xf0] }
 0x6ec   :  { %v6617_v31 = vor.u32 %v7328_v33, %v6614_v60  ;;  %v6712_v33 = vld [vmem:[%s9330_s14 + $0xa0] sm:$0xf] }
 0x6ed   :  { %v4141_v15 = vadd.f32 %v8984_v29, %v4105_v30  ;;  %v6613_v29 = vor.u32 %v7330_v5, %v6612_v59  ;;  %v6757_v30 = vor.u32 %v7321_v26, %v6754_v39  ;;  %v6738_v59 = vld [vmem:[%s9330_s14 + $0xd8] sm:$0xf0]  ;;  %v6648_v26 = vld [vmem:[%s9330_s14 + $0x20] sm:$0xf]  ;;  %v7296_v39 = vld [vmem:[%s9330_s14 + $0x24] sm:$0xf] }
 0x6ee   :  { %4554 = vmatpush.bf16.msrb.mxu1 %v6617_v31  ;;  %v7315_v31 = vld [vmem:[%s9330_s14 + $0xb4] sm:$0xf0] }
 0x6ef   :  { %v4177_v19 = vadd.f32 %v4173_v42, %v4141_v15  ;;  %4541 = vmatpush.bf16.msrb.mxu2 %v6613_v29  ;;  %v6597_v42 = vor.u32 %v7326_v56, %v6596_v24  ;;  %v6728_v15 = vld [vmem:[%s9330_s14 + $0xc0] sm:$0xf]  ;;  %v7312_v29 = vld [vmem:[%s9330_s14 + $0xa4] sm:$0xf]  ;;  %v6721_v35 = vor.u32 %v7315_v31, %v6720_v49  ;;  %v6682_v56 = vld [vmem:[%s9330_s14 + $0x70] sm:$0xf0] }
 0x6f0   :  { %v4067_v62 = vpop.f32.mrf.mxu3  ;;  %v6729_v4 = vor.u32 %v7318_v16, %v6728_v15  ;;  %v6717_v10 = vor.u32 %v7312_v29, %v6714_v20  ;;  %v6650_v15 = vld [vmem:[%s9330_s14 + $0x30] sm:$0xf0]  ;;  %v6656_v16 = vld [vmem:[%s9330_s14 + $0x28] sm:$0xf]  ;;  %v7295_v29 = vld [vmem:[%s9330_s14 + $0x14] sm:$0xf0] }
 0x6f1   :  { %v7319_v62 = vld [vmem:[%s9330_s14 + $0xd4] sm:$0xf0]  ;;  %v6642_v20 = vld [vmem:[%s9330_s14 + $0x18] sm:$0xf0] }
 0x6f2   :  { %4555 = vmatpush.bf16.msrb.mxu1 %v6601_v2  ;;  %v6690_v2 = vld [vmem:[%s9330_s14 + $0x78] sm:$0xf0] }
 0x6f3   :  { %4542 = vmatpush.bf16.msrb.mxu2 %v6597_v42  ;;  %v7307_v42 = vld [vmem:[%s9330_s14 + $0x74] sm:$0xf0]  ;;  %v6693_v22 = vor.u32 %v7305_v32, %v6690_v2  ;;  %v7363_v32 = vld [vmem:[#allocation22 + $0xf4] sm:$0xf0]  ;;  %v7362_v2 = vld [vmem:[#allocation22 + $0xf4] sm:$0xf] }
 0x6f4   :  { %v6689_v44 = vor.u32 %v7307_v42, %v6688_v58 }
 0x6f8   :  { %v4209_v3 = vpop.f32.mrf.mxu3 }
 0x6f9   :  { %v4213_v6 = vadd.f32 %v4209_v3, %v4177_v19  ;;  %v6736_v19 = vld [vmem:[%s9330_s14 + $0xc8] sm:$0xf]  ;;  %v7317_v3 = vld [vmem:[%s9330_s14 + $0xcc] sm:$0xf] }
 0x6fa   :  { %v6737_v21 = vor.u32 %v7319_v62, %v6736_v19  ;;  %v6741_v5 = vor.u32 %v7317_v3, %v6738_v59  ;;  %v6653_v62 = vor.u32 %v7296_v39, %v6650_v15  ;;  %v7294_v3 = vld [vmem:[%s9330_s14 + $0xc] sm:$0xf0]  ;;  %v7292_v59 = vld [vmem:[%s9330_s14 + $0x4] sm:$0xf]  ;;  %v7346_v39 = vld [vmem:[#allocation22 + $0x74] sm:$0xf] }
 0x6fb   :  { %v4249_v34 = vadd.f32 %v8994_v51, %v4213_v6  ;;  %v7314_v6 = vld [vmem:[%s9330_s14 + $0xac] sm:$0xf0]  ;;  %v6868_v15 = vld [vmem:[#allocation22 + $0xd0] sm:$0xf] }
 0x6fc   :  { %v6713_v60 = vor.u32 %v7314_v6, %v6712_v33  ;;  %v6634_v33 = vld [vmem:[%s9330_s14 + $0x10] sm:$0xf0]  ;;  %v6640_v6 = vld [vmem:[%s9330_s14 + $0x8] sm:$0xf] }
 0x6fd   :  { %v4285_v1 = vadd.f32 %v8991_v28, %v4249_v34  ;;  %v6722_v34 = vld [vmem:[%s9330_s14 + $0xb8] sm:$0xf0] }
 0x6fe   :  { %v6725_v45 = vor.u32 %v7313_v18, %v6722_v34 }
 0x6ff   :  { %v9032_v13 = vadd.f32 %v4317_v61, %v4285_v1  ;;  %v6744_v61 = vld [vmem:[%s9330_s14 + $0xe0] sm:$0xf] }
 0x700   :  { %v4211_v46 = vpop.f32.mrf.mxu3  ;;  %v6745_v55 = vor.u32 %v7322_v47, %v6744_v61  ;;  %v6696_v1 = vld [vmem:[%s9330_s14 + $0x80] sm:$0xf]  ;;  %v7300_v61 = vld [vmem:[%s9330_s14 + $0x44] sm:$0xf]  ;;  %v6672_v47 = vld [vmem:[%s9330_s14 + $0x48] sm:$0xf] }
 0x701   :  { %v7310_v46 = vld [vmem:[%s9330_s14 + $0x8c] sm:$0xf0]  ;;  %v6669_v38 = vor.u32 %v7300_v61, %v6666_v36  ;;  %v6673_v40 = vor.u32 %v7303_v27, %v6672_v47  ;;  %v4799_v36 = vld [vmem:[%s9369_s17] sm:$0x1]  ;;  %v6876_v27 = vld [vmem:[#allocation22 + $0xe0] sm:$0xf] }
 0x702   :  { %v4801_v47 = vpack.c.bf16 %v4799_v36, %v4799_v36  ;;  %v7350_v36 = vld [vmem:[#allocation22 + $0x94] sm:$0xf] }
 0x708   :  { %v4346_v37 = vpop.f32.mrf.mxu3 }
 0x709   :  { %v4347_v63 = vadd.f32 %v7439_v43, %v4346_v37  ;;  %v7308_v43 = vld [vmem:[%s9330_s14 + $0x84] sm:$0xf]  ;;  %v6697_v37 = vor.u32 %v7310_v46, %v6696_v1  ;;  %v4353_v1 = vld [vmem:[#allocation18] sm:$0x1] }
 0x70b   :  { %v4350_v52 = vmax.f32 %v4347_v63, 0.0  ;;  %v6698_v63 = vld [vmem:[%s9330_s14 + $0x90] sm:$0xf0] }
 0x70d   :  { %4352 = vst.msk [vmem:[#allocation3] sm:$0xf] %vm4351_vm9, %v4350_v52  ;;  %v6704_v52 = vld [vmem:[%s9330_s14 + $0x88] sm:$0xf] }
 0x710   :  { %v4348_v48 = vpop.f32.mrf.mxu3 }
 0x711   :  { %v7311_v48 = vld [vmem:[%s9330_s14 + $0x94] sm:$0xf0] }
 0x714   :  { %v4354_v9 = vld [vmem:[#allocation3] sm:$0x1]  ;;  %v4378_v51 = vld [vmem:[#allocation3 + $0x1] sm:$0x1]  ;;  %v4402_v41 = vld [vmem:[#allocation3 + $0x2] sm:$0x1] }
 0x715   :  { %v4356_v57 = vpack.c.bf16 %v4354_v9, %v4354_v9  ;;  %v4381_v53 = vpack.c.bf16 %v4378_v51, %v4378_v51  ;;  %v4405_v23 = vpack.c.bf16 %v4402_v41, %v4402_v41  ;;  %v4426_v50 = vld [vmem:[#allocation3 + $0x3] sm:$0x1]  ;;  %v6701_v9 = vor.u32 %v7308_v43, %v6698_v63  ;;  %v7309_v41 = vld [vmem:[%s9330_s14 + $0x8c] sm:$0xf] }
 0x716   :  { %v4429_v28 = vpack.c.bf16 %v4426_v50, %v4426_v50  ;;  %v6705_v51 = vor.u32 %v7311_v48, %v6704_v52  ;;  %v7306_v50 = vld [vmem:[%s9330_s14 + $0x6c] sm:$0xf0] }
 0x717   :  { %6590 = vmatmul.msk.bf16.vlgmr.msra.gmra.mxu2 %vm4357_vm10, %v4356_v57  ;;  %6591 = vmatmul.msk.bf16.vlgmr.msra.gmra.mxu1 %vm4357_vm10, %v4381_v53  ;;  %v6706_v57 = vld [vmem:[%s9330_s14 + $0x98] sm:$0xf0] }
 0x718   :  { %6592 = vmatmul.msk.bf16.vlgmr.msra.gmra.mxu0 %vm4357_vm10, %v4405_v23  ;;  %6593 = vmatmul.msk.bf16.vlgmr.msrb.gmra.mxu3 %vm4357_vm10, %v4429_v28  ;;  %v6709_v53 = vor.u32 %v7309_v41, %v6706_v57  ;;  %v6680_v23 = vld [vmem:[%s9330_s14 + $0x60] sm:$0xf]  ;;  %v7304_v28 = vld [vmem:[%s9330_s14 + $0x64] sm:$0xf] }
 0x719   :  { %4747 = vmatpush.bf16.msra.mxu2 %v6745_v55  ;;  %4760 = vmatpush.bf16.msra.mxu1 %v6749_v7  ;;  %v6681_v24 = vor.u32 %v7306_v50, %v6680_v23  ;;  %v6685_v54 = vor.u32 %v7304_v28, %v6682_v56  ;;  %v6665_v55 = vor.u32 %v7302_v12, %v6664_v14  ;;  %v6674_v7 = vld [vmem:[%s9330_s14 + $0x58] sm:$0xf0]  ;;  %v6886_v14 = vld [vmem:[#allocation22 + $0xf8] sm:$0xf0] }
 0x71a   :  { %4773 = vmatpush.bf16.msra.mxu0 %v6753_v11  ;;  %4786 = vmatpush.bf16.msrb.mxu3 %v6757_v30  ;;  %v7298_v11 = vld [vmem:[%s9330_s14 + $0x2c] sm:$0xf0]  ;;  %v6677_v30 = vor.u32 %v7301_v17, %v6674_v7  ;;  %v6889_v61 = vor.u32 %v7362_v2, %v6886_v14  ;;  %v7360_v17 = vld [vmem:[#allocation22 + $0xe4] sm:$0xf]  ;;  %v6878_v7 = vld [vmem:[#allocation22 + $0xe8] sm:$0xf0] }
 0x71b   :  { %v6649_v19 = vor.u32 %v7298_v11, %v6648_v26  ;;  %v6881_v26 = vor.u32 %v7360_v17, %v6878_v7  ;;  %v7338_v2 = vld [vmem:[#allocation22 + $0x34] sm:$0xf]  ;;  %v6790_v14 = vld [vmem:[#allocation22 + $0x38] sm:$0xf0]  ;;  %v6780_v17 = vld [vmem:[#allocation22 + $0x20] sm:$0xf] }
 0x71c   :  { %v7336_v7 = vld [vmem:[#allocation22 + $0x24] sm:$0xf] }
 0x71d   :  { %4748 = vmatpush.bf16.msra.mxu2 %v6729_v4  ;;  %4761 = vmatpush.bf16.msra.mxu1 %v6733_v8  ;;  %v7297_v4 = vld [vmem:[%s9330_s14 + $0x2c] sm:$0xf]  ;;  %v6657_v8 = vor.u32 %v7299_v25, %v6656_v16 }
 0x71e   :  { %4774 = vmatpush.bf16.msra.mxu0 %v6737_v21  ;;  %4787 = vmatpush.bf16.msrb.mxu3 %v6741_v5  ;;  %v6632_v21 = vld [vmem:[%s9330_s14] sm:$0xf]  ;;  %v6661_v5 = vor.u32 %v7297_v4, %v6658_v0  ;;  %v7359_v25 = vld [vmem:[#allocation22 + $0xd4] sm:$0xf0]  ;;  %v7358_v4 = vld [vmem:[#allocation22 + $0xd4] sm:$0xf] }
 0x71f   :  { %v6633_v49 = vor.u32 %v7294_v3, %v6632_v21  ;;  %v6870_v0 = vld [vmem:[#allocation22 + $0xd8] sm:$0xf0]  ;;  %v7345_v21 = vld [vmem:[#allocation22 + $0x64] sm:$0xf0]  ;;  %v7344_v3 = vld [vmem:[#allocation22 + $0x64] sm:$0xf] }
 0x721   :  { %4749 = vmatpush.bf16.msra.mxu2 %v6713_v60  ;;  %4762 = vmatpush.bf16.msra.mxu1 %v6717_v10  ;;  %v7293_v60 = vld [vmem:[%s9330_s14 + $0xc] sm:$0xf]  ;;  %v6637_v10 = vor.u32 %v7292_v59, %v6634_v33 }
 0x722   :  { %4775 = vmatpush.bf16.msra.mxu0 %v6721_v35  ;;  %4788 = vmatpush.bf16.msrb.mxu3 %v6725_v45  ;;  %v6641_v35 = vor.u32 %v7295_v29, %v6640_v6  ;;  %v6645_v34 = vor.u32 %v7293_v60, %v6642_v20  ;;  %v4800_v45 = vld [vmem:[%s9332_s16] sm:$0xf]  ;;  %v6860_v6 = vld [vmem:[#allocation22 + $0xc0] sm:$0xf]  ;;  %v7356_v60 = vld [vmem:[#allocation22 + $0xc4] sm:$0xf] }
 0x723   :  { %4803 = vst [vmem:[#allocation1] ss:$9 sm:$0xff] %v4800_v45  ;;  %v7357_v29 = vld [vmem:[#allocation22 + $0xc4] sm:$0xf0]  ;;  %v6806_v45 = vld [vmem:[#allocation22 + $0x58] sm:$0xf0] }
 0x724   :  { %v6861_v20 = vor.u32 %v7357_v29, %v6860_v6  ;;  %v6774_v6 = vld [vmem:[#allocation22 + $0x18] sm:$0xf0] }
 0x725   :  { %4750 = vmatpush.bf16.msra.mxu2 %v6697_v37  ;;  %4763 = vmatpush.bf16.msra.mxu1 %v6701_v9 }
 0x726   :  { %4776 = vmatpush.bf16.msra.mxu0 %v6705_v51  ;;  %4789 = vmatpush.bf16.msrb.mxu3 %v6709_v53 }
 0x729   :  { %4751 = vmatpush.bf16.msra.mxu2 %v6681_v24  ;;  %4764 = vmatpush.bf16.msra.mxu1 %v6685_v54 }
 0x72a   :  { %4777 = vmatpush.bf16.msra.mxu0 %v6689_v44  ;;  %4790 = vmatpush.bf16.msrb.mxu3 %v6693_v22  ;;  %v4804_v41 = vld [vmem:[#allocation1] sm:$0xff]  ;;  %v4805_v57 = vld [vmem:[#allocation1 + $0x9] sm:$0xff]  ;;  %v4806_v23 = vld [vmem:[#allocation1 + $0x12] sm:$0xff]  ;;  %v4482_v22 = vpack.c.bf16 %v9032_v13, %v9032_v13 }
 0x72b   :  { %v4807_v50 = vld [vmem:[#allocation1 + $0x1b] sm:$0xff]  ;;  %v4812_v56 = vsel %vm1055_vm3, %v4804_v41, 0  ;;  %v4814_v58 = vsel %vm1055_vm3, %v4805_v57, 0  ;;  %v4816_v42 = vsel %vm1055_vm3, %v4806_v23, 0  ;;  %v6884_v44 = vld [vmem:[#allocation22 + $0xf0] sm:$0xf] }
 0x72c   :  { %v4818_v54 = vsel %vm1055_vm3, %v4807_v50, 0  ;;  %v6885_v12 = vor.u32 %v7363_v32, %v6884_v44  ;;  %v7361_v13 = vld [vmem:[#allocation22 + $0xe4] sm:$0xf0]  ;;  %v7340_v41 = vld [vmem:[#allocation22 + $0x44] sm:$0xf] }
 0x72d   :  { %4752 = vmatpush.bf16.msra.mxu2 %v6665_v55  ;;  %4765 = vmatpush.bf16.msra.mxu1 %v6669_v38  ;;  %v6877_v55 = vor.u32 %v7361_v13, %v6876_v27  ;;  %v6820_v38 = vld [vmem:[#allocation22 + $0x70] sm:$0xf]  ;;  %v6844_v50 = vld [vmem:[#allocation22 + $0xa0] sm:$0xf] }
 0x72e   :  { %4778 = vmatpush.bf16.msra.mxu0 %v6673_v40  ;;  %4791 = vmatpush.bf16.msrb.mxu3 %v6677_v30  ;;  %v7347_v40 = vld [vmem:[#allocation22 + $0x74] sm:$0xf0]  ;;  %v6822_v30 = vld [vmem:[#allocation22 + $0x78] sm:$0xf0] }
 0x72f   :  { %v6821_v11 = vor.u32 %v7347_v40, %v6820_v38  ;;  %v6825_v16 = vor.u32 %v7346_v39, %v6822_v30  ;;  %v6782_v40 = vld [vmem:[#allocation22 + $0x28] sm:$0xf0] }
 0x730   :  { %v6785_v39 = vor.u32 %v7336_v7, %v6782_v40  ;;  %v6932_v7 = vld [vmem:[#allocation24 + $0x50] sm:$0xf]  ;;  %v7374_v40 = vld [vmem:[#allocation24 + $0x54] sm:$0xf] }
 0x731   :  { %4753 = vmatpush.bf16.msra.mxu2 %v6649_v19  ;;  %4766 = vmatpush.bf16.msra.mxu1 %v6653_v62  ;;  %v6869_v19 = vor.u32 %v7359_v25, %v6868_v15  ;;  %v6873_v62 = vor.u32 %v7358_v4, %v6870_v0  ;;  %v7348_v15 = vld [vmem:[#allocation22 + $0x84] sm:$0xf]  ;;  %v7012_v25 = vld [vmem:[#allocation24 + $0xf0] sm:$0xf]  ;;  %v7395_v0 = vld [vmem:[#allocation24 + $0xf4] sm:$0xf0] }
 0x732   :  { %4779 = vmatpush.bf16.msra.mxu0 %v6657_v8  ;;  %4792 = vmatpush.bf16.msrb.mxu3 %v6661_v5  ;;  %v6812_v8 = vld [vmem:[#allocation22 + $0x60] sm:$0xf]  ;;  %v6814_v5 = vld [vmem:[#allocation22 + $0x68] sm:$0xf0] }
 0x733   :  { %v6813_v59 = vor.u32 %v7345_v21, %v6812_v8  ;;  %v6817_v33 = vor.u32 %v7344_v3, %v6814_v5  ;;  %v7013_v8 = vor.u32 %v7395_v0, %v7012_v25  ;;  %v6772_v3 = vld [vmem:[#allocation22 + $0x10] sm:$0xf]  ;;  %v7334_v5 = vld [vmem:[#allocation22 + $0x14] sm:$0xf] }
 0x734   :  { %v6777_v29 = vor.u32 %v7334_v5, %v6774_v6  ;;  %v7386_v25 = vld [vmem:[#allocation24 + $0xb4] sm:$0xf]  ;;  %v6926_v5 = vld [vmem:[#allocation24 + $0x48] sm:$0xf0]  ;;  %v7385_v6 = vld [vmem:[#allocation24 + $0xa4] sm:$0xf0] }
 0x735   :  { %4754 = vmatpush.bf16.msra.mxu2 %v6633_v49  ;;  %4767 = vmatpush.bf16.msra.mxu1 %v6637_v10  ;;  %v6862_v49 = vld [vmem:[#allocation22 + $0xc8] sm:$0xf0]  ;;  %v7343_v10 = vld [vmem:[#allocation22 + $0x54] sm:$0xf0] }
 0x736   :  { %4780 = vmatpush.bf16.msra.mxu0 %v6641_v35  ;;  %4793 = vmatpush.bf16.msrb.mxu3 %v6645_v34  ;;  %v6865_v35 = vor.u32 %v7356_v60, %v6862_v49  ;;  %v7342_v34 = vld [vmem:[#allocation22 + $0x54] sm:$0xf]  ;;  %v7004_v60 = vld [vmem:[#allocation24 + $0xe0] sm:$0xf]  ;;  %v7392_v49 = vld [vmem:[#allocation24 + $0xe4] sm:$0xf] }
 0x794   :  { %v4397_v31 = vpop.f32.mrf.mxu1 }
 0x795   :  { %v4421_v18 = vpop.f32.mrf.mxu0 }
 0x79a   :  { %v4373_v46 = vpop.f32.mrf.mxu2 }
 0x79b   :  { %v4377_v43 = vadd.f32 %v4373_v46, %v4353_v1  ;;  %v4445_v37 = vpop.f32.mrf.mxu3  ;;  %v6852_v1 = vld [vmem:[#allocation22 + $0xb0] sm:$0xf]  ;;  %v6809_v46 = vor.u32 %v7342_v34, %v6806_v45  ;;  %v7333_v34 = vld [vmem:[#allocation22 + $0x4] sm:$0xf0] }
 0x79c   :  { %v4399_v63 = vpop.f32.mrf.mxu1 }
 0x79d   :  { %v4401_v52 = vadd.f32 %v4397_v31, %v4377_v43  ;;  %v4423_v48 = vpop.f32.mrf.mxu0  ;;  %v6804_v31 = vld [vmem:[#allocation22 + $0x50] sm:$0xf]  ;;  %v7355_v43 = vld [vmem:[#allocation22 + $0xb4] sm:$0xf0]  ;;  %v6854_v63 = vld [vmem:[#allocation22 + $0xb8] sm:$0xf0] }
 0x79f   :  { %v4425_v9 = vadd.f32 %v4421_v18, %v4401_v52  ;;  %v6805_v18 = vor.u32 %v7343_v10, %v6804_v31  ;;  %v6853_v52 = vor.u32 %v7355_v43, %v6852_v1  ;;  %v7332_v43 = vld [vmem:[#allocation22 + $0x4] sm:$0xf] }
 0x7a1   :  { %v4449_v51 = vadd.f32 %v4445_v37, %v4425_v9  ;;  %v7354_v37 = vld [vmem:[#allocation22 + $0xb4] sm:$0xf]  ;;  %v6796_v9 = vld [vmem:[#allocation22 + $0x40] sm:$0xf] }
 0x7a2   :  { %v4375_v53 = vpop.f32.mrf.mxu2  ;;  %v6857_v48 = vor.u32 %v7354_v37, %v6854_v63  ;;  %v6766_v37 = vld [vmem:[#allocation22 + $0x8] sm:$0xf0] }
 0x7a3   :  { %v4491_v28 = vpack.c.bf16 %v4449_v51, %v4449_v51  ;;  %v4447_v24 = vpop.f32.mrf.mxu3  ;;  %v7341_v51 = vld [vmem:[#allocation22 + $0x44] sm:$0xf0]  ;;  %v6798_v53 = vld [vmem:[#allocation22 + $0x48] sm:$0xf0]  ;;  %v6769_v63 = vor.u32 %v7332_v43, %v6766_v37  ;;  %v6918_v43 = vld [vmem:[#allocation24 + $0x38] sm:$0xf0] }
 0x7a4   :  { %v6797_v57 = vor.u32 %v7341_v51, %v6796_v9  ;;  %v6801_v23 = vor.u32 %v7340_v41, %v6798_v53  ;;  %v7352_v24 = vld [vmem:[#allocation22 + $0xa4] sm:$0xf]  ;;  %v7378_v51 = vld [vmem:[#allocation24 + $0x74] sm:$0xf]  ;;  %v6950_v41 = vld [vmem:[#allocation24 + $0x78] sm:$0xf0] }
 0x7a5   :  { %6626 = vmatmul.msk.bf16.vlgmr.msrb.gmra.mxu2 %vm2009_vm6, %v4491_v28  ;;  %6627 = vmatmul.msk.bf16.vlgmr.msrb.gmra.mxu1 %vm2009_vm6, %v4491_v28  ;;  %v6996_v53 = vld [vmem:[#allocation24 + $0xd0] sm:$0xf] }
 0x7a6   :  { %6628 = vmatmul.msk.bf16.vlgmr.msrb.gmra.mxu0 %vm2009_vm6, %v4491_v28  ;;  %6629 = vmatmul.msk.bf16.vlgmr.msra.gmra.mxu3 %vm2009_vm6, %v4491_v28  ;;  %v7353_v28 = vld [vmem:[#allocation22 + $0xa4] sm:$0xf0] }
 0x7a7   :  { %4827 = vmatpush.bf16.msrb.mxu2 %v4812_v56  ;;  %4840 = vmatpush.bf16.msrb.mxu1 %v4814_v58  ;;  %v6845_v56 = vor.u32 %v7353_v28, %v6844_v50  ;;  %v6846_v58 = vld [vmem:[#allocation22 + $0xa8] sm:$0xf0]  ;;  %v7390_v50 = vld [vmem:[#allocation24 + $0xd4] sm:$0xf] }
 0x7a8   :  { %4853 = vmatpush.bf16.msrb.mxu0 %v4816_v42  ;;  %4866 = vmatpush.bf16.msra.mxu3 %v4818_v54  ;;  %v6788_v42 = vld [vmem:[#allocation22 + $0x30] sm:$0xf]  ;;  %v7339_v54 = vld [vmem:[#allocation22 + $0x34] sm:$0xf0]  ;;  %v6849_v44 = vor.u32 %v7352_v24, %v6846_v58  ;;  %v6998_v24 = vld [vmem:[#allocation24 + $0xd8] sm:$0xf0] }
 0x7a9   :  { %v6789_v32 = vor.u32 %v7339_v54, %v6788_v42  ;;  %v7001_v58 = vor.u32 %v7390_v50, %v6998_v24  ;;  %v6940_v42 = vld [vmem:[#allocation24 + $0x60] sm:$0xf]  ;;  %v7377_v54 = vld [vmem:[#allocation24 + $0x64] sm:$0xf0]  ;;  %v7368_v50 = vld [vmem:[#allocation24 + $0x24] sm:$0xf] }
 0x7aa   :  { %v6956_v24 = vld [vmem:[#allocation24 + $0x80] sm:$0xf] }
 0x7b5   :  { %4755 = vmatmul.bf16.vlgmr.msra.gmra.mxu2 %v4482_v22  ;;  %4768 = vmatmul.bf16.vlgmr.msra.gmra.mxu1 %v4482_v22 }
 0x7b6   :  { %4781 = vmatmul.bf16.vlgmr.msra.gmra.mxu0 %v4482_v22  ;;  %4794 = vmatmul.bf16.vlgmr.msrb.gmra.mxu3 %v4482_v22  ;;  %v6836_v22 = vld [vmem:[#allocation22 + $0x90] sm:$0xf] }
 0x7b7   :  { %5107 = vmatpush.bf16.msra.mxu1 %v6885_v12  ;;  %5133 = vmatpush.bf16.msrb.mxu3 %v6889_v61  ;;  %v6793_v12 = vor.u32 %v7338_v2, %v6790_v14  ;;  %v7351_v61 = vld [vmem:[#allocation22 + $0x94] sm:$0xf0]  ;;  %v7376_v2 = vld [vmem:[#allocation24 + $0x64] sm:$0xf]  ;;  %v6942_v14 = vld [vmem:[#allocation24 + $0x68] sm:$0xf0] }
 0x7b8   :  { %5094 = vmatpush.bf16.msra.mxu2 %v6821_v11  ;;  %5120 = vmatpush.bf16.msra.mxu0 %v6825_v16  ;;  %v6837_v27 = vor.u32 %v7351_v61, %v6836_v22  ;;  %v7349_v11 = vld [vmem:[#allocation22 + $0x84] sm:$0xf0]  ;;  %v6830_v16 = vld [vmem:[#allocation22 + $0x88] sm:$0xf0]  ;;  %v6988_v61 = vld [vmem:[#allocation24 + $0xc0] sm:$0xf] }
 0x7b9   :  { %v6833_v4 = vor.u32 %v7348_v15, %v6830_v16  ;;  %v7387_v15 = vld [vmem:[#allocation24 + $0xb4] sm:$0xf0] }
 0x7bb   :  { %5108 = vmatpush.bf16.msra.mxu1 %v6877_v55  ;;  %5134 = vmatpush.bf16.msrb.mxu3 %v6881_v26  ;;  %v7337_v55 = vld [vmem:[#allocation22 + $0x24] sm:$0xf0]  ;;  %v6828_v26 = vld [vmem:[#allocation22 + $0x80] sm:$0xf] }
 0x7bc   :  { %5095 = vmatpush.bf16.msra.mxu2 %v6813_v59  ;;  %5121 = vmatpush.bf16.msra.mxu0 %v6817_v33  ;;  %v6781_v38 = vor.u32 %v7337_v55, %v6780_v17  ;;  %v6829_v30 = vor.u32 %v7349_v11, %v6828_v26  ;;  %v7335_v59 = vld [vmem:[#allocation22 + $0x14] sm:$0xf0]  ;;  %v6990_v17 = vld [vmem:[#allocation24 + $0xc8] sm:$0xf0]  ;;  %v6934_v11 = vld [vmem:[#allocation24 + $0x58] sm:$0xf0] }
 0x7bd   :  { %v6773_v33 = vor.u32 %v7335_v59, %v6772_v3 }
 0x7bf   :  { %5109 = vmatpush.bf16.msra.mxu1 %v6869_v19  ;;  %5135 = vmatpush.bf16.msrb.mxu3 %v6873_v62  ;;  %v7394_v19 = vld [vmem:[#allocation24 + $0xf4] sm:$0xf]  ;;  %v7014_v62 = vld [vmem:[#allocation24 + $0xf8] sm:$0xf0] }
 0x7c0   :  { %5096 = vmatpush.bf16.msra.mxu2 %v6805_v18  ;;  %5122 = vmatpush.bf16.msra.mxu0 %v6809_v46  ;;  %v7017_v21 = vor.u32 %v7394_v19, %v7014_v62  ;;  %v6764_v18 = vld [vmem:[#allocation22] sm:$0xf] }
 0x7c1   :  { %v6765_v46 = vor.u32 %v7333_v34, %v6764_v18  ;;  %v6924_v62 = vld [vmem:[#allocation24 + $0x40] sm:$0xf] }
 0x7c3   :  { %5110 = vmatpush.bf16.msra.mxu1 %v6861_v20  ;;  %5136 = vmatpush.bf16.msrb.mxu3 %v6865_v35  ;;  %v7393_v20 = vld [vmem:[#allocation24 + $0xe4] sm:$0xf0]  ;;  %v7006_v35 = vld [vmem:[#allocation24 + $0xe8] sm:$0xf0] }
 0x7c4   :  { %5097 = vmatpush.bf16.msra.mxu2 %v6797_v57  ;;  %5123 = vmatpush.bf16.msra.mxu0 %v6801_v23  ;;  %v7005_v10 = vor.u32 %v7393_v20, %v7004_v60  ;;  %v7009_v1 = vor.u32 %v7392_v49, %v7006_v35  ;;  %v6953_v57 = vor.u32 %v7378_v51, %v6950_v41  ;;  %v7391_v23 = vld [vmem:[#allocation24 + $0xd4] sm:$0xf0]  ;;  %v7384_v49 = vld [vmem:[#allocation24 + $0xa4] sm:$0xf]  ;;  %v6916_v35 = vld [vmem:[#allocation24 + $0x30] sm:$0xf] }
 0x7c5   :  { %6758 = vmatmul.msk.bf16.vlgmr.msrb.gmra.mxu2 %vm4808_vm11, %v4801_v47  ;;  %6759 = vmatmul.msk.bf16.vlgmr.msrb.gmra.mxu1 %vm4808_vm11, %v4801_v47  ;;  %v6997_v28 = vor.u32 %v7391_v23, %v6996_v53  ;;  %v6966_v41 = vld [vmem:[#allocation24 + $0x98] sm:$0xf0]  ;;  %v7369_v53 = vld [vmem:[#allocation24 + $0x24] sm:$0xf0] }
 0x7c6   :  { %6760 = vmatmul.msk.bf16.vlgmr.msrb.gmra.mxu0 %vm4808_vm11, %v4801_v47  ;;  %6761 = vmatmul.msk.bf16.vlgmr.msra.gmra.mxu3 %vm4808_vm11, %v4801_v47  ;;  %v6838_v47 = vld [vmem:[#allocation22 + $0x98] sm:$0xf0] }
 0x7c7   :  { %5111 = vmatpush.bf16.msra.mxu1 %v6853_v52  ;;  %5137 = vmatpush.bf16.msrb.mxu3 %v6857_v48  ;;  %v6841_v13 = vor.u32 %v7350_v36, %v6838_v47  ;;  %v6948_v52 = vld [vmem:[#allocation24 + $0x70] sm:$0xf]  ;;  %v7379_v48 = vld [vmem:[#allocation24 + $0x74] sm:$0xf0]  ;;  %v7389_v36 = vld [vmem:[#allocation24 + $0xc4] sm:$0xf0] }
 0x7c8   :  { %5098 = vmatpush.bf16.msra.mxu2 %v6789_v32  ;;  %5124 = vmatpush.bf16.msra.mxu0 %v6793_v12  ;;  %v6949_v9 = vor.u32 %v7379_v48, %v6948_v52  ;;  %v6941_v32 = vor.u32 %v7377_v54, %v6940_v42  ;;  %v6945_v12 = vor.u32 %v7376_v2, %v6942_v14  ;;  %v6964_v52 = vld [vmem:[#allocation24 + $0x90] sm:$0xf]  ;;  %v7383_v48 = vld [vmem:[#allocation24 + $0x94] sm:$0xf0]  ;;  %v7381_v42 = vld [vmem:[#allocation24 + $0x84] sm:$0xf0] }
 0x7c9   :  { %v6965_v51 = vor.u32 %v7383_v48, %v6964_v52  ;;  %v7380_v54 = vld [vmem:[#allocation24 + $0x84] sm:$0xf] }
 0x7cb   :  { %5112 = vmatpush.bf16.msra.mxu1 %v6845_v56  ;;  %5138 = vmatpush.bf16.msrb.mxu3 %v6849_v44 }
 0x7cc   :  { %5099 = vmatpush.bf16.msra.mxu2 %v6781_v38  ;;  %5125 = vmatpush.bf16.msra.mxu0 %v6785_v39  ;;  %v7375_v38 = vld [vmem:[#allocation24 + $0x54] sm:$0xf0]  ;;  %v6937_v39 = vor.u32 %v7374_v40, %v6934_v11  ;;  %v6892_v40 = vld [vmem:[#allocation24] sm:$0xf]  ;;  %v7364_v11 = vld [vmem:[#allocation24 + $0x4] sm:$0xf] }
 0x7cd   :  { %v6933_v26 = vor.u32 %v7375_v38, %v6932_v7 }
 0x7cf   :  { %5113 = vmatpush.bf16.msra.mxu1 %v6837_v27  ;;  %5139 = vmatpush.bf16.msrb.mxu3 %v6841_v13  ;;  %v6989_v27 = vor.u32 %v7389_v36, %v6988_v61  ;;  %v7388_v13 = vld [vmem:[#allocation24 + $0xc4] sm:$0xf]  ;;  %v6957_v36 = vor.u32 %v7381_v42, %v6956_v24 }
 0x7d0   :  { %5100 = vmatpush.bf16.msra.mxu2 %v6773_v33  ;;  %5126 = vmatpush.bf16.msra.mxu0 %v6777_v29  ;;  %v6993_v55 = vor.u32 %v7388_v13, %v6990_v17  ;;  %v6972_v33 = vld [vmem:[#allocation24 + $0xa0] sm:$0xf] }
 0x7d1   :  { %v6973_v20 = vor.u32 %v7385_v6, %v6972_v33  ;;  %v7407_v42 = vld [vmem:[%s9338_s22 + $0x58] sm:$0xff] }
 0x7d3   :  { %5114 = vmatpush.bf16.msra.mxu1 %v6829_v30  ;;  %5140 = vmatpush.bf16.msrb.mxu3 %v6833_v4  ;;  %v6980_v30 = vld [vmem:[#allocation24 + $0xb0] sm:$0xf]  ;;  %v6982_v4 = vld [vmem:[#allocation24 + $0xb8] sm:$0xf0] }
 0x7d4   :  { %5101 = vmatpush.bf16.msra.mxu2 %v6765_v46  ;;  %5127 = vmatpush.bf16.msra.mxu0 %v6769_v63  ;;  %v6981_v16 = vor.u32 %v7387_v15, %v6980_v30  ;;  %v6985_v19 = vor.u32 %v7386_v25, %v6982_v4  ;;  %v7370_v46 = vld [vmem:[#allocation24 + $0x34] sm:$0xf]  ;;  %v4876_v30 = vld [vmem:[#allocation21] sm:$0xf] }
 0x7d5   :  { %v6921_v63 = vor.u32 %v7370_v46, %v6918_v43  ;;  %v4878_v33 = vperm.slane %v4876_v30, 0  ;;  %v4881_v43 = vperm.slane %v4876_v30, 3 }
 0x7d7   :  { %5361 = vmatpush.bf16.msrb.mxu1 %v7013_v8  ;;  %5387 = vmatpush.bf16.msra.mxu3 %v7017_v21  ;;  %v7373_v8 = vld [vmem:[#allocation24 + $0x44] sm:$0xf0]  ;;  %v7372_v21 = vld [vmem:[#allocation24 + $0x44] sm:$0xf] }
 0x7d8   :  { %5348 = vmatpush.bf16.msrb.mxu2 %v6949_v9  ;;  %5374 = vmatpush.bf16.msrb.mxu0 %v6953_v57  ;;  %v6925_v59 = vor.u32 %v7373_v8, %v6924_v62  ;;  %v6929_v60 = vor.u32 %v7372_v21, %v6926_v5  ;;  %v7382_v9 = vld [vmem:[#allocation24 + $0x94] sm:$0xf]  ;;  %v6908_v57 = vld [vmem:[#allocation24 + $0x20] sm:$0xf] }
 0x7d9   :  { %v6969_v23 = vor.u32 %v7382_v9, %v6966_v41  ;;  %v7402_v41 = vld [vmem:[%s9338_s22 + $0x30] sm:$0xff] }
 0x7db   :  { %5362 = vmatpush.bf16.msrb.mxu1 %v7005_v10  ;;  %5388 = vmatpush.bf16.msra.mxu3 %v7009_v1  ;;  %v6974_v10 = vld [vmem:[#allocation24 + $0xa8] sm:$0xf0]  ;;  %v7371_v1 = vld [vmem:[#allocation24 + $0x34] sm:$0xf0] }
 0x7dc   :  { %5349 = vmatpush.bf16.msrb.mxu2 %v6941_v32  ;;  %5375 = vmatpush.bf16.msrb.mxu0 %v6945_v12  ;;  %v6977_v34 = vor.u32 %v7384_v49, %v6974_v10  ;;  %v6917_v37 = vor.u32 %v7371_v1, %v6916_v35  ;;  %v6958_v32 = vld [vmem:[#allocation24 + $0x88] sm:$0xf0]  ;;  %v7367_v12 = vld [vmem:[#allocation24 + $0x14] sm:$0xf0] }
 0x7dd   :  { %v6961_v17 = vor.u32 %v7380_v54, %v6958_v32  ;;  %v7400_v54 = vld [vmem:[%s9338_s22 + $0x20] sm:$0xff]  ;;  %v7406_v32 = vld [vmem:[%s9338_s22 + $0x50] sm:$0xff] }
 0x7df   :  { %5363 = vmatpush.bf16.msrb.mxu1 %v6997_v28  ;;  %5389 = vmatpush.bf16.msra.mxu3 %v7001_v58  ;;  %v6910_v28 = vld [vmem:[#allocation24 + $0x28] sm:$0xf0]  ;;  %v6909_v58 = vor.u32 %v7369_v53, %v6908_v57  ;;  %v4880_v53 = vperm.slane %v4876_v30, 2 }
 0x7e0   :  { %5350 = vmatpush.bf16.msrb.mxu2 %v6933_v26  ;;  %5376 = vmatpush.bf16.msrb.mxu0 %v6937_v39  ;;  %v6913_v14 = vor.u32 %v7368_v50, %v6910_v28  ;;  %v7365_v26 = vld [vmem:[#allocation24 + $0x4] sm:$0xf0]  ;;  %v6894_v39 = vld [vmem:[#allocation24 + $0x8] sm:$0xf0] }
 0x7e1   :  { %v6893_v15 = vor.u32 %v7365_v26, %v6892_v40  ;;  %v6897_v25 = vor.u32 %v7364_v11, %v6894_v39 }
 0x7e3   :  { %5364 = vmatpush.bf16.msrb.mxu1 %v6989_v27  ;;  %5390 = vmatpush.bf16.msra.mxu3 %v6993_v55  ;;  %v6902_v27 = vld [vmem:[#allocation24 + $0x18] sm:$0xf0] }
 0x7e4   :  { %5351 = vmatpush.bf16.msrb.mxu2 %v6925_v59  ;;  %5377 = vmatpush.bf16.msrb.mxu0 %v6929_v60  ;;  %v7411_v60 = vld [vmem:[%s9338_s22 + $0x78] sm:$0xff] }
 0x7e7   :  { %5365 = vmatpush.bf16.msrb.mxu1 %v6981_v16  ;;  %5391 = vmatpush.bf16.msra.mxu3 %v6985_v19  ;;  %v4879_v19 = vperm.slane %v4876_v30, 1 }
 0x7e8   :  { %5352 = vmatpush.bf16.msrb.mxu2 %v6917_v37  ;;  %5378 = vmatpush.bf16.msrb.mxu0 %v6921_v63  ;;  %v7403_v37 = vld [vmem:[%s9338_s22 + $0x38] sm:$0xff] }
 0x7eb   :  { %5366 = vmatpush.bf16.msrb.mxu1 %v6973_v20  ;;  %5392 = vmatpush.bf16.msra.mxu3 %v6977_v34 }
 0x7ec   :  { %5353 = vmatpush.bf16.msrb.mxu2 %v6909_v58  ;;  %5379 = vmatpush.bf16.msrb.mxu0 %v6913_v14  ;;  %v7405_v14 = vld [vmem:[%s9338_s22 + $0x48] sm:$0xff] }
 0x7ef   :  { %5367 = vmatpush.bf16.msrb.mxu1 %v6965_v51  ;;  %5393 = vmatpush.bf16.msra.mxu3 %v6969_v23  ;;  %v7408_v23 = vld [vmem:[%s9338_s22 + $0x60] sm:$0xff] }
 0x7f3   :  { %5368 = vmatpush.bf16.msrb.mxu1 %v6957_v36  ;;  %5394 = vmatpush.bf16.msra.mxu3 %v6961_v17  ;;  %v7396_v36 = vld [vmem:[%s9338_s22] sm:$0xff] }
 0x822   :  { %v9242_v31 = vpop.f32.mrf.mxu1 }
 0x823   :  { %v9244_v45 = vpop.f32.mrf.mxu0 }
 0x828   :  { %v9246_v56 = vpop.f32.mrf.mxu2 }
 0x829   :  { %v9248_v44 = vpop.f32.mrf.mxu3 }
 0x82a   :  { %v4559_v22 = vpop.f32.mrf.mxu1 }
 0x82b   :  { %v4572_v47 = vpop.f32.mrf.mxu0  ;;  %v6900_v22 = vld [vmem:[#allocation24 + $0x10] sm:$0xf] }
 0x82c   :  { %v7366_v47 = vld [vmem:[#allocation24 + $0x14] sm:$0xf]  ;;  %v6901_v7 = vor.u32 %v7367_v12, %v6900_v22  ;;  %v7398_v22 = vld [vmem:[%s9338_s22 + $0x10] sm:$0xff]  ;;  %v7404_v12 = vld [vmem:[%s9338_s22 + $0x40] sm:$0xff] }
 0x82d   :  { %v6905_v38 = vor.u32 %v7366_v47, %v6902_v27  ;;  %v4928_v27 = vld [vmem:[%s9370_s25] sm:$0x3] }
 0x82e   :  { %5354 = vmatpush.bf16.msrb.mxu2 %v6901_v7  ;;  %v5090_v26 = vperm.slane %v4928_v27, 0 }
 0x82f   :  { %5380 = vmatpush.bf16.msrb.mxu0 %v6905_v38 }
 0x830   :  { %v4546_v0 = vpop.f32.mrf.mxu2 }
 0x831   :  { %v4585_v3 = vpop.f32.mrf.mxu3 }
 0x832   :  { %v9250_v29 = vpop.f32.mrf.mxu1  ;;  %5355 = vmatpush.bf16.msrb.mxu2 %v6893_v15 }
 0x833   :  { %v9252_v18 = vpop.f32.mrf.mxu0  ;;  %v4770_v4 = vadd.f32 %v9250_v29, %v9242_v31  ;;  %5381 = vmatpush.bf16.msrb.mxu0 %v6897_v25 }
 0x834   :  { %v4783_v48 = vadd.f32 %v9252_v18, %v9244_v45  ;;  %v7401_v45 = vld [vmem:[%s9338_s22 + $0x28] sm:$0xff] }
 0x838   :  { %v4756_v2 = vpop.f32.mrf.mxu2 }
 0x839   :  { %v4795_v61 = vpop.f32.mrf.mxu3  ;;  %v4757_v59 = vadd.f32 %v4756_v2, %v9246_v56  ;;  %v7410_v56 = vld [vmem:[%s9338_s22 + $0x70] sm:$0xff]  ;;  %v7399_v2 = vld [vmem:[%s9338_s22 + $0x18] sm:$0xff] }
 0x83a   :  { %v4771_v13 = vpop.f32.mrf.mxu1  ;;  %v4796_v10 = vadd.f32 %v4795_v61, %v9248_v44  ;;  %v7409_v44 = vld [vmem:[%s9338_s22 + $0x68] sm:$0xff] }
 0x83b   :  { %v4784_v55 = vpop.f32.mrf.mxu0  ;;  %v7397_v61 = vld [vmem:[%s9338_s22 + $0x8] sm:$0xff]  ;;  %v5091_v13 = vperm.slane %v4928_v27, 1 }
 0x840   :  { %v4758_v16 = vpop.f32.mrf.mxu2 }
 0x841   :  { %v4797_v0 = vpop.f32.mrf.mxu3 }
 0x842   :  { %v4842_v62 = vpop.f32.mrf.mxu1 }
 0x843   :  { %v4873_v8 = vadd.f32 %v4842_v62, %v4770_v4  ;;  %v4855_v21 = vpop.f32.mrf.mxu0 }
 0x844   :  { %v4874_v57 = vadd.f32 %v4855_v21, %v4783_v48 }
 0x845   :  { %v4887_v3 = vadd.f32 %v4879_v19, %v4873_v8  ;;  %v5182_v19 = vld [vmem:[#allocation25] sm:$0x3] }
 0x846   :  { %v4888_v18 = vadd.f32 %v4880_v53, %v4874_v57  ;;  %v5345_v21 = vperm.slane %v5182_v19, 1  ;;  %v5436_v57 = vld [vmem:[#allocation27] sm:$0x1] }
 0x847   :  { %v4891_v5 = vmax.f32 %v4887_v3, 0.0 }
 0x848   :  { %v4829_v6 = vpop.f32.mrf.mxu2  ;;  %v4892_v24 = vmax.f32 %v4888_v18, 0.0 }
 0x849   :  { %v4927_v20 = vpack.c.bf16 %v4891_v5, %v4891_v5  ;;  %v4872_v49 = vadd.f32 %v4829_v6, %v4757_v59  ;;  %v4868_v31 = vpop.f32.mrf.mxu3 }
 0x84a   :  { %v4844_v29 = vpop.f32.mrf.mxu1  ;;  %v4875_v46 = vadd.f32 %v4868_v31, %v4796_v10  ;;  %v5180_v58 = vpack.c.bf16 %v4892_v24, %v4892_v24 }
 0x84b   :  { %v4886_v35 = vadd.f32 %v4878_v33, %v4872_v49  ;;  %5115 = vmatmul.bf16.vlgmr.msra.gmra.mxu1 %v4927_v20  ;;  %5141 = vmatmul.bf16.vlgmr.msrb.gmra.mxu3 %v4927_v20  ;;  %v4857_v34 = vpop.f32.mrf.mxu0  ;;  %v5344_v20 = vperm.slane %v5182_v19, 0  ;;  %v5559_v49 = vld [vmem:[#allocation28] sm:$0x3] }
 0x84c   :  { %5546 = vmatpush.bf16.msra.mxu1 %v7411_v60  ;;  %v4889_v9 = vadd.f32 %v4881_v43, %v4875_v46  ;;  %v5561_v46 = vperm.slane %v5559_v49, 0 }
 0x84d   :  { %v4890_v1 = vmax.f32 %v4886_v35, 0.0  ;;  %v5562_v35 = vperm.slane %v5559_v49, 1 }
 0x84e   :  { %v4893_v50 = vmax.f32 %v4889_v9, 0.0 }
 0x84f   :  { %v4926_v63 = vpack.c.bf16 %v4890_v1, %v4890_v1 }
 0x850   :  { %v4831_v52 = vpop.f32.mrf.mxu2  ;;  %5547 = vmatpush.bf16.msra.mxu1 %v7410_v56  ;;  %v5181_v28 = vpack.c.bf16 %v4893_v50, %v4893_v50  ;;  %v5572_v50 = vld [vmem:[#allocation4] sm:$0x1] }
 0x851   :  { %5102 = vmatmul.bf16.vlgmr.msra.gmra.mxu2 %v4926_v63  ;;  %5128 = vmatmul.bf16.vlgmr.msra.gmra.mxu0 %v4926_v63  ;;  %v4870_v51 = vpop.f32.mrf.mxu3 }
 0x852   :  { %5533 = vmatpush.bf16.msra.mxu2 %v7403_v37 }
 0x854   :  { %5548 = vmatpush.bf16.msra.mxu1 %v7409_v44 }
 0x856   :  { %5534 = vmatpush.bf16.msra.mxu2 %v7402_v41 }
 0x858   :  { %5549 = vmatpush.bf16.msra.mxu1 %v7408_v23 }
 0x85a   :  { %5535 = vmatpush.bf16.msra.mxu2 %v7401_v45 }
 0x85b   :  { %5369 = vmatmul.bf16.vlgmr.msrb.gmra.mxu1 %v5181_v28  ;;  %5395 = vmatmul.bf16.vlgmr.msra.gmra.mxu3 %v5181_v28 }
 0x85c   :  { %5550 = vmatpush.bf16.msra.mxu1 %v7407_v42 }
 0x85e   :  { %5536 = vmatpush.bf16.msra.mxu2 %v7400_v54 }
 0x860   :  { %5551 = vmatpush.bf16.msra.mxu1 %v7406_v32 }
 0x861   :  { %5356 = vmatmul.bf16.vlgmr.msrb.gmra.mxu2 %v5180_v58  ;;  %5382 = vmatmul.bf16.vlgmr.msrb.gmra.mxu0 %v5180_v58  ;;  %v5574_v58 = vlaneseq }
 0x862   :  { %5537 = vmatpush.bf16.msra.mxu2 %v7399_v2 }
 0x863   :  { %v5575_v42 = vand.u32 127, %v5574_v58 }
 0x864   :  { %5552 = vmatpush.bf16.msra.mxu1 %v7405_v14 }
 0x865   :  { %vm5576_vm12 = vcmp.eq.s32.totalorder %v5575_v42, 127 }
 0x866   :  { %5538 = vmatpush.bf16.msra.mxu2 %v7398_v22 }
 0x868   :  { %5553 = vmatpush.bf16.msra.mxu1 %v7404_v12 }
 0x86a   :  { %5539 = vmatpush.bf16.msra.mxu2 %v7397_v61 }
 0x86e   :  { %5540 = vmatpush.bf16.msra.mxu2 %v7396_v36 }
 0x8c8   :  { %v5116_v47 = vpop.f32.mrf.mxu1 }
 0x8ce   :  { %v5129_v17 = vpop.f32.mrf.mxu0  ;;  %v5142_v55 = vpop.f32.mrf.mxu3 }
 0x8cf   :  { %v5130_v7 = vadd.f32 %v5129_v17, %v5091_v13 }
 0x8d0   :  { %v5118_v38 = vpop.f32.mrf.mxu1 }
 0x8d1   :  { %v5143_v40 = vadd.f32 %v5142_v55, %v5130_v7 }
 0x8d3   :  { %v5147_v11 = vmax.f32 %v5143_v40, 0.0 }
 0x8d4   :  { %v5103_v39 = vpop.f32.mrf.mxu2 }
 0x8d5   :  { %v5435_v30 = vpack.c.bf16 %v5147_v11, %v5147_v11  ;;  %v5104_v15 = vadd.f32 %v5103_v39, %v5090_v26 }
 0x8d6   :  { %v5131_v16 = vpop.f32.mrf.mxu0  ;;  %v5144_v25 = vpop.f32.mrf.mxu3 }
 0x8d7   :  { %v5117_v4 = vadd.f32 %v5116_v47, %v5104_v15  ;;  %5554 = vmatmul.bf16.vlgmr.msra.gmra.mxu1 %v5435_v30 }
 0x8d8   :  { %v5370_v0 = vpop.f32.mrf.mxu1 }
 0x8d9   :  { %v5146_v62 = vmax.f32 %v5117_v4, 0.0 }
 0x8db   :  { %v5434_v8 = vpack.c.bf16 %v5146_v62, %v5146_v62 }
 0x8dc   :  { %v5105_v3 = vpop.f32.mrf.mxu2 }
 0x8dd   :  { %5541 = vmatmul.bf16.vlgmr.msra.gmra.mxu2 %v5434_v8 }
 0x8de   :  { %v5383_v59 = vpop.f32.mrf.mxu0  ;;  %v5396_v5 = vpop.f32.mrf.mxu3 }
 0x8df   :  { %v5384_v33 = vadd.f32 %v5383_v59, %v5345_v21 }
 0x8e0   :  { %v5372_v6 = vpop.f32.mrf.mxu1 }
 0x8e1   :  { %v5397_v60 = vadd.f32 %v5396_v5, %v5384_v33 }
 0x8e3   :  { %v5401_v29 = vmax.f32 %v5397_v60, 0.0 }
 0x8e4   :  { %v5357_v31 = vpop.f32.mrf.mxu2 }
 0x8e5   :  { %v5358_v10 = vadd.f32 %v5357_v31, %v5344_v20  ;;  %v5566_v37 = vmul.f32 %v5562_v35, %v5401_v29 }
 0x8e6   :  { %v5385_v34 = vpop.f32.mrf.mxu0  ;;  %v5398_v56 = vpop.f32.mrf.mxu3 }
 0x8e7   :  { %v5371_v1 = vadd.f32 %v5370_v0, %v5358_v10  ;;  %v5568_v48 = vsel %vm1055_vm3, %v5566_v37, 0.0 }
 0x8e9   :  { %v5400_v43 = vmax.f32 %v5371_v1, 0.0 }
 0x8eb   :  { %v5565_v63 = vmul.f32 %v5561_v46, %v5400_v43 }
 0x8ec   :  { %v5359_v52 = vpop.f32.mrf.mxu2 }
 0x8ed   :  { %v5567_v44 = vsel %vm1055_vm3, %v5565_v63, 0.0 }
 0x8ee   :  { %v5569_v9 = vadd.f32 %v5568_v48, %v5567_v44 }
 0x8f0   :  { %5570 = vadd.xlane.f32.xlu0 %v5569_v9 }
 0x954   :  { %v5555_v51 = vpop.f32.mrf.mxu1 }
 0x95c   :  { %v5557_v41 = vpop.f32.mrf.mxu1 }
 0x960   :  { %v5542_v53 = vpop.f32.mrf.mxu2 }
 0x961   :  { %v5543_v23 = vadd.f32 %v5542_v53, %v5436_v57 }
 0x963   :  { %v5556_v45 = vadd.f32 %v5555_v51, %v5543_v23  ;;  %v5571_v18 = vpop.xlane.xlu0 %5570 }
 0x964   :  { %v5573_v28 = vadd.f32 %v5572_v50, %v5571_v18 }
 0x966   :  { %5579 = vperm.xlu0 %7436, %v5573_v28  }
 0x968   :  { %v5544_v24 = vpop.f32.mrf.mxu2 }
 0x9d8   :  { %v5580_v54 = vpop.permute.xlu0 %5579 }
 0x9d9   :  { %v5582_v32 = vsel %vm5576_vm12, %v5580_v54, 0.0 }
 0x9da   :  { %v5583_v2 = vadd.f32 %v5582_v32, %v5556_v45 }
 0x9dc   :  { %5584 = vst [vmem:[%s9371_s11] sm:$0x1] %v5583_v2 }
 0x9dd   :  { %5589 = vsyncpa [#allocation6], 1 }
 0x9de   :  { %5590 = vsyncpa [#allocation8], 1 }
 0x9df   :  { %5591 = vsyncpa [#allocation11], 1 }
 0x9e0   :  { %5592 = vsyncpa [#allocation14], 1 }
 0x9e1   :  { %5593 = vsyncpa [#allocation17], 1 }
 0x9e2   :  { %5594 = vsyncpa [#allocation20], 1 }
 0x9e3   :  { %5595 = vsyncpa [#allocation23], 1 }
 0x9e4   :  { %5596 = vsyncpa [#allocation26], 1 }
 0x9e5   :  { %5597 = vsyncpa [#allocation29], 1 }

</bundles_post_ra>
